<compile_context>
chip_gen: v7x
topology: tpu7x:2x2x1
jax: 0.10.0
libtpu: 0.0.40
codegen_flags: <defaults>
</compile_context>

<pallas_src>
import functools

import numpy as np

import jax
import jax.numpy as jnp
from jax.experimental import pallas as pl
from jax.experimental.pallas import tpu as pltpu


# ----------------------------------------------------------------------------
# Host-side constant builders (trace-time, NumPy): unfold / fold as matrices.
# ----------------------------------------------------------------------------
def _torch_same_pad(size, k, s):
    """torch same_padding amounts along one dim: (num_windows, lo_pad)."""
    out = (size + s - 1) // s
    pad = max(0, (out - 1) * s + k - size)
    return out, pad // 2


def build_unfold_matrix(H, W, k, stride, kk_pad):
    """S: [H*W, kk_pad*L] with S[p, kkidx*L + l] = 1 iff torch.nn.Unfold (with
    torch 'same' padding) reads input pixel p for window l, kernel pos kkidx."""
    out_r, top = _torch_same_pad(H, k, stride)
    out_c, left = _torch_same_pad(W, k, stride)
    L = out_r * out_c
    S = np.zeros((H * W, kk_pad * L), np.float32)
    for fr in range(out_r):
        for fc in range(out_c):
            l = fr * out_c + fc
            for kr in range(k):
                for kc in range(k):
                    h = fr * stride + kr - top
                    w = fc * stride + kc - left
                    if 0 <= h < H and 0 <= w < W:
                        S[h * W + w, (kr * k + kc) * L + l] = 1.0
    return S, L


def build_fold_matrix(H, W, k, stride, p0, L1, kk_pad):
    """F: [kk_pad*L1, H*W]; Z[Ci, kk_pad*L1] @ F == crop(fold(Z)) / mask, i.e.
    F also carries the reciprocal of the constant coverage mask."""
    n_r = (H + 2 * p0 - k) // stride + 1
    n_c = (W + 2 * p0 - k) // stride + 1
    assert n_r * n_c == L1, "fold block count must match unfold L1"
    cover = np.zeros((H, W), np.float64)
    hits = []
    for fr in range(n_r):
        for fc in range(n_c):
            l = fr * n_c + fc
            for kr in range(k):
                for kc in range(k):
                    h = fr * stride + kr - p0
                    w = fc * stride + kc - p0
                    if 0 <= h < H and 0 <= w < W:
                        cover[h, w] += 1.0
                        hits.append((kr * k + kc, l, h, w))
    assert cover.min() > 0.0, "fold coverage gap would divide by zero"
    F = np.zeros((kk_pad * L1, H * W), np.float32)
    for kkidx, l, h, w in hits:
        F[kkidx * L1 + l, h * W + w] = 1.0 / cover[h, w]
    return F


def build_salsa_constants(H, W, ksize, stride_1, stride_2):
    kk_pad = -(-(ksize * ksize) // 16) * 16          # 49 -> 64 (lane-friendly)
    S1, L1 = build_unfold_matrix(H, W, ksize, stride_1, kk_pad)
    S2, _ = build_unfold_matrix(H, W, ksize, stride_2, kk_pad)
    p0 = max(0, (W - 1) + ksize - W) // 2            # torch stride-1 'same' left pad
    F = build_fold_matrix(H, W, ksize, stride_1, p0, L1, kk_pad)
    return jnp.asarray(S1), jnp.asarray(S2), jnp.asarray(F), kk_pad


# ----------------------------------------------------------------------------
# Pallas kernels (one sample per grid step; grid axis is the batch, "parallel")
# ----------------------------------------------------------------------------
def _conv_unfold_kernel(x_ref, w_ref, b_ref, s1_ref, s2_ref,
                        pq_ref, pv_ref, pk_ref, *, Ci):
    # x: [C, HW]; w: [3Ci, C]; b: [3Ci, 1]; s1: [HW, kkp*L1]; s2: [HW, kkp*L2]
    x = x_ref[0]
    pre = jnp.dot(w_ref[...], x, preferred_element_type=jnp.float32) + b_ref[...]
    b1 = pre[0:Ci, :]            # g
    b2 = pre[Ci:2 * Ci, :]       # theta
    b3 = pre[2 * Ci:3 * Ci, :]   # phi
    s1 = s1_ref[...]
    s2 = s2_ref[...]
    # unfold-as-matmul (torch.nn.Unfold with 'same' padding baked into S)
    pq_ref[0] = jnp.dot(b1, s1, preferred_element_type=jnp.float32)  # [Ci, kkp*L1]
    pv_ref[0] = jnp.dot(b2, s2, preferred_element_type=jnp.float32)  # [Ci, kkp*L2]
    pk_ref[0] = jnp.dot(b3, s2, preferred_element_type=jnp.float32)  # [Ci, kkp*L2]


def _attention_kernel(qt_ref, k_ref, v_ref, o_ref, *, scale):
    # qt: [L1, D], k: [D, L2], v: [D, L2]  ->  o: [D, L1] (= attMulV^T)
    qt = qt_ref[0]
    kd = k_ref[0]
    vd = v_ref[0]
    s = jnp.dot(qt, kd, preferred_element_type=jnp.float32) * scale       # [L1, L2]
    m = jnp.max(s, axis=1, keepdims=True)
    e = jnp.exp(s - m)
    denom = jnp.sum(e, axis=1, keepdims=True)
    att = e * pl.reciprocal(denom, approx=True)                           # softmax(dim=1)
    # attMulV^T laid out [D, L1] so the fold matmul consumes it with no transpose
    o_ref[0] = jax.lax.dot_general(vd, att, (((1,), (1,)), ((), ())),
                                   preferred_element_type=jnp.float32)


def _fold_w_res_kernel(z_ref, x_ref, f_ref, ww_ref, wb_ref, o_ref):
    # fold (scatter-add), crop and the 1/mask scaling are all inside F.
    zin = jnp.dot(z_ref[0], f_ref[...], preferred_element_type=jnp.float32)  # [Ci, HW]
    o_ref[0] = (x_ref[0]
                + jnp.dot(ww_ref[...], zin, preferred_element_type=jnp.float32)
                + wb_ref[...])


# ----------------------------------------------------------------------------
# SALSA forward: 3 pallas_calls total, batch handled by the grid.
# ----------------------------------------------------------------------------
@functools.partial(jax.jit, static_argnames=("kk_pad", "softmax_scale"))
def salsa_forward(b, params, s1, s2, fmat, *, kk_pad, softmax_scale):
    N, C, H, W = b.shape
    HW = H * W
    Ci = params["g_w"].shape[0]
    L1 = s1.shape[1] // kk_pad
    L2 = s2.shape[1] // kk_pad
    D = Ci * kk_pad

    x = b.reshape(N, C, HW)
    wg3 = jnp.concatenate([params["g_w"], params["theta_w"], params["phi_w"]], axis=0)
    bg3 = jnp.concatenate([params["g_b"], params["theta_b"], params["phi_b"]],
                          axis=0).reshape(3 * Ci, 1)

    cparams = pltpu.CompilerParams(dimension_semantics=("parallel",))

    def per_sample(shape):   # batched arrays: one sample per grid step
        return pl.BlockSpec((1,) + shape, lambda i: (i, 0, 0))

    def shared(shape):       # constants / weights: same block every step
        return pl.BlockSpec(shape, lambda i: (0, 0))

    # --- kernel 1: fused g/theta/phi 1x1 convs + unfold-as-matmul -----------
    pq, pv, pk = pl.pallas_call(
        functools.partial(_conv_unfold_kernel, Ci=Ci),
        grid=(N,),
        in_specs=[per_sample((C, HW)), shared((3 * Ci, C)), shared((3 * Ci, 1)),
                  shared((HW, kk_pad * L1)), shared((HW, kk_pad * L2))],
        out_specs=[per_sample((Ci, kk_pad * L1)),
                   per_sample((Ci, kk_pad * L2)),
                   per_sample((Ci, kk_pad * L2))],
        out_shape=[jax.ShapeDtypeStruct((N, Ci, kk_pad * L1), jnp.float32),
                   jax.ShapeDtypeStruct((N, Ci, kk_pad * L2), jnp.float32),
                   jax.ShapeDtypeStruct((N, Ci, kk_pad * L2), jnp.float32)],
        compiler_params=cparams,
    )(x, wg3, bg3, s1, s2)

    # Contiguity-preserving reshapes; only the q transpose moves data (tiny).
    qt = jnp.swapaxes(pq.reshape(N, D, L1), 1, 2)    # [N, L1, D]
    vd = pv.reshape(N, D, L2)                        # [N, D, L2]
    kd = pk.reshape(N, D, L2)                        # [N, D, L2]

    # --- kernel 2: non-local patch attention ---------------------------------
    zp = pl.pallas_call(
        functools.partial(_attention_kernel, scale=float(softmax_scale)),
        grid=(N,),
        in_specs=[per_sample((L1, D)), per_sample((D, L2)), per_sample((D, L2))],
        out_specs=per_sample((D, L1)),
        out_shape=jax.ShapeDtypeStruct((N, D, L1), jnp.float32),
        compiler_params=cparams,
    )(qt, kd, vd)

    # --- kernel 3: fold (+1/mask baked in), W 1x1 conv, residual -------------
    z = zp.reshape(N, Ci, kk_pad * L1)
    y = pl.pallas_call(
        _fold_w_res_kernel,
        grid=(N,),
        in_specs=[per_sample((Ci, kk_pad * L1)), per_sample((C, HW)),
                  shared((kk_pad * L1, HW)), shared((C, Ci)), shared((C, 1))],
        out_specs=per_sample((C, HW)),
        out_shape=jax.ShapeDtypeStruct((N, C, HW), jnp.float32),
        compiler_params=cparams,
    )(z, x, fmat, params["W_w"], params["W_b"].reshape(C, 1))

    return y.reshape(N, C, H, W)


# ----------------------------------------------------------------------------
# Plain-JAX reference (straight transcription of the PyTorch forward), used
# only as an in-script numerical sanity check.
# ----------------------------------------------------------------------------
def _reference_forward(b, params, *, ksize, stride_1, stride_2, softmax_scale):
    N, C, H, W = b.shape
    k = ksize
    Ci = params["g_w"].shape[0]

    def conv1x1(x, w, bias):
        return jnp.einsum("oc,chw->ohw", w, x) + bias[:, None, None]

    def same_pad(size, s):
        out = -(-size // s)
        pad = max(0, (out - 1) * s + k - size)
        return out, pad // 2, pad - pad // 2

    def unfold(x, s, top, bottom, left, right, o_r, o_c):
        xp = jnp.pad(x, ((0, 0), (top, bottom), (left, right)))
        ri = (jnp.arange(o_r) * s)[:, None] + jnp.arange(k)[None, :]
        ci = (jnp.arange(o_c) * s)[:, None] + jnp.arange(k)[None, :]
        p = xp[:, ri[:, None, :, None], ci[None, :, None, :]]   # [Ch, OR, OC, k, k]
        p = jnp.transpose(p, (0, 3, 4, 1, 2))                   # [Ch, k, k, OR, OC]
        return p.reshape(x.shape[0] * k * k, o_r * o_c)

    def fold(cols, Ch, pad, s, n_r, n_c):
        Xr = cols.reshape(Ch, k, k, n_r, n_c)
        out = jnp.zeros((Ch, H + 2 * pad, W + 2 * pad), cols.dtype)
        ri = (jnp.arange(n_r) * s)[:, None] + jnp.arange(k)[None, :]
        ci = (jnp.arange(n_c) * s)[:, None] + jnp.arange(k)[None, :]
        RI = jnp.broadcast_to(jnp.transpose(ri)[:, None, :, None], (k, k, n_r, n_c))
        CI = jnp.broadcast_to(jnp.transpose(ci)[None, :, None, :], (k, k, n_r, n_c))
        out = out.at[:, RI, CI].add(Xr)
        return out[:, pad:pad + H, pad:pad + W]

    OR1, top1, bot1 = same_pad(H, stride_1)
    OC1, lft1, rgt1 = same_pad(W, stride_1)
    OR2, top2, bot2 = same_pad(H, stride_2)
    OC2, lft2, rgt2 = same_pad(W, stride_2)
    p0 = max(0, (W - 1) + k - W) // 2
    n_r = (H + 2 * p0 - k) // stride_1 + 1
    n_c = (W + 2 * p0 - k) // stride_1 + 1

    outs = []
    for i in range(N):
        x = b[i]
        b1 = conv1x1(x, params["g_w"], params["g_b"])
        b2 = conv1x1(x, params["theta_w"], params["theta_b"])
        b3 = conv1x1(x, params["phi_w"], params["phi_b"])
        p28 = unfold(b1, stride_1, top1, bot1, lft1, rgt1, OR1, OC1)      # [D, L1]
        p112 = unfold(b2, stride_2, top2, bot2, lft2, rgt2, OR2, OC2)     # [D, L2]
        p112_2 = unfold(b3, stride_2, top2, bot2, lft2, rgt2, OR2, OC2)   # [D, L2]
        score = (p28.T @ p112_2) * softmax_scale
        att = jax.nn.softmax(score, axis=1)
        attMulV = att @ p112.T                                            # [L1, D]
        zi = fold(attMulV.T, Ci, p0, stride_1, n_r, n_c)
        ones_unf = unfold(jnp.ones((Ci, H, W), jnp.float32), stride_1,
                          p0, p0, p0, p0, n_r, n_c)
        mask = fold(ones_unf, Ci, p0, stride_1, n_r, n_c)
        zin = zi / mask
        y = (x + jnp.einsum("oc,chw->ohw", params["W_w"], zin)
             + params["W_b"][:, None, None])
        outs.append(y)
    return jnp.stack(outs, axis=0)


# ----------------------------------------------------------------------------
# Deterministic parameter init + driver
# ----------------------------------------------------------------------------
def make_params(key, in_channels, inter_channels):
    ks = jax.random.split(key, 8)
    s = 0.1
    return {
        "g_w": s * jax.random.normal(ks[0], (inter_channels, in_channels), jnp.float32),
        "g_b": s * jax.random.normal(ks[1], (inter_channels,), jnp.float32),
        "theta_w": s * jax.random.normal(ks[2], (inter_channels, in_channels), jnp.float32),
        "theta_b": s * jax.random.normal(ks[3], (inter_channels,), jnp.float32),
        "phi_w": s * jax.random.normal(ks[4], (inter_channels, in_channels), jnp.float32),
        "phi_b": s * jax.random.normal(ks[5], (inter_channels,), jnp.float32),
        "W_w": s * jax.random.normal(ks[6], (in_channels, inter_channels), jnp.float32),
        "W_b": s * jax.random.normal(ks[7], (in_channels,), jnp.float32),
        # conv33 / SE are unused because add_SE=False in this configuration.
    }


if __name__ == "__main__":
    key = jax.random.PRNGKey(0)
    k_in, k_par = jax.random.split(key)

    N, C, H, W = 2, 16, 16, 16
    inter_channels = 8
    ksize, stride_1, stride_2, softmax_scale = 7, 4, 4, 10.0

    b = jax.random.normal(k_in, (N, C, H, W), jnp.float32)
    params = make_params(k_par, C, inter_channels)
    s1, s2, fmat, kk_pad = build_salsa_constants(H, W, ksize, stride_1, stride_2)

    out = salsa_forward(b, params, s1, s2, fmat,
                        kk_pad=kk_pad, softmax_scale=softmax_scale)
    out = jax.block_until_ready(out)

    assert out.shape == (N, C, H, W), out.shape
    assert bool(jnp.all(jnp.isfinite(out)))

    # Numerical sanity check against a plain-JAX transcription of the module.
    ref = jax.block_until_ready(
        _reference_forward(b, params, ksize=ksize, stride_1=stride_1,
                           stride_2=stride_2, softmax_scale=softmax_scale))
    max_err = float(jnp.max(jnp.abs(out - ref)))
    assert max_err < 2e-2, f"mismatch vs reference: {max_err}"

    print("KERNEL_OK")
</pallas_src>

<mosaic_0001>
module attributes {stable_mosaic.version = 11 : i64} {
  func.func @_conv_unfold_kernel(%arg0: i32, %arg1: memref<1x16x256xf32, #tpu.memory_space<vmem>>, %arg2: memref<24x16xf32, #tpu.memory_space<vmem>>, %arg3: memref<24x1xf32, #tpu.memory_space<vmem>>, %arg4: memref<256x1024xf32, #tpu.memory_space<vmem>>, %arg5: memref<256x1024xf32, #tpu.memory_space<vmem>>, %arg6: memref<1x8x1024xf32, #tpu.memory_space<vmem>>, %arg7: memref<1x8x1024xf32, #tpu.memory_space<vmem>>, %arg8: memref<1x8x1024xf32, #tpu.memory_space<vmem>>) attributes {dimension_semantics = [#tpu.dimension_semantics<parallel>], iteration_bounds = array<i64: 2>, scalar_prefetch = 0 : i64, scratch_operands = 0 : i64, tpu.core_type = #tpu.core_type<tc>, window_params = [{transform_indices = @transform_0, window_bounds = array<i64: 1, 16, 256>}, {pipeline_mode = #tpu.pipeline_mode<synchronous>, transform_indices = @transform_1, window_bounds = array<i64: 24, 16>}, {pipeline_mode = #tpu.pipeline_mode<synchronous>, transform_indices = @transform_2, window_bounds = array<i64: 24, 1>}, {pipeline_mode = #tpu.pipeline_mode<synchronous>, transform_indices = @transform_3, window_bounds = array<i64: 256, 1024>}, {pipeline_mode = #tpu.pipeline_mode<synchronous>, transform_indices = @transform_4, window_bounds = array<i64: 256, 1024>}, {transform_indices = @transform_5, window_bounds = array<i64: 1, 8, 1024>}, {transform_indices = @transform_6, window_bounds = array<i64: 1, 8, 1024>}, {transform_indices = @transform_7, window_bounds = array<i64: 1, 8, 1024>}]} {
    %c0 = arith.constant 0 : index
    %c0_0 = arith.constant 0 : index
    %c0_1 = arith.constant 0 : index
    %0 = vector.load %arg1[%c0, %c0_0, %c0_1] : memref<1x16x256xf32, #tpu.memory_space<vmem>>, vector<1x16x256xf32>
    %1 = vector.shape_cast %0 : vector<1x16x256xf32> to vector<16x256xf32>
    %c0_2 = arith.constant 0 : index
    %c0_3 = arith.constant 0 : index
    %2 = vector.load %arg2[%c0_2, %c0_3] : memref<24x16xf32, #tpu.memory_space<vmem>>, vector<24x16xf32>
    %cst = arith.constant dense<0.000000e+00> : vector<24x256xf32>
    %3 = tpu.matmul %2, %1, %cst {dimension_numbers = #tpu.dot_dimension_numbers<[1], [0], [0], [1], [0, 0, 1, 1], [], []>} : vector<24x16xf32>, vector<16x256xf32>, vector<24x256xf32> -> vector<24x256xf32>
    %c0_4 = arith.constant 0 : index
    %c0_5 = arith.constant 0 : index
    %4 = vector.load %arg3[%c0_4, %c0_5] : memref<24x1xf32, #tpu.memory_space<vmem>>, vector<24x1xf32>
    %5 = vector.broadcast %4 : vector<24x1xf32> to vector<24x256xf32>
    %6 = arith.addf %3, %5 : vector<24x256xf32>
    %7 = vector.extract_strided_slice %6 {offsets = [0, 0], sizes = [8, 256], strides = [1, 1]} : vector<24x256xf32> to vector<8x256xf32>
    %8 = vector.extract_strided_slice %6 {offsets = [8, 0], sizes = [8, 256], strides = [1, 1]} : vector<24x256xf32> to vector<8x256xf32>
    %9 = vector.extract_strided_slice %6 {offsets = [16, 0], sizes = [8, 256], strides = [1, 1]} : vector<24x256xf32> to vector<8x256xf32>
    %c0_6 = arith.constant 0 : index
    %c0_7 = arith.constant 0 : index
    %10 = vector.load %arg4[%c0_6, %c0_7] : memref<256x1024xf32, #tpu.memory_space<vmem>>, vector<256x1024xf32>
    %c0_8 = arith.constant 0 : index
    %c0_9 = arith.constant 0 : index
    %11 = vector.load %arg5[%c0_8, %c0_9] : memref<256x1024xf32, #tpu.memory_space<vmem>>, vector<256x1024xf32>
    %cst_10 = arith.constant dense<0.000000e+00> : vector<8x1024xf32>
    %12 = tpu.matmul %7, %10, %cst_10 {dimension_numbers = #tpu.dot_dimension_numbers<[1], [0], [0], [1], [0, 0, 1, 1], [], []>} : vector<8x256xf32>, vector<256x1024xf32>, vector<8x1024xf32> -> vector<8x1024xf32>
    %c0_11 = arith.constant 0 : index
    %c0_12 = arith.constant 0 : index
    %c0_13 = arith.constant 0 : index
    %13 = vector.load %arg6[%c0_11, %c0_12, %c0_13] : memref<1x8x1024xf32, #tpu.memory_space<vmem>>, vector<1x8x1024xf32>
    %14 = vector.shape_cast %13 : vector<1x8x1024xf32> to vector<8x1024xf32>
    %15 = vector.shape_cast %12 : vector<8x1024xf32> to vector<1x8x1024xf32>
    tpu.vector_store %arg6[%c0_11, %c0_12, %c0_13], %15 {strides = array<i32>} : memref<1x8x1024xf32, #tpu.memory_space<vmem>>, vector<1x8x1024xf32>,
    %cst_14 = arith.constant dense<0.000000e+00> : vector<8x1024xf32>
    %16 = tpu.matmul %8, %11, %cst_14 {dimension_numbers = #tpu.dot_dimension_numbers<[1], [0], [0], [1], [0, 0, 1, 1], [], []>} : vector<8x256xf32>, vector<256x1024xf32>, vector<8x1024xf32> -> vector<8x1024xf32>
    %c0_15 = arith.constant 0 : index
    %c0_16 = arith.constant 0 : index
    %c0_17 = arith.constant 0 : index
    %17 = vector.load %arg7[%c0_15, %c0_16, %c0_17] : memref<1x8x1024xf32, #tpu.memory_space<vmem>>, vector<1x8x1024xf32>
    %18 = vector.shape_cast %17 : vector<1x8x1024xf32> to vector<8x1024xf32>
    %19 = vector.shape_cast %16 : vector<8x1024xf32> to vector<1x8x1024xf32>
    tpu.vector_store %arg7[%c0_15, %c0_16, %c0_17], %19 {strides = array<i32>} : memref<1x8x1024xf32, #tpu.memory_space<vmem>>, vector<1x8x1024xf32>,
    %cst_18 = arith.constant dense<0.000000e+00> : vector<8x1024xf32>
    %20 = tpu.matmul %9, %11, %cst_18 {dimension_numbers = #tpu.dot_dimension_numbers<[1], [0], [0], [1], [0, 0, 1, 1], [], []>} : vector<8x256xf32>, vector<256x1024xf32>, vector<8x1024xf32> -> vector<8x1024xf32>
    %c0_19 = arith.constant 0 : index
    %c0_20 = arith.constant 0 : index
    %c0_21 = arith.constant 0 : index
    %21 = vector.load %arg8[%c0_19, %c0_20, %c0_21] : memref<1x8x1024xf32, #tpu.memory_space<vmem>>, vector<1x8x1024xf32>
    %22 = vector.shape_cast %21 : vector<1x8x1024xf32> to vector<8x1024xf32>
    %23 = vector.shape_cast %20 : vector<8x1024xf32> to vector<1x8x1024xf32>
    tpu.vector_store %arg8[%c0_19, %c0_20, %c0_21], %23 {strides = array<i32>} : memref<1x8x1024xf32, #tpu.memory_space<vmem>>, vector<1x8x1024xf32>,
    return
  }
  func.func @transform_0(%arg0: i32) -> (i32, i32, i32) {
    %c0_i32 = arith.constant 0 : i32
    %c0_i32_0 = arith.constant 0 : i32
    %c0_i32_1 = arith.constant 0 : i32
    return %arg0, %c0_i32, %c0_i32_0 : i32, i32, i32
  }
  func.func @transform_1(%arg0: i32) -> (i32, i32) {
    %c0_i32 = arith.constant 0 : i32
    %c0_i32_0 = arith.constant 0 : i32
    %c0_i32_1 = arith.constant 0 : i32
    return %c0_i32, %c0_i32_0 : i32, i32
  }
  func.func @transform_2(%arg0: i32) -> (i32, i32) {
    %c0_i32 = arith.constant 0 : i32
    %c0_i32_0 = arith.constant 0 : i32
    %c0_i32_1 = arith.constant 0 : i32
    return %c0_i32, %c0_i32_0 : i32, i32
  }
  func.func @transform_3(%arg0: i32) -> (i32, i32) {
    %c0_i32 = arith.constant 0 : i32
    %c0_i32_0 = arith.constant 0 : i32
    %c0_i32_1 = arith.constant 0 : i32
    return %c0_i32, %c0_i32_0 : i32, i32
  }
  func.func @transform_4(%arg0: i32) -> (i32, i32) {
    %c0_i32 = arith.constant 0 : i32
    %c0_i32_0 = arith.constant 0 : i32
    %c0_i32_1 = arith.constant 0 : i32
    return %c0_i32, %c0_i32_0 : i32, i32
  }
  func.func @transform_5(%arg0: i32) -> (i32, i32, i32) {
    %c0_i32 = arith.constant 0 : i32
    %c0_i32_0 = arith.constant 0 : i32
    %c0_i32_1 = arith.constant 0 : i32
    return %arg0, %c0_i32, %c0_i32_0 : i32, i32, i32
  }
  func.func @transform_6(%arg0: i32) -> (i32, i32, i32) {
    %c0_i32 = arith.constant 0 : i32
    %c0_i32_0 = arith.constant 0 : i32
    %c0_i32_1 = arith.constant 0 : i32
    return %arg0, %c0_i32, %c0_i32_0 : i32, i32, i32
  }
  func.func @transform_7(%arg0: i32) -> (i32, i32, i32) {
    %c0_i32 = arith.constant 0 : i32
    %c0_i32_0 = arith.constant 0 : i32
    %c0_i32_1 = arith.constant 0 : i32
    return %arg0, %c0_i32, %c0_i32_0 : i32, i32, i32
  }
}

module attributes {stable_mosaic.version = 11 : i64} {
  func.func @_attention_kernel(%arg0: i32, %arg1: memref<1x16x512xf32, #tpu.memory_space<vmem>>, %arg2: memref<1x512x16xf32, #tpu.memory_space<vmem>>, %arg3: memref<1x512x16xf32, #tpu.memory_space<vmem>>, %arg4: memref<1x512x16xf32, #tpu.memory_space<vmem>>) attributes {dimension_semantics = [#tpu.dimension_semantics<parallel>], iteration_bounds = array<i64: 2>, scalar_prefetch = 0 : i64, scratch_operands = 0 : i64, tpu.core_type = #tpu.core_type<tc>, window_params = [{transform_indices = @transform_0, window_bounds = array<i64: 1, 16, 512>}, {transform_indices = @transform_1, window_bounds = array<i64: 1, 512, 16>}, {transform_indices = @transform_2, window_bounds = array<i64: 1, 512, 16>}, {transform_indices = @transform_3, window_bounds = array<i64: 1, 512, 16>}]} {
    %c0 = arith.constant 0 : index
    %c0_0 = arith.constant 0 : index
    %c0_1 = arith.constant 0 : index
    %0 = vector.load %arg1[%c0, %c0_0, %c0_1] : memref<1x16x512xf32, #tpu.memory_space<vmem>>, vector<1x16x512xf32>
    %1 = vector.shape_cast %0 : vector<1x16x512xf32> to vector<16x512xf32>
    %c0_2 = arith.constant 0 : index
    %c0_3 = arith.constant 0 : index
    %c0_4 = arith.constant 0 : index
    %2 = vector.load %arg2[%c0_2, %c0_3, %c0_4] : memref<1x512x16xf32, #tpu.memory_space<vmem>>, vector<1x512x16xf32>
    %3 = vector.shape_cast %2 : vector<1x512x16xf32> to vector<512x16xf32>
    %c0_5 = arith.constant 0 : index
    %c0_6 = arith.constant 0 : index
    %c0_7 = arith.constant 0 : index
    %4 = vector.load %arg3[%c0_5, %c0_6, %c0_7] : memref<1x512x16xf32, #tpu.memory_space<vmem>>, vector<1x512x16xf32>
    %5 = vector.shape_cast %4 : vector<1x512x16xf32> to vector<512x16xf32>
    %cst = arith.constant dense<0.000000e+00> : vector<16x16xf32>
    %6 = tpu.matmul %1, %3, %cst {dimension_numbers = #tpu.dot_dimension_numbers<[1], [0], [0], [1], [0, 0, 1, 1], [], []>} : vector<16x512xf32>, vector<512x16xf32>, vector<16x16xf32> -> vector<16x16xf32>
    %cst_8 = arith.constant 1.000000e+01 : f32
    %7 = vector.broadcast %cst_8 : f32 to vector<16x16xf32>
    %8 = arith.mulf %6, %7 : vector<16x16xf32>
    %cst_9 = arith.constant dense<0xFF800000> : vector<16xf32>
    %9 = vector.multi_reduction <maximumf>, %8, %cst_9 [1] : vector<16x16xf32> to vector<16xf32>
    %10 = vector.shape_cast %9 : vector<16xf32> to vector<16x1xf32>
    %11 = vector.broadcast %10 : vector<16x1xf32> to vector<16x16xf32>
    %12 = arith.subf %8, %11 : vector<16x16xf32>
    %13 = math.exp %12 : vector<16x16xf32>
    %cst_10 = arith.constant dense<0.000000e+00> : vector<16xf32>
    %14 = vector.multi_reduction <add>, %13, %cst_10 [1] : vector<16x16xf32> to vector<16xf32>
    %15 = vector.shape_cast %14 : vector<16xf32> to vector<16x1xf32>
    %16 = tpu.reciprocal %15 {approx = true} : vector<16x1xf32> -> vector<16x1xf32>
    %17 = vector.broadcast %16 : vector<16x1xf32> to vector<16x16xf32>
    %18 = arith.mulf %13, %17 : vector<16x16xf32>
    %cst_11 = arith.constant dense<0.000000e+00> : vector<512x16xf32>
    %19 = tpu.matmul %5, %18, %cst_11 {dimension_numbers = #tpu.dot_dimension_numbers<[1], [1], [0], [0], [0, 0, 1, 0], [], []>} : vector<512x16xf32>, vector<16x16xf32>, vector<512x16xf32> -> vector<512x16xf32>
    %c0_12 = arith.constant 0 : index
    %c0_13 = arith.constant 0 : index
    %c0_14 = arith.constant 0 : index
    %20 = vector.load %arg4[%c0_12, %c0_13, %c0_14] : memref<1x512x16xf32, #tpu.memory_space<vmem>>, vector<1x512x16xf32>
    %21 = vector.shape_cast %20 : vector<1x512x16xf32> to vector<512x16xf32>
    %22 = vector.shape_cast %19 : vector<512x16xf32> to vector<1x512x16xf32>
    tpu.vector_store %arg4[%c0_12, %c0_13, %c0_14], %22 {strides = array<i32>} : memref<1x512x16xf32, #tpu.memory_space<vmem>>, vector<1x512x16xf32>,
    return
  }
  func.func @transform_0(%arg0: i32) -> (i32, i32, i32) {
    %c0_i32 = arith.constant 0 : i32
    %c0_i32_0 = arith.constant 0 : i32
    %c0_i32_1 = arith.constant 0 : i32
    return %arg0, %c0_i32, %c0_i32_0 : i32, i32, i32
  }
  func.func @transform_1(%arg0: i32) -> (i32, i32, i32) {
    %c0_i32 = arith.constant 0 : i32
    %c0_i32_0 = arith.constant 0 : i32
    %c0_i32_1 = arith.constant 0 : i32
    return %arg0, %c0_i32, %c0_i32_0 : i32, i32, i32
  }
  func.func @transform_2(%arg0: i32) -> (i32, i32, i32) {
    %c0_i32 = arith.constant 0 : i32
    %c0_i32_0 = arith.constant 0 : i32
    %c0_i32_1 = arith.constant 0 : i32
    return %arg0, %c0_i32, %c0_i32_0 : i32, i32, i32
  }
  func.func @transform_3(%arg0: i32) -> (i32, i32, i32) {
    %c0_i32 = arith.constant 0 : i32
    %c0_i32_0 = arith.constant 0 : i32
    %c0_i32_1 = arith.constant 0 : i32
    return %arg0, %c0_i32, %c0_i32_0 : i32, i32, i32
  }
}

module attributes {stable_mosaic.version = 11 : i64} {
  func.func @_fold_w_res_kernel(%arg0: i32, %arg1: memref<1x8x1024xf32, #tpu.memory_space<vmem>>, %arg2: memref<1x16x256xf32, #tpu.memory_space<vmem>>, %arg3: memref<1024x256xf32, #tpu.memory_space<vmem>>, %arg4: memref<16x8xf32, #tpu.memory_space<vmem>>, %arg5: memref<16x1xf32, #tpu.memory_space<vmem>>, %arg6: memref<1x16x256xf32, #tpu.memory_space<vmem>>) attributes {dimension_semantics = [#tpu.dimension_semantics<parallel>], iteration_bounds = array<i64: 2>, scalar_prefetch = 0 : i64, scratch_operands = 0 : i64, tpu.core_type = #tpu.core_type<tc>, window_params = [{transform_indices = @transform_0, window_bounds = array<i64: 1, 8, 1024>}, {transform_indices = @transform_1, window_bounds = array<i64: 1, 16, 256>}, {pipeline_mode = #tpu.pipeline_mode<synchronous>, transform_indices = @transform_2, window_bounds = array<i64: 1024, 256>}, {pipeline_mode = #tpu.pipeline_mode<synchronous>, transform_indices = @transform_3, window_bounds = array<i64: 16, 8>}, {pipeline_mode = #tpu.pipeline_mode<synchronous>, transform_indices = @transform_4, window_bounds = array<i64: 16, 1>}, {transform_indices = @transform_5, window_bounds = array<i64: 1, 16, 256>}]} {
    %c0 = arith.constant 0 : index
    %c0_0 = arith.constant 0 : index
    %c0_1 = arith.constant 0 : index
    %0 = vector.load %arg1[%c0, %c0_0, %c0_1] : memref<1x8x1024xf32, #tpu.memory_space<vmem>>, vector<1x8x1024xf32>
    %1 = vector.shape_cast %0 : vector<1x8x1024xf32> to vector<8x1024xf32>
    %c0_2 = arith.constant 0 : index
    %c0_3 = arith.constant 0 : index
    %2 = vector.load %arg3[%c0_2, %c0_3] : memref<1024x256xf32, #tpu.memory_space<vmem>>, vector<1024x256xf32>
    %cst = arith.constant dense<0.000000e+00> : vector<8x256xf32>
    %3 = tpu.matmul %1, %2, %cst {dimension_numbers = #tpu.dot_dimension_numbers<[1], [0], [0], [1], [0, 0, 1, 1], [], []>} : vector<8x1024xf32>, vector<1024x256xf32>, vector<8x256xf32> -> vector<8x256xf32>
    %c0_4 = arith.constant 0 : index
    %c0_5 = arith.constant 0 : index
    %c0_6 = arith.constant 0 : index
    %4 = vector.load %arg2[%c0_4, %c0_5, %c0_6] : memref<1x16x256xf32, #tpu.memory_space<vmem>>, vector<1x16x256xf32>
    %5 = vector.shape_cast %4 : vector<1x16x256xf32> to vector<16x256xf32>
    %c0_7 = arith.constant 0 : index
    %c0_8 = arith.constant 0 : index
    %6 = vector.load %arg4[%c0_7, %c0_8] : memref<16x8xf32, #tpu.memory_space<vmem>>, vector<16x8xf32>
    %cst_9 = arith.constant dense<0.000000e+00> : vector<16x256xf32>
    %7 = tpu.matmul %6, %3, %cst_9 {dimension_numbers = #tpu.dot_dimension_numbers<[1], [0], [0], [1], [0, 0, 1, 1], [], []>} : vector<16x8xf32>, vector<8x256xf32>, vector<16x256xf32> -> vector<16x256xf32>
    %8 = arith.addf %5, %7 : vector<16x256xf32>
    %c0_10 = arith.constant 0 : index
    %c0_11 = arith.constant 0 : index
    %9 = vector.load %arg5[%c0_10, %c0_11] : memref<16x1xf32, #tpu.memory_space<vmem>>, vector<16x1xf32>
    %10 = vector.broadcast %9 : vector<16x1xf32> to vector<16x256xf32>
    %11 = arith.addf %8, %10 : vector<16x256xf32>
    %c0_12 = arith.constant 0 : index
    %c0_13 = arith.constant 0 : index
    %c0_14 = arith.constant 0 : index
    %12 = vector.load %arg6[%c0_12, %c0_13, %c0_14] : memref<1x16x256xf32, #tpu.memory_space<vmem>>, vector<1x16x256xf32>
    %13 = vector.shape_cast %12 : vector<1x16x256xf32> to vector<16x256xf32>
    %14 = vector.shape_cast %11 : vector<16x256xf32> to vector<1x16x256xf32>
    tpu.vector_store %arg6[%c0_12, %c0_13, %c0_14], %14 {strides = array<i32>} : memref<1x16x256xf32, #tpu.memory_space<vmem>>, vector<1x16x256xf32>,
    return
  }
  func.func @transform_0(%arg0: i32) -> (i32, i32, i32) {
    %c0_i32 = arith.constant 0 : i32
    %c0_i32_0 = arith.constant 0 : i32
    %c0_i32_1 = arith.constant 0 : i32
    return %arg0, %c0_i32, %c0_i32_0 : i32, i32, i32
  }
  func.func @transform_1(%arg0: i32) -> (i32, i32, i32) {
    %c0_i32 = arith.constant 0 : i32
    %c0_i32_0 = arith.constant 0 : i32
    %c0_i32_1 = arith.constant 0 : i32
    return %arg0, %c0_i32, %c0_i32_0 : i32, i32, i32
  }
  func.func @transform_2(%arg0: i32) -> (i32, i32) {
    %c0_i32 = arith.constant 0 : i32
    %c0_i32_0 = arith.constant 0 : i32
    %c0_i32_1 = arith.constant 0 : i32
    return %c0_i32, %c0_i32_0 : i32, i32
  }
  func.func @transform_3(%arg0: i32) -> (i32, i32) {
    %c0_i32 = arith.constant 0 : i32
    %c0_i32_0 = arith.constant 0 : i32
    %c0_i32_1 = arith.constant 0 : i32
    return %c0_i32, %c0_i32_0 : i32, i32
  }
  func.func @transform_4(%arg0: i32) -> (i32, i32) {
    %c0_i32 = arith.constant 0 : i32
    %c0_i32_0 = arith.constant 0 : i32
    %c0_i32_1 = arith.constant 0 : i32
    return %c0_i32, %c0_i32_0 : i32, i32
  }
  func.func @transform_5(%arg0: i32) -> (i32, i32, i32) {
    %c0_i32 = arith.constant 0 : i32
    %c0_i32_0 = arith.constant 0 : i32
    %c0_i32_1 = arith.constant 0 : i32
    return %arg0, %c0_i32, %c0_i32_0 : i32, i32, i32
  }
}

</mosaic_0001>

<bundles_post_ra>
// kernel: salsa_forward.4
= control target key start
LH: loop header
LB: loop body
LE: loop exit
PB: predicated region body
PF: predicated region fallthrough
CT: control target
= control target key end

     0   :  { %s1691_s12 = smov 0   ;;  %s2065_s0 = inlined_call_operand.vmem [shape: f32[2,16,512], index: 0, kind: input, shape index: {}]   ;;  %s2066_s1 = inlined_call_operand.vmem [shape: f32[2,512,16], index: 1, kind: input, shape index: {}]   ;;  %s2067_s2 = inlined_call_operand.vmem [shape: f32[2,512,16], index: 2, kind: input, shape index: {}]   ;;  %s2068_s3 = inlined_call_operand.vmem [shape: f32[2,512,16], index: 3, kind: output, shape index: {}]  }
   0x1 LB: > { %s1248_s13 = sadd.s32 4294967295, %s1669_s12   ;;  %p1252_p0 = scmp.ge.s32.totalorder %s1669_s12, 1  ;;  %s1669_s12 = sphi %s1691_s12, %s13_s12  }
   0x2   : > { %p157_p1 = scmp.lt.s32.totalorder %s1669_s12, 3 }
   0x4   : > { %p158_p2 = pnand %p1252_p0, %p157_p1 }
   0x5   : > { %p191_p3 = scmp.lt.s32.totalorder (!%p158_p2), %s1248_s13, 1  ;;  %vm499_vm0 = vcmask (!%p158_p2), 130048  }
   0x6   : > { %161 = sbr.rel (%p158_p2) target bundleno = 874 (0x36a), region = 32  ;;  %vm1640_vm1 = vmpackc.low (!%p158_p2), %vm499_vm0, %vm499_vm0 }
   0xd   : > { %s2070_s13 = smov (!%p191_p3, %s1248_s13), 1 }
   0xe   : > { %s1702_s14 = sshll.u32 %s2070_s13, 9  ;;  %s1329_s18 = sshll.u32 %s2070_s13, 6 }
   0xf   : > { %s1708_s17 = scalar_lea.vmem %s2066_s1, %s1702_s14  ;;  %s1764_s21 = scalar_lea.vmem %s2065_s0, %s1329_s18 }
  0x10   : > { %v235_v0 = vld [vmem:[%s1708_s17 + $0x80] sm:$0xff]  ;;  %v236_v1 = vld [vmem:[%s1708_s17 + $0x88] sm:$0xff]  ;;  %v237_v11 = vld [vmem:[%s1708_s17 + $0x90] sm:$0xff]  ;;  %s1796_s24 = scalar_lea.vmem %s2067_s2, %s1702_s14  ;;  %s1932_s27 = scalar_lea.vmem %s2068_s3, %s1702_s14 }
  0x11   : > { %v267_v2 = vld [vmem:[%s1708_s17 + $0x180] sm:$0xff]  ;;  %v1575_v3 = vpack.c.bf16 %v236_v1, %v235_v0  ;;  %v268_v4 = vld [vmem:[%s1708_s17 + $0x188] sm:$0xff]  ;;  %v238_v13 = vld [vmem:[%s1708_s17 + $0x98] sm:$0xff] }
  0x12   : > { %v219_v5 = vld [vmem:[%s1708_s17] sm:$0xff]  ;;  %v220_v6 = vld [vmem:[%s1708_s17 + $0x8] sm:$0xff]  ;;  %v1607_v7 = vpack.c.bf16 %v268_v4, %v267_v2  ;;  %v269_v14 = vld [vmem:[%s1708_s17 + $0x190] sm:$0xff]  ;;  %v1579_v16 = vpack.c.bf16 %v238_v13, %v237_v11 }
  0x13   : > { %v1577_v8 = vpack.c.bf16 %v220_v6, %v219_v5  ;;  %v251_v9 = vld [vmem:[%s1708_s17 + $0x100] sm:$0xff]  ;;  %v252_v10 = vld [vmem:[%s1708_s17 + $0x108] sm:$0xff]  ;;  %1576 = vmatprep.subr.bf16.mxu0 %v1575_v3  ;;  %v270_v15 = vld [vmem:[%s1708_s17 + $0x198] sm:$0xff] }
  0x14   : > { %v1609_v12 = vpack.c.bf16 %v252_v10, %v251_v9  ;;  %1608 = vmatprep.subr.bf16.mxu1 %v1607_v7  ;;  %v1611_v17 = vpack.c.bf16 %v270_v15, %v269_v14  ;;  %v221_v18 = vld [vmem:[%s1708_s17 + $0x10] sm:$0xff]  ;;  %v222_v19 = vld [vmem:[%s1708_s17 + $0x18] sm:$0xff]  ;;  %v239_v23 = vld [vmem:[%s1708_s17 + $0xa0] sm:$0xff] }
  0x15   : > { %1578 = vmatpush3.bf16.msra.mxu0 %v1577_v8  ;;  %v253_v20 = vld [vmem:[%s1708_s17 + $0x110] sm:$0xff]  ;;  %v1581_v21 = vpack.c.bf16 %v222_v19, %v221_v18  ;;  %v254_v22 = vld [vmem:[%s1708_s17 + $0x118] sm:$0xff]  ;;  %v240_v24 = vld [vmem:[%s1708_s17 + $0xa8] sm:$0xff] }
  0x16   : > { %1610 = vmatpush3.bf16.msra.mxu1 %v1609_v12  ;;  %1580 = vmatprep.subr.bf16.mxu0 %v1579_v16  ;;  %v1613_v25 = vpack.c.bf16 %v254_v22, %v253_v20  ;;  %v1583_v26 = vpack.c.bf16 %v240_v24, %v239_v23  ;;  %v271_v27 = vld [vmem:[%s1708_s17 + $0x1a0] sm:$0xff]  ;;  %v272_v28 = vld [vmem:[%s1708_s17 + $0x1a8] sm:$0xff]  ;;  %v241_v35 = vld [vmem:[%s1708_s17 + $0xb0] sm:$0xff] }
  0x17   : > { %1612 = vmatprep.subr.bf16.mxu1 %v1611_v17  ;;  %v223_v29 = vld [vmem:[%s1708_s17 + $0x20] sm:$0xff]  ;;  %v1615_v30 = vpack.c.bf16 %v272_v28, %v271_v27  ;;  %v224_v31 = vld [vmem:[%s1708_s17 + $0x28] sm:$0xff]  ;;  %v242_v36 = vld [vmem:[%s1708_s17 + $0xb8] sm:$0xff] }
  0x18   : > { %v255_v32 = vld [vmem:[%s1708_s17 + $0x120] sm:$0xff]  ;;  %v256_v33 = vld [vmem:[%s1708_s17 + $0x128] sm:$0xff]  ;;  %v1585_v34 = vpack.c.bf16 %v224_v31, %v223_v29  ;;  %v273_v37 = vld [vmem:[%s1708_s17 + $0x1b0] sm:$0xff]  ;;  %v1587_v39 = vpack.c.bf16 %v242_v36, %v241_v35 }
  0x19   : > { %1582 = vmatpush3.bf16.msra.mxu0 %v1581_v21  ;;  %v1617_v38 = vpack.c.bf16 %v256_v33, %v255_v32  ;;  %v274_v40 = vld [vmem:[%s1708_s17 + $0x1b8] sm:$0xff]  ;;  %v225_v41 = vld [vmem:[%s1708_s17 + $0x30] sm:$0xff]  ;;  %v243_v46 = vld [vmem:[%s1708_s17 + $0xc0] sm:$0xff] }
  0x1a   : > { %1614 = vmatpush3.bf16.msra.mxu1 %v1613_v25  ;;  %1584 = vmatprep.subr.bf16.mxu0 %v1583_v26  ;;  %v226_v42 = vld [vmem:[%s1708_s17 + $0x38] sm:$0xff]  ;;  %v1619_v43 = vpack.c.bf16 %v274_v40, %v273_v37  ;;  %v257_v44 = vld [vmem:[%s1708_s17 + $0x130] sm:$0xff]  ;;  %v244_v47 = vld [vmem:[%s1708_s17 + $0xc8] sm:$0xff] }
  0x1b   : > { %1616 = vmatprep.subr.bf16.mxu1 %v1615_v30  ;;  %v258_v45 = vld [vmem:[%s1708_s17 + $0x138] sm:$0xff]  ;;  %v275_v48 = vld [vmem:[%s1708_s17 + $0x1c0] sm:$0xff]  ;;  %v276_v49 = vld [vmem:[%s1708_s17 + $0x1c8] sm:$0xff]  ;;  %v1589_v50 = vpack.c.bf16 %v226_v42, %v225_v41  ;;  %v1591_v52 = vpack.c.bf16 %v244_v47, %v243_v46 }
  0x1c   : > { %v1621_v51 = vpack.c.bf16 %v258_v45, %v257_v44  ;;  %v227_v53 = vld [vmem:[%s1708_s17 + $0x40] sm:$0xff]  ;;  %v228_v54 = vld [vmem:[%s1708_s17 + $0x48] sm:$0xff]  ;;  %v1623_v56 = vpack.c.bf16 %v276_v49, %v275_v48  ;;  %v245_v58 = vld [vmem:[%s1708_s17 + $0xd0] sm:$0xff] }
  0x1d   : > { %1586 = vmatpush3.bf16.msra.mxu0 %v1585_v34  ;;  %v259_v55 = vld [vmem:[%s1708_s17 + $0x140] sm:$0xff]  ;;  %v260_v57 = vld [vmem:[%s1708_s17 + $0x148] sm:$0xff]  ;;  %v246_v59 = vld [vmem:[%s1708_s17 + $0xd8] sm:$0xff]  ;;  %v1593_v62 = vpack.c.bf16 %v228_v54, %v227_v53 }
  0x1e   : > { %1618 = vmatpush3.bf16.msra.mxu1 %v1617_v38  ;;  %1588 = vmatprep.subr.bf16.mxu0 %v1587_v39  ;;  %v277_v60 = vld [vmem:[%s1708_s17 + $0x1d0] sm:$0xff]  ;;  %v278_v61 = vld [vmem:[%s1708_s17 + $0x1d8] sm:$0xff]  ;;  %v1625_v63 = vpack.c.bf16 %v260_v57, %v259_v55  ;;  %v1595_v0 = vpack.c.bf16 %v246_v59, %v245_v58  ;;  %v247_v6 = vld [vmem:[%s1708_s17 + $0xe0] sm:$0xff] }
  0x1f   : > { %1620 = vmatprep.subr.bf16.mxu1 %v1619_v43  ;;  %v229_v1 = vld [vmem:[%s1708_s17 + $0x50] sm:$0xff]  ;;  %v230_v2 = vld [vmem:[%s1708_s17 + $0x58] sm:$0xff]  ;;  %v1627_v4 = vpack.c.bf16 %v278_v61, %v277_v60  ;;  %v248_v7 = vld [vmem:[%s1708_s17 + $0xe8] sm:$0xff] }
  0x20   : > { %v261_v3 = vld [vmem:[%s1708_s17 + $0x150] sm:$0xff]  ;;  %v262_v5 = vld [vmem:[%s1708_s17 + $0x158] sm:$0xff]  ;;  %v279_v8 = vld [vmem:[%s1708_s17 + $0x1e0] sm:$0xff]  ;;  %v1597_v10 = vpack.c.bf16 %v230_v2, %v229_v1  ;;  %v1599_v14 = vpack.c.bf16 %v248_v7, %v247_v6 }
  0x21   : > { %1590 = vmatpush3.bf16.msra.mxu0 %v1589_v50  ;;  %v280_v9 = vld [vmem:[%s1708_s17 + $0x1e8] sm:$0xff]  ;;  %v231_v11 = vld [vmem:[%s1708_s17 + $0x60] sm:$0xff]  ;;  %v1629_v13 = vpack.c.bf16 %v262_v5, %v261_v3  ;;  %v214_v17 = vld [vmem:[%s1764_s21 + $0x18] sm:$0xff] }
  0x22   : > { %1622 = vmatpush3.bf16.msra.mxu1 %v1621_v51  ;;  %1592 = vmatprep.subr.bf16.mxu0 %v1591_v52  ;;  %v232_v12 = vld [vmem:[%s1708_s17 + $0x68] sm:$0xff]  ;;  %v263_v15 = vld [vmem:[%s1708_s17 + $0x160] sm:$0xff]  ;;  %v1631_v18 = vpack.c.bf16 %v280_v9, %v279_v8  ;;  %v249_v20 = vld [vmem:[%s1708_s17 + $0xf0] sm:$0xff] }
  0x23   : > { %1624 = vmatprep.subr.bf16.mxu1 %v1623_v56  ;;  %v212_v16 = vld [vmem:[%s1764_s21 + $0x8] sm:$0xff]  ;;  %v250_v21 = vld [vmem:[%s1708_s17 + $0xf8] sm:$0xff]  ;;  %v281_v22 = vld [vmem:[%s1708_s17 + $0x1f0] sm:$0xff]  ;;  %486 = vmatprep.mubr.f32.mxu1 %v214_v17  ;;  %v1601_v24 = vpack.c.bf16 %v232_v12, %v231_v11 }
  0x24   : > { %v264_v19 = vld [vmem:[%s1708_s17 + $0x168] sm:$0xff]  ;;  %411 = vmatprep.mubr.f32.mxu0 %v212_v16  ;;  %v282_v23 = vld [vmem:[%s1708_s17 + $0x1f8] sm:$0xff]  ;;  %v1603_v26 = vpack.c.bf16 %v250_v21, %v249_v20  ;;  %v233_v27 = vld [vmem:[%s1708_s17 + $0x70] sm:$0xff] }
  0x25   : > { %1594 = vmatpush3.bf16.msra.mxu0 %v1593_v62  ;;  %v1633_v25 = vpack.c.bf16 %v264_v19, %v263_v15  ;;  %v234_v28 = vld [vmem:[%s1708_s17 + $0x78] sm:$0xff]  ;;  %v1635_v29 = vpack.c.bf16 %v282_v23, %v281_v22  ;;  %v265_v30 = vld [vmem:[%s1708_s17 + $0x170] sm:$0xff]  ;;  %v211_v34 = vld [vmem:[%s1764_s21] sm:$0xff] }
  0x26   : > { %1626 = vmatpush3.bf16.msra.mxu1 %v1625_v63  ;;  %1596 = vmatprep.subr.bf16.mxu0 %v1595_v0  ;;  %v266_v31 = vld [vmem:[%s1708_s17 + $0x178] sm:$0xff]  ;;  %v1605_v32 = vpack.c.bf16 %v234_v28, %v233_v27  ;;  %v213_v35 = vld [vmem:[%s1764_s21 + $0x10] sm:$0xff]  ;;  %v216_v36 = vld [vmem:[%s1764_s21 + $0x28] sm:$0xff] }
  0x27   : > { %1628 = vmatprep.subr.bf16.mxu1 %v1627_v4  ;;  %v1637_v33 = vpack.c.bf16 %v266_v31, %v265_v30  ;;  %v218_v37 = vld [vmem:[%s1764_s21 + $0x38] sm:$0xff]  ;;  %v215_v38 = vld [vmem:[%s1764_s21 + $0x20] sm:$0xff]  ;;  %v217_v39 = vld [vmem:[%s1764_s21 + $0x30] sm:$0xff] }
  0x28   : > { %v283_v4 = vld [vmem:[%s1796_s24] sm:$0xff]  ;;  %v285_v15 = vld [vmem:[%s1796_s24 + $0x10] sm:$0xff]  ;;  %v286_v17 = vld [vmem:[%s1796_s24 + $0x18] sm:$0xff] }
  0x29   : > { %1598 = vmatpush3.bf16.msra.mxu0 %v1597_v10  ;;  %v315_v5 = vld [vmem:[%s1796_s24 + $0x100] sm:$0xff]  ;;  %v317_v16 = vld [vmem:[%s1796_s24 + $0x110] sm:$0xff]  ;;  %v288_v21 = vld [vmem:[%s1796_s24 + $0x28] sm:$0xff] }
  0x2a   : > { %1630 = vmatpush3.bf16.msra.mxu1 %v1629_v13  ;;  %1600 = vmatprep.subr.bf16.mxu0 %v1599_v14  ;;  %v284_v13 = vld [vmem:[%s1796_s24 + $0x8] sm:$0xff]  ;;  %v287_v19 = vld [vmem:[%s1796_s24 + $0x20] sm:$0xff]  ;;  %v289_v23 = vld [vmem:[%s1796_s24 + $0x30] sm:$0xff] }
  0x2b   : > { %1632 = vmatprep.subr.bf16.mxu1 %v1631_v18  ;;  %v316_v14 = vld [vmem:[%s1796_s24 + $0x108] sm:$0xff]  ;;  %v318_v18 = vld [vmem:[%s1796_s24 + $0x118] sm:$0xff]  ;;  %v319_v20 = vld [vmem:[%s1796_s24 + $0x120] sm:$0xff] }
  0x2c   : > { %v320_v22 = vld [vmem:[%s1796_s24 + $0x128] sm:$0xff]  ;;  %v291_v27 = vld [vmem:[%s1796_s24 + $0x40] sm:$0xff]  ;;  %v293_v31 = vld [vmem:[%s1796_s24 + $0x50] sm:$0xff] }
  0x2d   : > { %1602 = vmatpush3.bf16.msra.mxu0 %v1601_v24  ;;  %v321_v24 = vld [vmem:[%s1796_s24 + $0x130] sm:$0xff]  ;;  %v323_v28 = vld [vmem:[%s1796_s24 + $0x140] sm:$0xff]  ;;  %v324_v30 = vld [vmem:[%s1796_s24 + $0x148] sm:$0xff] }
  0x2e   : > { %1634 = vmatpush3.bf16.msra.mxu1 %v1633_v25  ;;  %1604 = vmatprep.subr.bf16.mxu0 %v1603_v26  ;;  %v290_v25 = vld [vmem:[%s1796_s24 + $0x38] sm:$0xff] }
  0x2f   : > { %1636 = vmatprep.subr.bf16.mxu1 %v1635_v29  ;;  %v322_v26 = vld [vmem:[%s1796_s24 + $0x138] sm:$0xff]  ;;  %v292_v29 = vld [vmem:[%s1796_s24 + $0x48] sm:$0xff] }
  0x31   : > { %1606 = vmatpush3.bf16.msra.mxu0 %v1605_v32  ;;  %v325_v32 = vld [vmem:[%s1796_s24 + $0x150] sm:$0xff] }
  0x32   : > { %1638 = vmatpush3.bf16.msra.mxu1 %v1637_v33  ;;  %v294_v33 = vld [vmem:[%s1796_s24 + $0x58] sm:$0xff] }
  0x34   : > { %412 = vmatmul.mubr.f32.vlgmr.msra.gmra.mrb[0].mxu0 %v211_v34  ;;  %v326_v34 = vld [vmem:[%s1796_s24 + $0x158] sm:$0xff] }
  0x35   : > { %487 = vmatmul.mubr.f32.vlgmr.msra.gmra.mrb[0].mxu1 %v213_v35  ;;  %416 = vmatprep.mubr.f32.mxu0 %v216_v36  ;;  %v295_v35 = vld [vmem:[%s1796_s24 + $0x60] sm:$0xff] }
  0x36   : > { %491 = vmatprep.mubr.f32.mxu1 %v218_v37  ;;  %v327_v36 = vld [vmem:[%s1796_s24 + $0x160] sm:$0xff]  ;;  %v296_v37 = vld [vmem:[%s1796_s24 + $0x68] sm:$0xff] }
  0x38   : > { %417 = vmatmul.mubr.f32.gmra.mrb[2].mxu0 %v215_v38  ;;  %v328_v38 = vld [vmem:[%s1796_s24 + $0x168] sm:$0xff] }
  0x39   : > { %492 = vmatmul.mubr.f32.gmra.mrb[2].mxu1 %v217_v39  ;;  %1479 = vmatprep.mubr.msk.f32.mxu0 %vm499_vm0, %v283_v4  ;;  %v297_v39 = vld [vmem:[%s1796_s24 + $0x70] sm:$0xff]  ;;  %v343_v4 = vld [vmem:[%s1796_s24 + $0x1e0] sm:$0xff] }
  0x3a   : > { %1527 = vmatprep.mubr.msk.f32.mxu1 %vm499_vm0, %v315_v5  ;;  %v312_v5 = vld [vmem:[%s1796_s24 + $0xe8] sm:$0xff] }
 0x107   : > { %v1365_v40 = vpop.f32.mrb[0].mxu0 }
 0x108   : > { %v1403_v41 = vpop.f32.mrb[0].mxu1  ;;  %v1366_v42 = vpop.f32.mrb[1].mxu0 }
 0x109   : > { %v1367_v43 = vadd.f32 %v1366_v42, %v1365_v40  ;;  %v1404_v44 = vpop.f32.mrb[1].mxu1  ;;  %v329_v40 = vld [vmem:[%s1796_s24 + $0x170] sm:$0xff]  ;;  %v330_v42 = vld [vmem:[%s1796_s24 + $0x178] sm:$0xff] }
 0x10a   : > { %v1405_v45 = vadd.f32 %v1404_v44, %v1403_v41  ;;  %v298_v41 = vld [vmem:[%s1796_s24 + $0x78] sm:$0xff]  ;;  %v331_v44 = vld [vmem:[%s1796_s24 + $0x180] sm:$0xff] }
 0x10b   : > { %v1368_v46 = vpop.f32.mrb[2].mxu0 }
 0x10c   : > { %v1406_v47 = vpop.f32.mrb[2].mxu1  ;;  %v1369_v48 = vpop.f32.mrb[3].mxu0  ;;  %v489_v49 = vadd.f32 %v1405_v45, %v1367_v43  ;;  %v299_v43 = vld [vmem:[%s1796_s24 + $0x80] sm:$0xff]  ;;  %v300_v45 = vld [vmem:[%s1796_s24 + $0x88] sm:$0xff] }
 0x10d   : > { %v1370_v50 = vadd.f32 %v1369_v48, %v1368_v46  ;;  %v1407_v51 = vpop.f32.mrb[3].mxu1  ;;  %v332_v46 = vld [vmem:[%s1796_s24 + $0x188] sm:$0xff]  ;;  %v333_v48 = vld [vmem:[%s1796_s24 + $0x190] sm:$0xff] }
 0x10e   : > { %v1408_v52 = vadd.f32 %v1407_v51, %v1406_v47  ;;  %v497_v53 = vmul.f32 10.0, %v489_v49  ;;  %v301_v47 = vld [vmem:[%s1796_s24 + $0x90] sm:$0xff]  ;;  %v302_v49 = vld [vmem:[%s1796_s24 + $0x98] sm:$0xff]  ;;  %v303_v51 = vld [vmem:[%s1796_s24 + $0xa0] sm:$0xff] }
 0x110   : > { %v494_v54 = vadd.f32 %v1408_v52, %v1370_v50  ;;  %v500_v55 = vsel %vm499_vm0, %v497_v53, -inf  ;;  %v334_v50 = vld [vmem:[%s1796_s24 + $0x198] sm:$0xff]  ;;  %v335_v52 = vld [vmem:[%s1796_s24 + $0x1a0] sm:$0xff] }
 0x111   : > { %501 = vmax.xlane.f32.xlu0 %v500_v55  ;;  %v305_v55 = vld [vmem:[%s1796_s24 + $0xb0] sm:$0xff] }
 0x112   : > { %v498_v56 = vmul.f32 10.0, %v494_v54  ;;  %v336_v54 = vld [vmem:[%s1796_s24 + $0x1a8] sm:$0xff] }
 0x114   : > { %v503_v57 = vsel %vm499_vm0, %v498_v56, -inf }
 0x115   : > { %504 = vmax.xlane.f32.xlu0 %v503_v57  ;;  %v306_v57 = vld [vmem:[%s1796_s24 + $0xb8] sm:$0xff] }
 0x19e   : > { %v502_v58 = vpop.xlane.xlu0 %501 }
 0x19f   : > { %v506_v59 = vsub.f32 %v497_v53, %v502_v58  ;;  %v304_v53 = vld [vmem:[%s1796_s24 + $0xa8] sm:$0xff]  ;;  %v338_v58 = vld [vmem:[%s1796_s24 + $0x1b8] sm:$0xff] }
 0x1a1   : > { %v508_v60 = vmul.f32 1.442695, %v506_v59  ;;  %v307_v59 = vld [vmem:[%s1796_s24 + $0xc0] sm:$0xff] }
 0x1a2   : > { %v505_v61 = vpop.xlane.xlu0 %504 }
 0x1a3   : > { %1655 = vpow2.f32 %v508_v60  ;;  %v507_v62 = vsub.f32 %v498_v56, %v505_v61  ;;  %v337_v56 = vld [vmem:[%s1796_s24 + $0x1b0] sm:$0xff]  ;;  %v339_v60 = vld [vmem:[%s1796_s24 + $0x1c0] sm:$0xff]  ;;  %v308_v61 = vld [vmem:[%s1796_s24 + $0xc8] sm:$0xff] }
 0x1a5   : > { %v510_v63 = vmul.f32 1.442695, %v507_v62  ;;  %v340_v62 = vld [vmem:[%s1796_s24 + $0x1c8] sm:$0xff] }
 0x1a7   : > { %1657 = vpow2.f32 %v510_v63  ;;  %v309_v63 = vld [vmem:[%s1796_s24 + $0xd0] sm:$0xff] }
 0x1ad   : > { %v1656_v0 = vpop.eup %1655 }
 0x1ae   : > { %v512_v1 = vsel %vm499_vm0, %v1656_v0, 0.0 }
 0x1af   : > { %513 = vadd.xlane.f32.xlu1 %v512_v1  ;;  %v310_v1 = vld [vmem:[%s1796_s24 + $0xd8] sm:$0xff] }
 0x1b1   : > { %v1658_v2 = vpop.eup %1657 }
 0x1b2   : > { %v515_v3 = vsel %vm499_vm0, %v1658_v2, 0.0 }
 0x1b3   : > { %516 = vadd.xlane.f32.xlu1 %v515_v3  ;;  %v311_v3 = vld [vmem:[%s1796_s24 + $0xe0] sm:$0xff] }
 0x23c   : > { %v514_v6 = vpop.xlane.xlu1 %513 }
 0x23d   : > { %1659 = vrcp.f32 %v514_v6  ;;  %v344_v6 = vld [vmem:[%s1796_s24 + $0x1e8] sm:$0xff] }
 0x240   : > { %v517_v7 = vpop.xlane.xlu1 %516 }
 0x241   : > { %1661 = vrcp.f32 %v517_v7  ;;  %v313_v7 = vld [vmem:[%s1796_s24 + $0xf0] sm:$0xff] }
 0x247   : > { %v1660_v8 = vpop.eup %1659 }
 0x248   : > { %v520_v10 = vmul.f32 %v1660_v8, %v1656_v0  ;;  %v341_v0 = vld [vmem:[%s1796_s24 + $0x1d0] sm:$0xff] }
 0x249   : > { %v345_v8 = vld [vmem:[%s1796_s24 + $0x1f0] sm:$0xff] }
 0x24b   : > { %v1662_v9 = vpop.eup %1661 }
 0x24c   : > { %v521_v11 = vmul.f32 %v1662_v9, %v1658_v2  ;;  %v342_v2 = vld [vmem:[%s1796_s24 + $0x1d8] sm:$0xff] }
 0x24d   : > { %v314_v9 = vld [vmem:[%s1796_s24 + $0xf8] sm:$0xff] }
 0x24e   : > { %v1639_v12 = vpack.c.bf16 %v521_v11, %v520_v10  ;;  %v346_v10 = vld [vmem:[%s1796_s24 + $0x1f8] sm:$0xff] }
 0x250   : > { %1641 = vmatprep.subr.msk.bf16.mxu0 %vm1640_vm1, %v1639_v12  ;;  %1645 = vmatprep.subr.msk.bf16.mxu1 %vm1640_vm1, %v1639_v12 }
 0x251   : > { %1644 = vmatpush3.bf16.xpose.msk.msra.mxu0 %vm1640_vm1, %v1639_v12  ;;  %1646 = vmatpush3.bf16.xpose.msk.msra.mxu1 %vm1640_vm1, %v1639_v12 }
 0x258   : > { %1480 = vmatmul.mubr.msk.f32.vlgmr.msra.gmra.mrb[4].mxu0 %vm499_vm0, %v284_v13  ;;  %1528 = vmatmul.mubr.msk.f32.vlgmr.msra.gmra.mrb[4].mxu1 %vm499_vm0, %v316_v14 }
 0x259   : > { %1482 = vmatprep.mubr.msk.f32.mxu0 %vm499_vm0, %v285_v15  ;;  %1530 = vmatprep.mubr.msk.f32.mxu1 %vm499_vm0, %v317_v16 }
 0x25c   : > { %1483 = vmatmul.mubr.msk.f32.gmra.mrb[6].mxu0 %vm499_vm0, %v286_v17  ;;  %1531 = vmatmul.mubr.msk.f32.gmra.mrb[6].mxu1 %vm499_vm0, %v318_v18 }
 0x25d   : > { %1485 = vmatprep.mubr.msk.f32.mxu0 %vm499_vm0, %v287_v19  ;;  %1533 = vmatprep.mubr.msk.f32.mxu1 %vm499_vm0, %v319_v20 }
 0x260   : > { %1486 = vmatmul.mubr.msk.f32.gmra.mrb[8].mxu0 %vm499_vm0, %v288_v21  ;;  %1534 = vmatmul.mubr.msk.f32.gmra.mrb[8].mxu1 %vm499_vm0, %v320_v22 }
 0x261   : > { %1488 = vmatprep.mubr.msk.f32.mxu0 %vm499_vm0, %v289_v23  ;;  %1536 = vmatprep.mubr.msk.f32.mxu1 %vm499_vm0, %v321_v24 }
 0x264   : > { %1489 = vmatmul.mubr.msk.f32.gmra.mrb[10].mxu0 %vm499_vm0, %v290_v25  ;;  %1537 = vmatmul.mubr.msk.f32.gmra.mrb[10].mxu1 %vm499_vm0, %v322_v26 }
 0x265   : > { %1491 = vmatprep.mubr.msk.f32.mxu0 %vm499_vm0, %v291_v27  ;;  %1539 = vmatprep.mubr.msk.f32.mxu1 %vm499_vm0, %v323_v28 }
 0x268   : > { %1492 = vmatmul.mubr.msk.f32.gmra.mrb[12].mxu0 %vm499_vm0, %v292_v29  ;;  %1540 = vmatmul.mubr.msk.f32.gmra.mrb[12].mxu1 %vm499_vm0, %v324_v30 }
 0x269   : > { %1494 = vmatprep.mubr.msk.f32.mxu0 %vm499_vm0, %v293_v31  ;;  %1542 = vmatprep.mubr.msk.f32.mxu1 %vm499_vm0, %v325_v32 }
 0x26c   : > { %1495 = vmatmul.mubr.msk.f32.gmra.mrb[14].mxu0 %vm499_vm0, %v294_v33  ;;  %1543 = vmatmul.mubr.msk.f32.gmra.mrb[14].mxu1 %vm499_vm0, %v326_v34 }
 0x26d   : > { %1497 = vmatprep.mubr.msk.f32.mxu0 %vm499_vm0, %v295_v35  ;;  %1545 = vmatprep.mubr.msk.f32.mxu1 %vm499_vm0, %v327_v36 }
 0x270   : > { %1498 = vmatmul.mubr.msk.f32.gmra.mrb[16].mxu0 %vm499_vm0, %v296_v37  ;;  %1546 = vmatmul.mubr.msk.f32.gmra.mrb[16].mxu1 %vm499_vm0, %v328_v38 }
 0x271   : > { %1500 = vmatprep.mubr.msk.f32.mxu0 %vm499_vm0, %v297_v39  ;;  %1548 = vmatprep.mubr.msk.f32.mxu1 %vm499_vm0, %v329_v40 }
 0x274   : > { %1501 = vmatmul.mubr.msk.f32.gmra.mrb[18].mxu0 %vm499_vm0, %v298_v41  ;;  %1549 = vmatmul.mubr.msk.f32.gmra.mrb[18].mxu1 %vm499_vm0, %v330_v42 }
 0x275   : > { %1503 = vmatprep.mubr.msk.f32.mxu0 %vm499_vm0, %v299_v43  ;;  %1551 = vmatprep.mubr.msk.f32.mxu1 %vm499_vm0, %v331_v44 }
 0x278   : > { %1504 = vmatmul.mubr.msk.f32.gmra.mrb[20].mxu0 %vm499_vm0, %v300_v45  ;;  %1552 = vmatmul.mubr.msk.f32.gmra.mrb[20].mxu1 %vm499_vm0, %v332_v46 }
 0x279   : > { %1506 = vmatprep.mubr.msk.f32.mxu0 %vm499_vm0, %v301_v47  ;;  %1554 = vmatprep.mubr.msk.f32.mxu1 %vm499_vm0, %v333_v48 }
 0x27c   : > { %1507 = vmatmul.mubr.msk.f32.gmra.mrb[22].mxu0 %vm499_vm0, %v302_v49  ;;  %1555 = vmatmul.mubr.msk.f32.gmra.mrb[22].mxu1 %vm499_vm0, %v334_v50 }
 0x27d   : > { %1509 = vmatprep.mubr.msk.f32.mxu0 %vm499_vm0, %v303_v51  ;;  %1557 = vmatprep.mubr.msk.f32.mxu1 %vm499_vm0, %v335_v52 }
 0x280   : > { %1510 = vmatmul.mubr.msk.f32.gmra.mrb[24].mxu0 %vm499_vm0, %v304_v53  ;;  %1558 = vmatmul.mubr.msk.f32.gmra.mrb[24].mxu1 %vm499_vm0, %v336_v54 }
 0x281   : > { %1512 = vmatprep.mubr.msk.f32.mxu0 %vm499_vm0, %v305_v55  ;;  %1560 = vmatprep.mubr.msk.f32.mxu1 %vm499_vm0, %v337_v56 }
 0x284   : > { %1513 = vmatmul.mubr.msk.f32.gmra.mrb[26].mxu0 %vm499_vm0, %v306_v57  ;;  %1561 = vmatmul.mubr.msk.f32.gmra.mrb[26].mxu1 %vm499_vm0, %v338_v58 }
 0x285   : > { %1515 = vmatprep.mubr.msk.f32.mxu0 %vm499_vm0, %v307_v59  ;;  %1563 = vmatprep.mubr.msk.f32.mxu1 %vm499_vm0, %v339_v60 }
 0x288   : > { %1516 = vmatmul.mubr.msk.f32.gmra.mrb[28].mxu0 %vm499_vm0, %v308_v61  ;;  %1564 = vmatmul.mubr.msk.f32.gmra.mrb[28].mxu1 %vm499_vm0, %v340_v62 }
 0x289   : > { %1518 = vmatprep.mubr.msk.f32.mxu0 %vm499_vm0, %v309_v63  ;;  %1566 = vmatprep.mubr.msk.f32.mxu1 %vm499_vm0, %v341_v0 }
 0x28c   : > { %1519 = vmatmul.mubr.msk.f32.gmra.mrb[30].mxu0 %vm499_vm0, %v310_v1  ;;  %1567 = vmatmul.mubr.msk.f32.gmra.mrb[30].mxu1 %vm499_vm0, %v342_v2 }
 0x28d   : > { %1521 = vmatprep.mubr.msk.f32.mxu0 %vm499_vm0, %v311_v3  ;;  %1569 = vmatprep.mubr.msk.f32.mxu1 %vm499_vm0, %v343_v4 }
 0x290   : > { %1522 = vmatmul.mubr.msk.f32.gmra.mrb[32].mxu0 %vm499_vm0, %v312_v5  ;;  %1570 = vmatmul.mubr.msk.f32.gmra.mrb[32].mxu1 %vm499_vm0, %v344_v6 }
 0x291   : > { %1524 = vmatprep.mubr.msk.f32.mxu0 %vm499_vm0, %v313_v7  ;;  %1572 = vmatprep.mubr.msk.f32.mxu1 %vm499_vm0, %v345_v8 }
 0x294   : > { %1525 = vmatmul.mubr.msk.f32.gmra.mrb[34].mxu0 %vm499_vm0, %v314_v9  ;;  %1573 = vmatmul.mubr.msk.f32.gmra.mrb[34].mxu1 %vm499_vm0, %v346_v10 }
 0x32b   : > { %v1481_v11 = vpop.f32.mrb[4].mxu0  ;;  %v1529_v12 = vpop.f32.mrb[4].mxu1 }
 0x32c   : > { %1106 = vst.msk [vmem:[%s1932_s27 + $0x8] sm:$0xff] %vm499_vm0, %v1481_v11  ;;  %1138 = vst.msk [vmem:[%s1932_s27 + $0x108] sm:$0xff] %vm499_vm0, %v1529_v12  ;;  %v786_v13 = vpop.f32.mrb[5].mxu0  ;;  %v946_v14 = vpop.f32.mrb[5].mxu1 }
 0x32d   : > { %1105 = vst.msk [vmem:[%s1932_s27] sm:$0xff] %vm499_vm0, %v786_v13  ;;  %1137 = vst.msk [vmem:[%s1932_s27 + $0x100] sm:$0xff] %vm499_vm0, %v946_v14 }
 0x32f   : > { %v1484_v15 = vpop.f32.mrb[6].mxu0  ;;  %v1532_v16 = vpop.f32.mrb[6].mxu1 }
 0x330   : > { %1108 = vst.msk [vmem:[%s1932_s27 + $0x18] sm:$0xff] %vm499_vm0, %v1484_v15  ;;  %1140 = vst.msk [vmem:[%s1932_s27 + $0x118] sm:$0xff] %vm499_vm0, %v1532_v16  ;;  %v796_v17 = vpop.f32.mrb[7].mxu0  ;;  %v956_v18 = vpop.f32.mrb[7].mxu1 }
 0x331   : > { %1107 = vst.msk [vmem:[%s1932_s27 + $0x10] sm:$0xff] %vm499_vm0, %v796_v17  ;;  %1139 = vst.msk [vmem:[%s1932_s27 + $0x110] sm:$0xff] %vm499_vm0, %v956_v18 }
 0x333   : > { %v1487_v19 = vpop.f32.mrb[8].mxu0  ;;  %v1535_v20 = vpop.f32.mrb[8].mxu1 }
 0x334   : > { %1110 = vst.msk [vmem:[%s1932_s27 + $0x28] sm:$0xff] %vm499_vm0, %v1487_v19  ;;  %1142 = vst.msk [vmem:[%s1932_s27 + $0x128] sm:$0xff] %vm499_vm0, %v1535_v20  ;;  %v806_v21 = vpop.f32.mrb[9].mxu0  ;;  %v966_v22 = vpop.f32.mrb[9].mxu1 }
 0x335   : > { %1109 = vst.msk [vmem:[%s1932_s27 + $0x20] sm:$0xff] %vm499_vm0, %v806_v21  ;;  %1141 = vst.msk [vmem:[%s1932_s27 + $0x120] sm:$0xff] %vm499_vm0, %v966_v22 }
 0x337   : > { %v1490_v23 = vpop.f32.mrb[10].mxu0  ;;  %v1538_v24 = vpop.f32.mrb[10].mxu1 }
 0x338   : > { %1112 = vst.msk [vmem:[%s1932_s27 + $0x38] sm:$0xff] %vm499_vm0, %v1490_v23  ;;  %1144 = vst.msk [vmem:[%s1932_s27 + $0x138] sm:$0xff] %vm499_vm0, %v1538_v24  ;;  %v816_v25 = vpop.f32.mrb[11].mxu0  ;;  %v976_v26 = vpop.f32.mrb[11].mxu1 }
 0x339   : > { %1111 = vst.msk [vmem:[%s1932_s27 + $0x30] sm:$0xff] %vm499_vm0, %v816_v25  ;;  %1143 = vst.msk [vmem:[%s1932_s27 + $0x130] sm:$0xff] %vm499_vm0, %v976_v26 }
 0x33b   : > { %v1493_v27 = vpop.f32.mrb[12].mxu0  ;;  %v1541_v28 = vpop.f32.mrb[12].mxu1 }
 0x33c   : > { %1114 = vst.msk [vmem:[%s1932_s27 + $0x48] sm:$0xff] %vm499_vm0, %v1493_v27  ;;  %1146 = vst.msk [vmem:[%s1932_s27 + $0x148] sm:$0xff] %vm499_vm0, %v1541_v28  ;;  %v826_v29 = vpop.f32.mrb[13].mxu0  ;;  %v986_v30 = vpop.f32.mrb[13].mxu1 }
 0x33d   : > { %1113 = vst.msk [vmem:[%s1932_s27 + $0x40] sm:$0xff] %vm499_vm0, %v826_v29  ;;  %1145 = vst.msk [vmem:[%s1932_s27 + $0x140] sm:$0xff] %vm499_vm0, %v986_v30 }
 0x33f   : > { %v1496_v31 = vpop.f32.mrb[14].mxu0  ;;  %v1544_v32 = vpop.f32.mrb[14].mxu1 }
 0x340   : > { %1116 = vst.msk [vmem:[%s1932_s27 + $0x58] sm:$0xff] %vm499_vm0, %v1496_v31  ;;  %1148 = vst.msk [vmem:[%s1932_s27 + $0x158] sm:$0xff] %vm499_vm0, %v1544_v32  ;;  %v836_v33 = vpop.f32.mrb[15].mxu0  ;;  %v996_v34 = vpop.f32.mrb[15].mxu1 }
 0x341   : > { %1115 = vst.msk [vmem:[%s1932_s27 + $0x50] sm:$0xff] %vm499_vm0, %v836_v33  ;;  %1147 = vst.msk [vmem:[%s1932_s27 + $0x150] sm:$0xff] %vm499_vm0, %v996_v34 }
 0x343   : > { %v1499_v35 = vpop.f32.mrb[16].mxu0  ;;  %v1547_v36 = vpop.f32.mrb[16].mxu1 }
 0x344   : > { %1118 = vst.msk [vmem:[%s1932_s27 + $0x68] sm:$0xff] %vm499_vm0, %v1499_v35  ;;  %1150 = vst.msk [vmem:[%s1932_s27 + $0x168] sm:$0xff] %vm499_vm0, %v1547_v36  ;;  %v846_v37 = vpop.f32.mrb[17].mxu0  ;;  %v1006_v38 = vpop.f32.mrb[17].mxu1 }
 0x345   : > { %1117 = vst.msk [vmem:[%s1932_s27 + $0x60] sm:$0xff] %vm499_vm0, %v846_v37  ;;  %1149 = vst.msk [vmem:[%s1932_s27 + $0x160] sm:$0xff] %vm499_vm0, %v1006_v38 }
 0x347   : > { %v1502_v39 = vpop.f32.mrb[18].mxu0  ;;  %v1550_v40 = vpop.f32.mrb[18].mxu1 }
 0x348   : > { %1120 = vst.msk [vmem:[%s1932_s27 + $0x78] sm:$0xff] %vm499_vm0, %v1502_v39  ;;  %1152 = vst.msk [vmem:[%s1932_s27 + $0x178] sm:$0xff] %vm499_vm0, %v1550_v40  ;;  %v856_v41 = vpop.f32.mrb[19].mxu0  ;;  %v1016_v42 = vpop.f32.mrb[19].mxu1 }
 0x349   : > { %1119 = vst.msk [vmem:[%s1932_s27 + $0x70] sm:$0xff] %vm499_vm0, %v856_v41  ;;  %1151 = vst.msk [vmem:[%s1932_s27 + $0x170] sm:$0xff] %vm499_vm0, %v1016_v42 }
 0x34b   : > { %v1505_v43 = vpop.f32.mrb[20].mxu0  ;;  %v1553_v44 = vpop.f32.mrb[20].mxu1 }
 0x34c   : > { %1122 = vst.msk [vmem:[%s1932_s27 + $0x88] sm:$0xff] %vm499_vm0, %v1505_v43  ;;  %1154 = vst.msk [vmem:[%s1932_s27 + $0x188] sm:$0xff] %vm499_vm0, %v1553_v44  ;;  %v866_v45 = vpop.f32.mrb[21].mxu0  ;;  %v1026_v46 = vpop.f32.mrb[21].mxu1 }
 0x34d   : > { %1121 = vst.msk [vmem:[%s1932_s27 + $0x80] sm:$0xff] %vm499_vm0, %v866_v45  ;;  %1153 = vst.msk [vmem:[%s1932_s27 + $0x180] sm:$0xff] %vm499_vm0, %v1026_v46 }
 0x34f   : > { %v1508_v47 = vpop.f32.mrb[22].mxu0  ;;  %v1556_v48 = vpop.f32.mrb[22].mxu1 }
 0x350   : > { %1124 = vst.msk [vmem:[%s1932_s27 + $0x98] sm:$0xff] %vm499_vm0, %v1508_v47  ;;  %1156 = vst.msk [vmem:[%s1932_s27 + $0x198] sm:$0xff] %vm499_vm0, %v1556_v48  ;;  %v876_v49 = vpop.f32.mrb[23].mxu0  ;;  %v1036_v50 = vpop.f32.mrb[23].mxu1 }
 0x351   : > { %1123 = vst.msk [vmem:[%s1932_s27 + $0x90] sm:$0xff] %vm499_vm0, %v876_v49  ;;  %1155 = vst.msk [vmem:[%s1932_s27 + $0x190] sm:$0xff] %vm499_vm0, %v1036_v50 }
 0x353   : > { %v1511_v51 = vpop.f32.mrb[24].mxu0  ;;  %v1559_v52 = vpop.f32.mrb[24].mxu1 }
 0x354   : > { %1126 = vst.msk [vmem:[%s1932_s27 + $0xa8] sm:$0xff] %vm499_vm0, %v1511_v51  ;;  %1158 = vst.msk [vmem:[%s1932_s27 + $0x1a8] sm:$0xff] %vm499_vm0, %v1559_v52  ;;  %v886_v53 = vpop.f32.mrb[25].mxu0  ;;  %v1046_v54 = vpop.f32.mrb[25].mxu1 }
 0x355   : > { %1125 = vst.msk [vmem:[%s1932_s27 + $0xa0] sm:$0xff] %vm499_vm0, %v886_v53  ;;  %1157 = vst.msk [vmem:[%s1932_s27 + $0x1a0] sm:$0xff] %vm499_vm0, %v1046_v54 }
 0x357   : > { %v1514_v55 = vpop.f32.mrb[26].mxu0  ;;  %v1562_v56 = vpop.f32.mrb[26].mxu1 }
 0x358   : > { %1128 = vst.msk [vmem:[%s1932_s27 + $0xb8] sm:$0xff] %vm499_vm0, %v1514_v55  ;;  %1160 = vst.msk [vmem:[%s1932_s27 + $0x1b8] sm:$0xff] %vm499_vm0, %v1562_v56  ;;  %v896_v57 = vpop.f32.mrb[27].mxu0  ;;  %v1056_v58 = vpop.f32.mrb[27].mxu1 }
 0x359   : > { %1127 = vst.msk [vmem:[%s1932_s27 + $0xb0] sm:$0xff] %vm499_vm0, %v896_v57  ;;  %1159 = vst.msk [vmem:[%s1932_s27 + $0x1b0] sm:$0xff] %vm499_vm0, %v1056_v58 }
 0x35b   : > { %v1517_v59 = vpop.f32.mrb[28].mxu0  ;;  %v1565_v60 = vpop.f32.mrb[28].mxu1 }
 0x35c   : > { %1130 = vst.msk [vmem:[%s1932_s27 + $0xc8] sm:$0xff] %vm499_vm0, %v1517_v59  ;;  %1162 = vst.msk [vmem:[%s1932_s27 + $0x1c8] sm:$0xff] %vm499_vm0, %v1565_v60  ;;  %v906_v61 = vpop.f32.mrb[29].mxu0  ;;  %v1066_v62 = vpop.f32.mrb[29].mxu1 }
 0x35d   : > { %1129 = vst.msk [vmem:[%s1932_s27 + $0xc0] sm:$0xff] %vm499_vm0, %v906_v61  ;;  %1161 = vst.msk [vmem:[%s1932_s27 + $0x1c0] sm:$0xff] %vm499_vm0, %v1066_v62 }
 0x35f   : > { %v1520_v63 = vpop.f32.mrb[30].mxu0  ;;  %v1568_v0 = vpop.f32.mrb[30].mxu1 }
 0x360   : > { %1132 = vst.msk [vmem:[%s1932_s27 + $0xd8] sm:$0xff] %vm499_vm0, %v1520_v63  ;;  %1164 = vst.msk [vmem:[%s1932_s27 + $0x1d8] sm:$0xff] %vm499_vm0, %v1568_v0  ;;  %v916_v1 = vpop.f32.mrb[31].mxu0  ;;  %v1076_v2 = vpop.f32.mrb[31].mxu1 }
 0x361   : > { %1131 = vst.msk [vmem:[%s1932_s27 + $0xd0] sm:$0xff] %vm499_vm0, %v916_v1  ;;  %1163 = vst.msk [vmem:[%s1932_s27 + $0x1d0] sm:$0xff] %vm499_vm0, %v1076_v2 }
 0x363   : > { %v1523_v3 = vpop.f32.mrb[32].mxu0  ;;  %v1571_v4 = vpop.f32.mrb[32].mxu1 }
 0x364   : > { %1134 = vst.msk [vmem:[%s1932_s27 + $0xe8] sm:$0xff] %vm499_vm0, %v1523_v3  ;;  %1166 = vst.msk [vmem:[%s1932_s27 + $0x1e8] sm:$0xff] %vm499_vm0, %v1571_v4  ;;  %v926_v5 = vpop.f32.mrb[33].mxu0  ;;  %v1086_v6 = vpop.f32.mrb[33].mxu1 }
 0x365   : > { %1133 = vst.msk [vmem:[%s1932_s27 + $0xe0] sm:$0xff] %vm499_vm0, %v926_v5  ;;  %1165 = vst.msk [vmem:[%s1932_s27 + $0x1e0] sm:$0xff] %vm499_vm0, %v1086_v6 }
 0x367   : > { %v1526_v7 = vpop.f32.mrb[34].mxu0  ;;  %v1574_v8 = vpop.f32.mrb[34].mxu1 }
 0x368   : > { %1136 = vst.msk [vmem:[%s1932_s27 + $0xf8] sm:$0xff] %vm499_vm0, %v1526_v7  ;;  %1168 = vst.msk [vmem:[%s1932_s27 + $0x1f8] sm:$0xff] %vm499_vm0, %v1574_v8  ;;  %v936_v9 = vpop.f32.mrb[35].mxu0  ;;  %v1096_v10 = vpop.f32.mrb[35].mxu1 }
 0x369   : > { %1135 = vst.msk [vmem:[%s1932_s27 + $0xf0] sm:$0xff] %vm499_vm0, %v936_v9  ;;  %1167 = vst.msk [vmem:[%s1932_s27 + $0x1f0] sm:$0xff] %vm499_vm0, %v1096_v10 }
 0x36a PF: > { %s13_s12 = sadd.s32 1, %s1669_s12  }
 0x36b   : > { %p10_p4 = scmp.ge.s32.totalorder %s13_s12, 4  }
 0x36d   :  { %12 = sbr.rel (!%p10_p4) target bundleno = 1 (0x1), region = 68 }

// kernel: salsa_forward.3
= control target key start
LH: loop header
LB: loop body
LE: loop exit
PB: predicated region body
PF: predicated region fallthrough
CT: control target
= control target key end

     0   :  { %13 = vsyncpa [#allocation3], 0  ;;  %s3638_s0 = inlined_call_operand.vmem [shape: f32[2,16,256], index: 0, kind: input, shape index: {}]   ;;  %s3639_s1 = inlined_call_operand.vmem [shape: f32[24,16], index: 1, kind: input, shape index: {}]   ;;  %s3640_s2 = inlined_call_operand.vmem [shape: f32[24,1], index: 2, kind: input, shape index: {}]   ;;  %s3641_s3 = inlined_call_operand.hbm [shape: f32[256,1024], index: 3, kind: input, shape index: {}]   ;;  %s3642_s4 = inlined_call_operand.hbm [shape: f32[256,1024], index: 4, kind: input, shape index: {}]   ;;  %s3643_s5 = inlined_call_operand.vmem [shape: f32[2,8,1024], index: 5, kind: output, shape index: {0}]   ;;  %s3644_s6 = inlined_call_operand.vmem [shape: f32[2,8,1024], index: 6, kind: output, shape index: {1}]   ;;  %s3645_s7 = inlined_call_operand.vmem [shape: f32[2,8,1024], index: 7, kind: output, shape index: {2}]  }
   0x1   :  { %14 = vsyncpa [#allocation5], 0  ;;  %s2934_s24 = smov 0  }
   0x2 LB: > { %s2940_s25 = sadd.s32 4294967295, %s2886_s24   ;;  %p1985_p0 = scmp.ge.s32.totalorder %s2886_s24, 1  ;;  %s2886_s24 = sphi %s2934_s24, %s20_s24  }
   0x3   : > { %p213_p1 = scmp.lt.s32.totalorder %s2886_s24, 3  ;;  %s2888_s26 = smov [#allocation2]  }
   0x4   : > { %s231_s27 = sshll.u32 %s2888_s26, 4  ;;  %p3646_p3 = scmp.eq.s32.totalorder %s2940_s25, 0  ;;  %s232_s27 = int_to_ptr.vmem [resolvable:$true] %s231_s27 }
   0x5   : > { %p2944_p2 = pnand %p1985_p0, %p213_p1  ;;  %s2889_s29 = smov [#allocation4]  }
   0x6   : > { %s244_s30 = sshll.u32 %s2889_s29, 4  ;;  %s2816_s11 = scalar_lea.hbm %s3641_s3, 32768  ;;  %s2957_s30 = int_to_ptr.vmem [resolvable:$true] %s244_s30 }
   0x7   : > { %s3724_s28 = scalar_select %p2944_p2, 1, 0 }
   0x8   : > { %p2789_p4 = pneg %p2944_p2  ;;  %p2817_p6 = scmp.ne.s32.totalorder %s3641_s3, %s2816_s11 }
   0x9   : > { %p2823_p10 = scmp.lt.u32.totalorder %s2816_s11, %s3641_s3 }
   0xa   : > { %p2953_p5 = pnand %p3646_p3, %p2789_p4 }
   0xc   : > { %p2818_p7 = pneg %p2953_p5 }
   0xe   : > { %p2819_p8 = pnand %p2818_p7, %p2817_p6 }
  0x10   : > { %p2820_p9 = pneg %p2819_p8 }
  0x12   : > { %p2825_p11 = pnand %p2823_p10, %p2820_p9 }
  0x14   : > { %2828 = shalt.err (!%p2825_p11)
}
  0x15   : > { %s2829_s16 = scalar_lea.vmem %s232_s27, 32768  ;;  %p2837_p1 = scmp.lt.s32.totalorder %s232_s27, %s232_s27 }
  0x16   : > { %p2830_p12 = scmp.ne.s32.totalorder %s232_s27, %s2829_s16  ;;  %p2838_p4 = scmp.lt.s32.totalorder %s2829_s16, %s2829_s16 }
  0x18   : > { %p2832_p13 = pnand %p2830_p12, %p2818_p7  ;;  %p2839_p3 = por %p2838_p4, %p2837_p1 }
  0x1a   : > { %p2833_p0 = pneg %p2832_p13 }
  0x1c   : > { %p2840_p2 = pnand %p2839_p3, %p2833_p0 }
  0x1e   : > { %2843 = shalt.err (!%p2840_p2)
}
  0x1f   : > { %s2890_s17 = smov 1024   ;;  %s2891_s18 = smov 64  }
  0x20   : > { %2792 = dma.hbm_to_vmem [thread:$0]  (!%p2953_p5), %s3641_s3, 32768, %s232_s27, [#allocation3], %s2890_s17, %s2890_s17, %s2891_s18  }
  0x21   : > { %s2844_s23 = scalar_lea.hbm %s3642_s4, 32768 }
  0x22   : > { %p2845_p6 = scmp.ne.s32.totalorder %s3642_s4, %s2844_s23  ;;  %p2851_p8 = scmp.lt.u32.totalorder %s2844_s23, %s3642_s4 }
  0x24   : > { %p2847_p2 = pnand %p2845_p6, %p2818_p7 }
  0x26   : > { %p2848_p3 = pneg %p2847_p2 }
  0x28   : > { %p2853_p9 = pnand %p2851_p8, %p2848_p3 }
  0x2a   : > { %2856 = shalt.err (!%p2853_p9)
}
  0x2b   : > { %s2857_s27 = scalar_lea.vmem %s2957_s30, 32768  ;;  %p2865_p13 = scmp.lt.s32.totalorder %s2957_s30, %s2957_s30 }
  0x2c   : > { %p2858_p10 = scmp.ne.s32.totalorder %s2957_s30, %s2857_s27  ;;  %p2866_p0 = scmp.lt.s32.totalorder %s2857_s27, %s2857_s27 }
  0x2e   : > { %p2860_p11 = pnand %p2858_p10, %p2818_p7  ;;  %p2867_p1 = por %p2866_p0, %p2865_p13 }
  0x30   : > { %p2861_p12 = pneg %p2860_p11 }
  0x32   : > { %p2868_p4 = pnand %p2867_p1, %p2861_p12 }
  0x34   : > { %2871 = shalt.err (!%p2868_p4)
}
  0x35   : > { %2795 = dma.hbm_to_vmem [thread:$0]  (!%p2953_p5), %s3642_s4, 32768, %s2957_s30, [#allocation5], %s2890_s17, %s2890_s17, %s2891_s18  }
  0x36   : > { %p3726_p6 = scmp.ne.s32.totalorder %s3724_s28, 0 }
  0x38   : > { %268 = sbr.rel (%p3726_p6) target bundleno = 832 (0x340), region = 40 }
  0x3f   : > { %p3727_p2 = scmp.eq.s32.totalorder %s2940_s25, 0 }
  0x41   : > { %2877 = dma.done.wait (%p3727_p2), [#allocation3], 32768   ;;  %p3728_p7 = pmov %p3727_p2 }
  0x42   : > { %p3729_p3 = pmov %p3727_p2 }
  0x43   : > { %2879 = vsyncadd (%p3728_p7), [#allocation3], 4294934528 }
  0x44   : > { %2881 = dma.done.wait (%p3729_p3), [#allocation5], 32768   ;;  %p3730_p8 = pmov %p3727_p2 }
  0x45   : > { %p314_p9 = scmp.lt.s32.totalorder %s2940_s25, 1  ;;  %v2892_v0 = vmov 0.0   ;;  %v2893_v1 = vmov 0   ;;  %v338_v8 = vld [vmem:[%s3639_s1] sm:$0xff]  ;;  %v342_v10 = vld [vmem:[%s3640_s2 + $0x8] sm:$0xff]  ;;  %v455_v13 = vld [vmem:[#allocation2 + $0x18] sm:$0xff] }
  0x46   : > { %2883 = vsyncadd (%p3730_p8), [#allocation5], 4294934528  ;;  %433 = vmatprep.mubr.f32.mxu0 %v2892_v0  ;;  %2814 = vset.pattern.permute.xlu0 %v2893_v1  ;;  %v341_v9 = vld [vmem:[%s3640_s2] sm:$0xff]  ;;  %v453_v11 = vld [vmem:[#allocation2 + $0x8] sm:$0xff]  ;;  %vm359_vm0 = vcmask 130048  }
  0x47   : > { %s3886_s25 = smov (!%p314_p9, %s2940_s25), 1  ;;  %2815 = vset.pattern.permute.xlu1 %v2893_v1  ;;  %346 = vperm.xlu0 %2814, %v341_v9   ;;  %v461_v12 = vld [vmem:[#allocation2 + $0x48] sm:$0xff]  ;;  %v463_v14 = vld [vmem:[#allocation2 + $0x58] sm:$0xff]  ;;  %v452_v17 = vld [vmem:[#allocation2] sm:$0xff] }
  0x48   : > { %s2005_s28 = sshll.u32 %s3886_s25, 5  ;;  %v2013_v15 = vpack.c.bf16 %v461_v12, %v453_v11  ;;  %v2077_v16 = vpack.c.bf16 %v463_v14, %v455_v13  ;;  %v460_v18 = vld [vmem:[#allocation2 + $0x40] sm:$0xff]  ;;  %v454_v19 = vld [vmem:[#allocation2 + $0x10] sm:$0xff]  ;;  %v469_v22 = vld [vmem:[#allocation2 + $0x88] sm:$0xff]  ;;  %s3488_s9 = sshll.u32 %s3886_s25, 6 }
  0x49   : > { %s318_s13 = scalar_lea.vmem %s3638_s0, %s2005_s28  ;;  %v2015_v20 = vpack.c.bf16 %v460_v18, %v452_v17  ;;  %v462_v21 = vld [vmem:[#allocation2 + $0x50] sm:$0xff]  ;;  %v477_v23 = vld [vmem:[#allocation2 + $0xc8] sm:$0xff]  ;;  %v471_v27 = vld [vmem:[#allocation2 + $0x98] sm:$0xff]  ;;  %s3497_s11 = scalar_lea.vmem %s3643_s5, %s3488_s9 }
  0x4a   : > { %v335_v2 = vld [vmem:[%s318_s13 + $0x8] sm:$0xff]  ;;  %v337_v3 = vld [vmem:[%s318_s13 + $0x18] sm:$0xff]  ;;  %v334_v4 = vld [vmem:[%s318_s13] sm:$0xff]  ;;  %2014 = vmatprep.subr.bf16.mxu1 %v2013_v15  ;;  %v2079_v25 = vpack.c.bf16 %v462_v21, %v454_v19  ;;  %v2017_v26 = vpack.c.bf16 %v477_v23, %v469_v22  ;;  %s328_s28 = scalar_lea.vmem %s3644_s6, %s3488_s9 }
  0x4b   : > { %v2009_v5 = vpack.c.bf16 %v337_v3, %v335_v2  ;;  %v336_v6 = vld [vmem:[%s318_s13 + $0x10] sm:$0xff]  ;;  %v339_v24 = vld [vmem:[%s3639_s1 + $0x8] sm:$0xff]  ;;  %v479_v28 = vld [vmem:[#allocation2 + $0xd8] sm:$0xff]  ;;  %351 = vperm.xlu0 %2814, %v342_v10   ;;  %2016 = vmatpush1.bf16.msra.mxu1 %v2015_v20  ;;  %s333_s13 = scalar_lea.vmem %s3645_s7, %s3488_s9 }
  0x4c   : > { %v2011_v7 = vpack.c.bf16 %v336_v6, %v334_v4  ;;  %v468_v29 = vld [vmem:[#allocation2 + $0x80] sm:$0xff]  ;;  %v2081_v30 = vpack.c.bf16 %v479_v28, %v471_v27  ;;  %v470_v32 = vld [vmem:[#allocation2 + $0x90] sm:$0xff]  ;;  %v485_v35 = vld [vmem:[#allocation2 + $0x108] sm:$0xff]  ;;  %2018 = vmatprep.subr.bf16.mxu1 %v2017_v26 }
  0x4d   : > { %2010 = vmatprep.subr.bf16.mxu0 %v2009_v5  ;;  %v476_v31 = vld [vmem:[#allocation2 + $0xc0] sm:$0xff]  ;;  %v478_v33 = vld [vmem:[#allocation2 + $0xd0] sm:$0xff]  ;;  %v493_v36 = vld [vmem:[#allocation2 + $0x148] sm:$0xff] }
  0x4e   : > { %2012 = vmatpush1.bf16.msra.mxu0 %v2011_v7  ;;  %v2019_v34 = vpack.c.bf16 %v476_v31, %v468_v29  ;;  %v487_v37 = vld [vmem:[#allocation2 + $0x118] sm:$0xff]  ;;  %v2083_v38 = vpack.c.bf16 %v478_v33, %v470_v32  ;;  %v2021_v39 = vpack.c.bf16 %v493_v36, %v485_v35  ;;  %v484_v41 = vld [vmem:[#allocation2 + $0x100] sm:$0xff]  ;;  %v486_v44 = vld [vmem:[#allocation2 + $0x110] sm:$0xff] }
  0x4f   : > { %2078 = vmatprep.subr.bf16.mxu0 %v2077_v16  ;;  %v495_v40 = vld [vmem:[#allocation2 + $0x158] sm:$0xff]  ;;  %v492_v42 = vld [vmem:[#allocation2 + $0x140] sm:$0xff]  ;;  %v494_v45 = vld [vmem:[#allocation2 + $0x150] sm:$0xff] }
  0x50   : > { %v2085_v43 = vpack.c.bf16 %v495_v40, %v487_v37  ;;  %v501_v46 = vld [vmem:[#allocation2 + $0x188] sm:$0xff]  ;;  %v503_v48 = vld [vmem:[#allocation2 + $0x198] sm:$0xff]  ;;  %2020 = vmatpush1.bf16.msra.mxu1 %v2019_v34  ;;  %v2023_v50 = vpack.c.bf16 %v492_v42, %v484_v41  ;;  %v2087_v51 = vpack.c.bf16 %v494_v45, %v486_v44  ;;  %v500_v53 = vld [vmem:[#allocation2 + $0x180] sm:$0xff] }
  0x51   : > { %2000 = vmatmul.mubr.msk.f32.vlgmr.msra.gmra.mrb[0].mxu0 %vm359_vm0, %v338_v8  ;;  %v509_v47 = vld [vmem:[#allocation2 + $0x1c8] sm:$0xff]  ;;  %v511_v49 = vld [vmem:[#allocation2 + $0x1d8] sm:$0xff]  ;;  %2022 = vmatprep.subr.bf16.mxu1 %v2021_v39  ;;  %v508_v54 = vld [vmem:[#allocation2 + $0x1c0] sm:$0xff] }
  0x52   : > { %439 = vmatprep.mubr.f32.mxu0 %v2892_v0  ;;  %2080 = vmatpush1.bf16.msra.mxu0 %v2079_v25  ;;  %v2025_v52 = vpack.c.bf16 %v509_v47, %v501_v46  ;;  %v502_v55 = vld [vmem:[#allocation2 + $0x190] sm:$0xff]  ;;  %v2089_v56 = vpack.c.bf16 %v511_v49, %v503_v48  ;;  %v517_v58 = vld [vmem:[#allocation2 + $0x208] sm:$0xff]  ;;  %v519_v60 = vld [vmem:[#allocation2 + $0x218] sm:$0xff]  ;;  %v2027_v62 = vpack.c.bf16 %v508_v54, %v500_v53 }
  0x53   : > { %2082 = vmatprep.subr.bf16.mxu0 %v2081_v30  ;;  %v510_v57 = vld [vmem:[#allocation2 + $0x1d0] sm:$0xff]  ;;  %v525_v59 = vld [vmem:[#allocation2 + $0x248] sm:$0xff]  ;;  %v527_v61 = vld [vmem:[#allocation2 + $0x258] sm:$0xff] }
  0x54   : > { %2024 = vmatpush1.bf16.msra.mxu1 %v2023_v50  ;;  %v2091_v63 = vpack.c.bf16 %v510_v57, %v502_v55  ;;  %v516_v1 = vld [vmem:[#allocation2 + $0x200] sm:$0xff]  ;;  %v518_v3 = vld [vmem:[#allocation2 + $0x210] sm:$0xff]  ;;  %v2093_v4 = vpack.c.bf16 %v527_v61, %v519_v60  ;;  %v533_v6 = vld [vmem:[#allocation2 + $0x288] sm:$0xff] }
  0x55   : > { %2001 = vmatmul.mubr.msk.f32.gmra.mrb[2].mxu0 %vm359_vm0, %v339_v24  ;;  %2026 = vmatprep.subr.bf16.mxu1 %v2025_v52  ;;  %v524_v2 = vld [vmem:[#allocation2 + $0x240] sm:$0xff]  ;;  %v526_v5 = vld [vmem:[#allocation2 + $0x250] sm:$0xff]  ;;  %v541_v7 = vld [vmem:[#allocation2 + $0x2c8] sm:$0xff] }
  0x56   : > { %445 = vmatprep.mubr.f32.mxu0 %v2892_v0  ;;  %2084 = vmatpush1.bf16.msra.mxu0 %v2083_v38  ;;  %v2029_v0 = vpack.c.bf16 %v525_v59, %v517_v58  ;;  %v535_v8 = vld [vmem:[#allocation2 + $0x298] sm:$0xff]  ;;  %v2031_v10 = vpack.c.bf16 %v524_v2, %v516_v1  ;;  %v2095_v11 = vpack.c.bf16 %v526_v5, %v518_v3  ;;  %v532_v13 = vld [vmem:[#allocation2 + $0x280] sm:$0xff]  ;;  %v534_v15 = vld [vmem:[#allocation2 + $0x290] sm:$0xff] }
  0x57   : > { %2086 = vmatprep.subr.bf16.mxu0 %v2085_v43  ;;  %v543_v9 = vld [vmem:[#allocation2 + $0x2d8] sm:$0xff]  ;;  %v2033_v12 = vpack.c.bf16 %v541_v7, %v533_v6  ;;  %v540_v14 = vld [vmem:[#allocation2 + $0x2c0] sm:$0xff]  ;;  %v542_v17 = vld [vmem:[#allocation2 + $0x2d0] sm:$0xff] }
  0x58   : > { %2028 = vmatpush1.bf16.msra.mxu1 %v2027_v62  ;;  %v2097_v16 = vpack.c.bf16 %v543_v9, %v535_v8  ;;  %v549_v18 = vld [vmem:[#allocation2 + $0x308] sm:$0xff]  ;;  %v551_v20 = vld [vmem:[#allocation2 + $0x318] sm:$0xff]  ;;  %v2035_v22 = vpack.c.bf16 %v540_v14, %v532_v13  ;;  %v2099_v23 = vpack.c.bf16 %v542_v17, %v534_v15  ;;  %v548_v25 = vld [vmem:[#allocation2 + $0x300] sm:$0xff] }
  0x59   : > { %2030 = vmatprep.subr.bf16.mxu1 %v2029_v0  ;;  %v557_v19 = vld [vmem:[#allocation2 + $0x348] sm:$0xff]  ;;  %v559_v21 = vld [vmem:[#allocation2 + $0x358] sm:$0xff]  ;;  %v556_v26 = vld [vmem:[#allocation2 + $0x340] sm:$0xff] }
  0x5a   : > { %2088 = vmatpush1.bf16.msra.mxu0 %v2087_v51  ;;  %v2037_v24 = vpack.c.bf16 %v557_v19, %v549_v18  ;;  %v550_v27 = vld [vmem:[#allocation2 + $0x310] sm:$0xff]  ;;  %v2101_v28 = vpack.c.bf16 %v559_v21, %v551_v20  ;;  %v565_v30 = vld [vmem:[#allocation2 + $0x388] sm:$0xff]  ;;  %v567_v32 = vld [vmem:[#allocation2 + $0x398] sm:$0xff]  ;;  %v2039_v34 = vpack.c.bf16 %v556_v26, %v548_v25 }
  0x5b   : > { %2090 = vmatprep.subr.bf16.mxu0 %v2089_v56  ;;  %v558_v29 = vld [vmem:[#allocation2 + $0x350] sm:$0xff]  ;;  %v573_v31 = vld [vmem:[#allocation2 + $0x3c8] sm:$0xff]  ;;  %v575_v33 = vld [vmem:[#allocation2 + $0x3d8] sm:$0xff] }
  0x5c   : > { %2032 = vmatpush1.bf16.msra.mxu1 %v2031_v10  ;;  %v2103_v35 = vpack.c.bf16 %v558_v29, %v550_v27  ;;  %v2041_v36 = vpack.c.bf16 %v573_v31, %v565_v30  ;;  %v564_v37 = vld [vmem:[#allocation2 + $0x380] sm:$0xff]  ;;  %v566_v39 = vld [vmem:[#allocation2 + $0x390] sm:$0xff]  ;;  %v2105_v40 = vpack.c.bf16 %v575_v33, %v567_v32  ;;  %v581_v42 = vld [vmem:[#allocation2 + $0x408] sm:$0xff] }
  0x5d   : > { %2034 = vmatprep.subr.bf16.mxu1 %v2033_v12  ;;  %v572_v38 = vld [vmem:[#allocation2 + $0x3c0] sm:$0xff]  ;;  %v574_v41 = vld [vmem:[#allocation2 + $0x3d0] sm:$0xff]  ;;  %v589_v43 = vld [vmem:[#allocation2 + $0x448] sm:$0xff] }
  0x5e   : > { %2092 = vmatpush1.bf16.msra.mxu0 %v2091_v63  ;;  %v583_v44 = vld [vmem:[#allocation2 + $0x418] sm:$0xff]  ;;  %v2043_v46 = vpack.c.bf16 %v572_v38, %v564_v37  ;;  %v2107_v47 = vpack.c.bf16 %v574_v41, %v566_v39  ;;  %v2045_v48 = vpack.c.bf16 %v589_v43, %v581_v42  ;;  %v580_v49 = vld [vmem:[#allocation2 + $0x400] sm:$0xff]  ;;  %v582_v51 = vld [vmem:[#allocation2 + $0x410] sm:$0xff] }
  0x5f   : > { %2094 = vmatprep.subr.bf16.mxu0 %v2093_v4  ;;  %v591_v45 = vld [vmem:[#allocation2 + $0x458] sm:$0xff]  ;;  %v588_v50 = vld [vmem:[#allocation2 + $0x440] sm:$0xff]  ;;  %v590_v53 = vld [vmem:[#allocation2 + $0x450] sm:$0xff] }
  0x60   : > { %2036 = vmatpush1.bf16.msra.mxu1 %v2035_v22  ;;  %v2109_v52 = vpack.c.bf16 %v591_v45, %v583_v44  ;;  %v597_v54 = vld [vmem:[#allocation2 + $0x488] sm:$0xff]  ;;  %v599_v56 = vld [vmem:[#allocation2 + $0x498] sm:$0xff]  ;;  %v2047_v58 = vpack.c.bf16 %v588_v50, %v580_v49  ;;  %v2111_v59 = vpack.c.bf16 %v590_v53, %v582_v51  ;;  %v596_v61 = vld [vmem:[#allocation2 + $0x480] sm:$0xff] }
  0x61   : > { %2038 = vmatprep.subr.bf16.mxu1 %v2037_v24  ;;  %v605_v55 = vld [vmem:[#allocation2 + $0x4c8] sm:$0xff]  ;;  %v607_v57 = vld [vmem:[#allocation2 + $0x4d8] sm:$0xff]  ;;  %v604_v62 = vld [vmem:[#allocation2 + $0x4c0] sm:$0xff] }
  0x62   : > { %2096 = vmatpush1.bf16.msra.mxu0 %v2095_v11  ;;  %v2049_v60 = vpack.c.bf16 %v605_v55, %v597_v54  ;;  %v598_v63 = vld [vmem:[#allocation2 + $0x490] sm:$0xff]  ;;  %v2113_v0 = vpack.c.bf16 %v607_v57, %v599_v56  ;;  %v613_v2 = vld [vmem:[#allocation2 + $0x508] sm:$0xff]  ;;  %v615_v4 = vld [vmem:[#allocation2 + $0x518] sm:$0xff]  ;;  %v2051_v6 = vpack.c.bf16 %v604_v62, %v596_v61 }
  0x63   : > { %2098 = vmatprep.subr.bf16.mxu0 %v2097_v16  ;;  %v606_v1 = vld [vmem:[#allocation2 + $0x4d0] sm:$0xff]  ;;  %v621_v3 = vld [vmem:[#allocation2 + $0x548] sm:$0xff]  ;;  %v623_v5 = vld [vmem:[#allocation2 + $0x558] sm:$0xff] }
  0x64   : > { %2040 = vmatpush1.bf16.msra.mxu1 %v2039_v34  ;;  %v2115_v7 = vpack.c.bf16 %v606_v1, %v598_v63  ;;  %v2053_v8 = vpack.c.bf16 %v621_v3, %v613_v2  ;;  %v612_v9 = vld [vmem:[#allocation2 + $0x500] sm:$0xff]  ;;  %v614_v11 = vld [vmem:[#allocation2 + $0x510] sm:$0xff]  ;;  %v2117_v12 = vpack.c.bf16 %v623_v5, %v615_v4  ;;  %v629_v14 = vld [vmem:[#allocation2 + $0x588] sm:$0xff] }
  0x65   : > { %2042 = vmatprep.subr.bf16.mxu1 %v2041_v36  ;;  %v620_v10 = vld [vmem:[#allocation2 + $0x540] sm:$0xff]  ;;  %v622_v13 = vld [vmem:[#allocation2 + $0x550] sm:$0xff]  ;;  %v637_v15 = vld [vmem:[#allocation2 + $0x5c8] sm:$0xff] }
  0x66   : > { %2100 = vmatpush1.bf16.msra.mxu0 %v2099_v23  ;;  %v631_v16 = vld [vmem:[#allocation2 + $0x598] sm:$0xff]  ;;  %v2055_v18 = vpack.c.bf16 %v620_v10, %v612_v9  ;;  %v2119_v19 = vpack.c.bf16 %v622_v13, %v614_v11  ;;  %v2057_v20 = vpack.c.bf16 %v637_v15, %v629_v14  ;;  %v628_v21 = vld [vmem:[#allocation2 + $0x580] sm:$0xff]  ;;  %v630_v23 = vld [vmem:[#allocation2 + $0x590] sm:$0xff] }
  0x67   : > { %2102 = vmatprep.subr.bf16.mxu0 %v2101_v28  ;;  %v639_v17 = vld [vmem:[#allocation2 + $0x5d8] sm:$0xff]  ;;  %v636_v22 = vld [vmem:[#allocation2 + $0x5c0] sm:$0xff]  ;;  %v638_v25 = vld [vmem:[#allocation2 + $0x5d0] sm:$0xff] }
  0x68   : > { %2044 = vmatpush1.bf16.msra.mxu1 %v2043_v46  ;;  %v2121_v24 = vpack.c.bf16 %v639_v17, %v631_v16  ;;  %v645_v26 = vld [vmem:[#allocation2 + $0x608] sm:$0xff]  ;;  %v647_v28 = vld [vmem:[#allocation2 + $0x618] sm:$0xff]  ;;  %v2059_v30 = vpack.c.bf16 %v636_v22, %v628_v21  ;;  %v2123_v31 = vpack.c.bf16 %v638_v25, %v630_v23  ;;  %v644_v33 = vld [vmem:[#allocation2 + $0x600] sm:$0xff] }
  0x69   : > { %2046 = vmatprep.subr.bf16.mxu1 %v2045_v48  ;;  %v653_v27 = vld [vmem:[#allocation2 + $0x648] sm:$0xff]  ;;  %v655_v29 = vld [vmem:[#allocation2 + $0x658] sm:$0xff]  ;;  %v652_v34 = vld [vmem:[#allocation2 + $0x640] sm:$0xff] }
  0x6a   : > { %2104 = vmatpush1.bf16.msra.mxu0 %v2103_v35  ;;  %v2061_v32 = vpack.c.bf16 %v653_v27, %v645_v26  ;;  %v646_v35 = vld [vmem:[#allocation2 + $0x610] sm:$0xff]  ;;  %v2125_v36 = vpack.c.bf16 %v655_v29, %v647_v28  ;;  %v661_v38 = vld [vmem:[#allocation2 + $0x688] sm:$0xff]  ;;  %v671_v41 = vld [vmem:[#allocation2 + $0x6d8] sm:$0xff]  ;;  %v2063_v42 = vpack.c.bf16 %v652_v34, %v644_v33 }
  0x6b   : > { %2106 = vmatprep.subr.bf16.mxu0 %v2105_v40  ;;  %v654_v37 = vld [vmem:[#allocation2 + $0x650] sm:$0xff]  ;;  %v669_v39 = vld [vmem:[#allocation2 + $0x6c8] sm:$0xff]  ;;  %v663_v40 = vld [vmem:[#allocation2 + $0x698] sm:$0xff] }
  0x6c   : > { %2048 = vmatpush1.bf16.msra.mxu1 %v2047_v58  ;;  %v2127_v43 = vpack.c.bf16 %v654_v37, %v646_v35  ;;  %v2065_v44 = vpack.c.bf16 %v669_v39, %v661_v38  ;;  %v660_v45 = vld [vmem:[#allocation2 + $0x680] sm:$0xff]  ;;  %v2129_v48 = vpack.c.bf16 %v671_v41, %v663_v40  ;;  %v670_v49 = vld [vmem:[#allocation2 + $0x6d0] sm:$0xff]  ;;  %v677_v50 = vld [vmem:[#allocation2 + $0x708] sm:$0xff] }
  0x6d   : > { %2050 = vmatprep.subr.bf16.mxu1 %v2049_v60  ;;  %v668_v46 = vld [vmem:[#allocation2 + $0x6c0] sm:$0xff]  ;;  %v685_v51 = vld [vmem:[#allocation2 + $0x748] sm:$0xff]  ;;  %v687_v53 = vld [vmem:[#allocation2 + $0x758] sm:$0xff] }
  0x6e   : > { %2108 = vmatpush1.bf16.msra.mxu0 %v2107_v47  ;;  %v662_v47 = vld [vmem:[#allocation2 + $0x690] sm:$0xff]  ;;  %v2067_v54 = vpack.c.bf16 %v668_v46, %v660_v45  ;;  %v2069_v56 = vpack.c.bf16 %v685_v51, %v677_v50  ;;  %v676_v57 = vld [vmem:[#allocation2 + $0x700] sm:$0xff]  ;;  %v701_v1 = vld [vmem:[#allocation2 + $0x7c8] sm:$0xff] }
  0x6f   : > { %2110 = vmatprep.subr.bf16.mxu0 %v2109_v52  ;;  %v679_v52 = vld [vmem:[#allocation2 + $0x718] sm:$0xff]  ;;  %v2131_v55 = vpack.c.bf16 %v670_v49, %v662_v47  ;;  %v684_v58 = vld [vmem:[#allocation2 + $0x740] sm:$0xff]  ;;  %v678_v60 = vld [vmem:[#allocation2 + $0x710] sm:$0xff] }
  0x70   : > { %2052 = vmatpush1.bf16.msra.mxu1 %v2051_v6  ;;  %v686_v61 = vld [vmem:[#allocation2 + $0x750] sm:$0xff]  ;;  %v2071_v62 = vpack.c.bf16 %v684_v58, %v676_v57  ;;  %v695_v2 = vld [vmem:[#allocation2 + $0x798] sm:$0xff]  ;;  %v692_v5 = vld [vmem:[#allocation2 + $0x780] sm:$0xff] }
  0x71   : > { %2054 = vmatprep.subr.bf16.mxu1 %v2053_v8  ;;  %v2135_v63 = vpack.c.bf16 %v686_v61, %v678_v60  ;;  %v703_v4 = vld [vmem:[#allocation2 + $0x7d8] sm:$0xff]  ;;  %v700_v6 = vld [vmem:[#allocation2 + $0x7c0] sm:$0xff]  ;;  %v694_v10 = vld [vmem:[#allocation2 + $0x790] sm:$0xff] }
  0x72   : > { %2112 = vmatpush1.bf16.msra.mxu0 %v2111_v59  ;;  %v2133_v59 = vpack.c.bf16 %v687_v53, %v679_v52  ;;  %v2137_v8 = vpack.c.bf16 %v703_v4, %v695_v2  ;;  %v2075_v9 = vpack.c.bf16 %v700_v6, %v692_v5  ;;  %v702_v11 = vld [vmem:[#allocation2 + $0x7d0] sm:$0xff]  ;;  %v457_v13 = vld [vmem:[#allocation2 + $0x28] sm:$0xff]  ;;  %v459_v15 = vld [vmem:[#allocation2 + $0x38] sm:$0xff] }
  0x73   : > { %2114 = vmatprep.subr.bf16.mxu0 %v2113_v0  ;;  %v693_v0 = vld [vmem:[#allocation2 + $0x788] sm:$0xff]  ;;  %v467_v17 = vld [vmem:[#allocation2 + $0x78] sm:$0xff]  ;;  %v464_v21 = vld [vmem:[#allocation2 + $0x60] sm:$0xff] }
  0x74   : > { %2056 = vmatpush1.bf16.msra.mxu1 %v2055_v18  ;;  %v2073_v3 = vpack.c.bf16 %v701_v1, %v693_v0  ;;  %v465_v14 = vld [vmem:[#allocation2 + $0x68] sm:$0xff]  ;;  %v2205_v18 = vpack.c.bf16 %v467_v17, %v459_v15  ;;  %v458_v22 = vld [vmem:[#allocation2 + $0x30] sm:$0xff]  ;;  %v475_v29 = vld [vmem:[#allocation2 + $0xb8] sm:$0xff] }
  0x75   : > { %2058 = vmatprep.subr.bf16.mxu1 %v2057_v20  ;;  %v2141_v16 = vpack.c.bf16 %v465_v14, %v457_v13  ;;  %v456_v20 = vld [vmem:[#allocation2 + $0x20] sm:$0xff]  ;;  %v466_v23 = vld [vmem:[#allocation2 + $0x70] sm:$0xff]  ;;  %v473_v25 = vld [vmem:[#allocation2 + $0xa8] sm:$0xff] }
  0x76   : > { %2116 = vmatpush1.bf16.msra.mxu0 %v2115_v7  ;;  %v340_v7 = vld [vmem:[%s3639_s1 + $0x10] sm:$0xff]  ;;  %v481_v28 = vld [vmem:[#allocation2 + $0xe8] sm:$0xff]  ;;  %v2207_v33 = vpack.c.bf16 %v466_v23, %v458_v22  ;;  %v472_v34 = vld [vmem:[#allocation2 + $0xa0] sm:$0xff] }
  0x77   : > { %2118 = vmatprep.subr.bf16.mxu0 %v2117_v12  ;;  %2002 = vmatmul.mubr.msk.f32.gmra.mrb[4].mxu0 %vm359_vm0, %v340_v7  ;;  %v2139_v12 = vpack.c.bf16 %v702_v11, %v694_v10  ;;  %v480_v35 = vld [vmem:[#allocation2 + $0xe0] sm:$0xff]  ;;  %v474_v37 = vld [vmem:[#allocation2 + $0xb0] sm:$0xff]  ;;  %v489_v39 = vld [vmem:[#allocation2 + $0x128] sm:$0xff]  ;;  %v2145_v41 = vpack.c.bf16 %v481_v28, %v473_v25 }
  0x78   : > { %2060 = vmatpush1.bf16.msra.mxu1 %v2059_v30  ;;  %v483_v30 = vld [vmem:[#allocation2 + $0xf8] sm:$0xff]  ;;  %v482_v38 = vld [vmem:[#allocation2 + $0xf0] sm:$0xff]  ;;  %v2147_v47 = vpack.c.bf16 %v480_v35, %v472_v34  ;;  %v488_v49 = vld [vmem:[#allocation2 + $0x120] sm:$0xff] }
  0x79   : > { %2062 = vmatprep.subr.bf16.mxu1 %v2061_v32  ;;  %v2143_v32 = vpack.c.bf16 %v464_v21, %v456_v20  ;;  %v499_v45 = vld [vmem:[#allocation2 + $0x178] sm:$0xff]  ;;  %v496_v50 = vld [vmem:[#allocation2 + $0x160] sm:$0xff]  ;;  %v490_v53 = vld [vmem:[#allocation2 + $0x130] sm:$0xff] }
  0x7a   : > { %2120 = vmatpush1.bf16.msra.mxu0 %v2119_v19  ;;  %v343_v19 = vld [vmem:[%s3640_s2 + $0x10] sm:$0xff]  ;;  %v507_v57 = vld [vmem:[#allocation2 + $0x1b8] sm:$0xff]  ;;  %v504_v61 = vld [vmem:[#allocation2 + $0x1a0] sm:$0xff] }
  0x7b   : > { %2122 = vmatprep.subr.bf16.mxu0 %v2121_v24  ;;  %356 = vperm.xlu1 %2815, %v343_v19   ;;  %v515_v58 = vld [vmem:[#allocation2 + $0x1f8] sm:$0xff]  ;;  %v506_v1 = vld [vmem:[#allocation2 + $0x1b0] sm:$0xff]  ;;  %v529_v4 = vld [vmem:[#allocation2 + $0x268] sm:$0xff] }
  0x7c   : > { %2064 = vmatpush1.bf16.msra.mxu1 %v2063_v42  ;;  %v2209_v42 = vpack.c.bf16 %v483_v30, %v475_v29  ;;  %v2217_v0 = vpack.c.bf16 %v515_v58, %v507_v57  ;;  %v514_v2 = vld [vmem:[#allocation2 + $0x1f0] sm:$0xff]  ;;  %v523_v5 = vld [vmem:[#allocation2 + $0x238] sm:$0xff]  ;;  %v528_v10 = vld [vmem:[#allocation2 + $0x260] sm:$0xff] }
  0x7d   : > { %2066 = vmatprep.subr.bf16.mxu1 %v2065_v44  ;;  %v491_v44 = vld [vmem:[#allocation2 + $0x138] sm:$0xff]  ;;  %v522_v13 = vld [vmem:[#allocation2 + $0x230] sm:$0xff]  ;;  %v537_v15 = vld [vmem:[#allocation2 + $0x2a8] sm:$0xff] }
  0x7e   : > { %2124 = vmatpush1.bf16.msra.mxu0 %v2123_v31  ;;  %v2213_v52 = vpack.c.bf16 %v499_v45, %v491_v44  ;;  %v531_v6 = vld [vmem:[#allocation2 + $0x278] sm:$0xff]  ;;  %v530_v14 = vld [vmem:[#allocation2 + $0x270] sm:$0xff]  ;;  %v536_v21 = vld [vmem:[#allocation2 + $0x2a0] sm:$0xff] }
  0x7f   : > { %2126 = vmatprep.subr.bf16.mxu0 %v2125_v36  ;;  %v539_v17 = vld [vmem:[#allocation2 + $0x2b8] sm:$0xff]  ;;  %v2223_v20 = vpack.c.bf16 %v530_v14, %v522_v13  ;;  %v544_v22 = vld [vmem:[#allocation2 + $0x2e0] sm:$0xff]  ;;  %v538_v25 = vld [vmem:[#allocation2 + $0x2b0] sm:$0xff] }
  0x80   : > { %2068 = vmatpush1.bf16.msra.mxu1 %v2067_v54  ;;  %v498_v54 = vld [vmem:[#allocation2 + $0x170] sm:$0xff]  ;;  %v561_v28 = vld [vmem:[#allocation2 + $0x368] sm:$0xff]  ;;  %v555_v29 = vld [vmem:[#allocation2 + $0x338] sm:$0xff] }
  0x81   : > { %2070 = vmatprep.subr.bf16.mxu1 %v2069_v56  ;;  %v513_v56 = vld [vmem:[#allocation2 + $0x1e8] sm:$0xff]  ;;  %v2215_v60 = vpack.c.bf16 %v498_v54, %v490_v53  ;;  %v563_v30 = vld [vmem:[#allocation2 + $0x378] sm:$0xff]  ;;  %v560_v34 = vld [vmem:[#allocation2 + $0x360] sm:$0xff] }
  0x82   : > { %2128 = vmatpush1.bf16.msra.mxu0 %v2127_v43  ;;  %v497_v43 = vld [vmem:[#allocation2 + $0x168] sm:$0xff]  ;;  %v579_v44 = vld [vmem:[#allocation2 + $0x3f8] sm:$0xff]  ;;  %v578_v53 = vld [vmem:[#allocation2 + $0x3f0] sm:$0xff] }
  0x83   : > { %2130 = vmatprep.subr.bf16.mxu0 %v2129_v48  ;;  %v2211_v48 = vpack.c.bf16 %v482_v38, %v474_v37  ;;  %v2149_v51 = vpack.c.bf16 %v497_v43, %v489_v39  ;;  %v2229_v37 = vpack.c.bf16 %v563_v30, %v555_v29  ;;  %v554_v38 = vld [vmem:[#allocation2 + $0x330] sm:$0xff]  ;;  %v571_v43 = vld [vmem:[#allocation2 + $0x3b8] sm:$0xff]  ;;  %v585_v54 = vld [vmem:[#allocation2 + $0x428] sm:$0xff] }
  0x84   : > { %2072 = vmatpush1.bf16.msra.mxu1 %v2071_v62  ;;  %v512_v62 = vld [vmem:[#allocation2 + $0x1e0] sm:$0xff]  ;;  %v562_v39 = vld [vmem:[#allocation2 + $0x370] sm:$0xff]  ;;  %v595_v57 = vld [vmem:[#allocation2 + $0x478] sm:$0xff] }
  0x85   : > { %2074 = vmatprep.subr.bf16.mxu1 %v2073_v3  ;;  %v521_v3 = vld [vmem:[#allocation2 + $0x228] sm:$0xff]  ;;  %v2155_v7 = vpack.c.bf16 %v512_v62, %v504_v61  ;;  %v592_v61 = vld [vmem:[#allocation2 + $0x460] sm:$0xff]  ;;  %v610_v13 = vld [vmem:[#allocation2 + $0x4f0] sm:$0xff] }
  0x86   : > { %2132 = vmatpush1.bf16.msra.mxu0 %v2131_v55  ;;  %v505_v55 = vld [vmem:[#allocation2 + $0x1a8] sm:$0xff]  ;;  %v2157_v11 = vpack.c.bf16 %v529_v4, %v521_v3  ;;  %v603_v4 = vld [vmem:[#allocation2 + $0x4b8] sm:$0xff] }
  0x87   : > { %2134 = vmatprep.subr.bf16.mxu0 %v2133_v59  ;;  %v2151_v59 = vpack.c.bf16 %v496_v50, %v488_v49  ;;  %v576_v49 = vld [vmem:[#allocation2 + $0x3e0] sm:$0xff]  ;;  %v609_v3 = vld [vmem:[#allocation2 + $0x4e8] sm:$0xff]  ;;  %v643_v29 = vld [vmem:[#allocation2 + $0x5f8] sm:$0xff] }
  0x88   : > { %2076 = vmatpush1.bf16.msra.mxu1 %v2075_v9  ;;  %v520_v9 = vld [vmem:[#allocation2 + $0x220] sm:$0xff]  ;;  %v617_v14 = vld [vmem:[#allocation2 + $0x528] sm:$0xff] }
  0x89   : > { %2142 = vmatprep.subr.bf16.mxu1 %v2141_v16  ;;  %v545_v16 = vld [vmem:[#allocation2 + $0x2e8] sm:$0xff]  ;;  %v2159_v19 = vpack.c.bf16 %v528_v10, %v520_v9  ;;  %v608_v9 = vld [vmem:[#allocation2 + $0x4e0] sm:$0xff] }
  0x8a   : > { %2136 = vmatpush1.bf16.msra.mxu0 %v2135_v63  ;;  %v2153_v63 = vpack.c.bf16 %v513_v56, %v505_v55  ;;  %v2161_v23 = vpack.c.bf16 %v545_v16, %v537_v15  ;;  %v593_v55 = vld [vmem:[#allocation2 + $0x468] sm:$0xff]  ;;  %v587_v56 = vld [vmem:[#allocation2 + $0x438] sm:$0xff] }
  0x8b   : > { %2138 = vmatprep.subr.bf16.mxu0 %v2137_v8  ;;  %v2219_v8 = vpack.c.bf16 %v514_v2, %v506_v1  ;;  %v2173_v62 = vpack.c.bf16 %v593_v55, %v585_v54  ;;  %v594_v1 = vld [vmem:[#allocation2 + $0x470] sm:$0xff]  ;;  %v601_v2 = vld [vmem:[#allocation2 + $0x4a8] sm:$0xff]  ;;  %v619_v16 = vld [vmem:[#allocation2 + $0x538] sm:$0xff] }
  0x8c   : > { %v2177_v10 = vpack.c.bf16 %v609_v3, %v601_v2  ;;  %v625_v15 = vld [vmem:[#allocation2 + $0x568] sm:$0xff]  ;;  %v667_v55 = vld [vmem:[#allocation2 + $0x6b8] sm:$0xff] }
  0x8d   : > { %v673_v54 = vld [vmem:[#allocation2 + $0x6e8] sm:$0xff]  ;;  %v683_v3 = vld [vmem:[#allocation2 + $0x738] sm:$0xff] }
  0x8e   : > { %2140 = vmatpush1.bf16.msra.mxu0 %v2139_v12  ;;  %v2221_v12 = vpack.c.bf16 %v531_v6, %v523_v5  ;;  %v611_v5 = vld [vmem:[#allocation2 + $0x4f8] sm:$0xff]  ;;  %v689_v2 = vld [vmem:[#allocation2 + $0x768] sm:$0xff] }
  0x8f   : > { %2206 = vmatprep.subr.bf16.mxu0 %v2205_v18  ;;  %v547_v18 = vld [vmem:[#allocation2 + $0x2f8] sm:$0xff] }
  0xc6   : > { %v347_v26 = vpop.permute.xlu0 %346 }
 0x124   : > { %v435_v24 = vpop.f32.mrb[0].mxu0 }
 0x125   : > { %v437_v27 = vpop.f32.mrb[1].mxu0  ;;  %v3048_v36 = vadd.f32 %v435_v24, %v347_v26  ;;  %v2225_v24 = vpack.c.bf16 %v547_v18, %v539_v17  ;;  %v627_v17 = vld [vmem:[#allocation2 + $0x578] sm:$0xff] }
 0x126   : > { %v438_v31 = vadd.f32 %v437_v27, %v347_v26  ;;  %v546_v26 = vld [vmem:[#allocation2 + $0x2f0] sm:$0xff]  ;;  %v553_v27 = vld [vmem:[#allocation2 + $0x328] sm:$0xff] }
 0x127   : > { %v2165_v35 = vpack.c.bf16 %v561_v28, %v553_v27  ;;  %v641_v27 = vld [vmem:[#allocation2 + $0x5e8] sm:$0xff]  ;;  %v635_v28 = vld [vmem:[#allocation2 + $0x5b8] sm:$0xff] }
 0x128   : > { %v3050_v40 = vpop.f32.mrb[2].mxu0  ;;  %1028 = vmatprep.mubr.f32.mxu1 %v438_v31  ;;  %1099 = vmatprep.mubr.f32.mxu0 %v438_v31 }
 0x129   : > { %v3052_v46 = vpop.f32.mrb[3].mxu0  ;;  %1029 = vmatmul.mubr.f32.vlgmr.msra.gmra.mrb[0].mxu1 %v3048_v36  ;;  %1100 = vmatmul.mubr.f32.vlgmr.msra.gmra.mrb[6].mxu0 %v3048_v36 }
 0x12a   : > { %2144 = vmatpush1.bf16.msra.mxu1 %v2143_v32  ;;  %2208 = vmatpush1.bf16.msra.mxu0 %v2207_v33  ;;  %v2227_v32 = vpack.c.bf16 %v546_v26, %v538_v25  ;;  %v552_v33 = vld [vmem:[#allocation2 + $0x320] sm:$0xff]  ;;  %v626_v25 = vld [vmem:[#allocation2 + $0x570] sm:$0xff]  ;;  %v633_v26 = vld [vmem:[#allocation2 + $0x5a8] sm:$0xff] }
 0x12b   : > { %1170 = vmatprep.mubr.f32.mxu1 %v438_v31  ;;  %1241 = vmatprep.mubr.f32.mxu0 %v438_v31  ;;  %v2163_v31 = vpack.c.bf16 %v544_v22, %v536_v21  ;;  %v2167_v45 = vpack.c.bf16 %v560_v34, %v552_v33  ;;  %v624_v21 = vld [vmem:[#allocation2 + $0x560] sm:$0xff]  ;;  %v2181_v22 = vpack.c.bf16 %v625_v15, %v617_v14  ;;  %v705_v14 = vld [vmem:[#allocation2 + $0x7e8] sm:$0xff]  ;;  %v699_v15 = vld [vmem:[#allocation2 + $0x7b8] sm:$0xff] }
 0x12c   : > { %2146 = vmatprep.subr.bf16.mxu1 %v2145_v41  ;;  %2210 = vmatprep.subr.bf16.mxu0 %v2209_v42  ;;  %v569_v41 = vld [vmem:[#allocation2 + $0x3a8] sm:$0xff]  ;;  %v640_v33 = vld [vmem:[#allocation2 + $0x5e0] sm:$0xff]  ;;  %v2185_v34 = vpack.c.bf16 %v641_v27, %v633_v26  ;;  %v711_v27 = vld [vmem:[#allocation4 + $0x18] sm:$0xff] }
 0x12d   : > { %v577_v42 = vld [vmem:[#allocation2 + $0x3e8] sm:$0xff] }
 0x12e   : > { %2148 = vmatpush1.bf16.msra.mxu1 %v2147_v47  ;;  %2212 = vmatpush1.bf16.msra.mxu0 %v2211_v48  ;;  %v2231_v47 = vpack.c.bf16 %v562_v39, %v554_v38  ;;  %v568_v48 = vld [vmem:[#allocation2 + $0x3a0] sm:$0xff]  ;;  %v2169_v50 = vpack.c.bf16 %v577_v42, %v569_v41  ;;  %v642_v38 = vld [vmem:[#allocation2 + $0x5f0] sm:$0xff]  ;;  %v649_v39 = vld [vmem:[#allocation2 + $0x628] sm:$0xff] }
 0x12f   : > { %2150 = vmatprep.subr.bf16.mxu1 %v2149_v51  ;;  %2214 = vmatprep.subr.bf16.mxu0 %v2213_v52  ;;  %v2233_v51 = vpack.c.bf16 %v579_v44, %v571_v43  ;;  %v570_v52 = vld [vmem:[#allocation2 + $0x3b0] sm:$0xff]  ;;  %v2171_v58 = vpack.c.bf16 %v576_v49, %v568_v48  ;;  %v657_v41 = vld [vmem:[#allocation2 + $0x668] sm:$0xff]  ;;  %v651_v42 = vld [vmem:[#allocation2 + $0x638] sm:$0xff] }
 0x130   : > { %v659_v43 = vld [vmem:[#allocation2 + $0x678] sm:$0xff]  ;;  %v656_v48 = vld [vmem:[#allocation2 + $0x660] sm:$0xff]  ;;  %v2189_v49 = vpack.c.bf16 %v657_v41, %v649_v39  ;;  %v717_v26 = vld [vmem:[#allocation4 + $0x48] sm:$0xff] }
 0x131   : > { %v733_v39 = vld [vmem:[#allocation4 + $0xc8] sm:$0xff]  ;;  %v727_v41 = vld [vmem:[#allocation4 + $0x98] sm:$0xff] }
 0x132   : > { %2152 = vmatpush1.bf16.msra.mxu1 %v2151_v59  ;;  %2216 = vmatpush1.bf16.msra.mxu0 %v2215_v60  ;;  %v2235_v59 = vpack.c.bf16 %v578_v53, %v570_v52  ;;  %v584_v60 = vld [vmem:[#allocation2 + $0x420] sm:$0xff]  ;;  %v658_v52 = vld [vmem:[#allocation2 + $0x670] sm:$0xff]  ;;  %v665_v53 = vld [vmem:[#allocation2 + $0x6a8] sm:$0xff] }
 0x133   : > { %2154 = vmatprep.subr.bf16.mxu1 %v2153_v63  ;;  %2218 = vmatprep.subr.bf16.mxu0 %v2217_v0  ;;  %v2237_v63 = vpack.c.bf16 %v595_v57, %v587_v56  ;;  %v586_v0 = vld [vmem:[#allocation2 + $0x430] sm:$0xff]  ;;  %v2175_v6 = vpack.c.bf16 %v592_v61, %v584_v60  ;;  %v675_v56 = vld [vmem:[#allocation2 + $0x6f8] sm:$0xff]  ;;  %v672_v60 = vld [vmem:[#allocation2 + $0x6e0] sm:$0xff]  ;;  %v2193_v61 = vpack.c.bf16 %v673_v54, %v665_v53 }
 0x134   : > { %v734_v53 = vld [vmem:[#allocation4 + $0xd0] sm:$0xff]  ;;  %v741_v54 = vld [vmem:[#allocation4 + $0x108] sm:$0xff] }
 0x136   : > { %2156 = vmatpush1.bf16.msra.mxu1 %v2155_v7  ;;  %2220 = vmatpush1.bf16.msra.mxu0 %v2219_v8  ;;  %v2239_v7 = vpack.c.bf16 %v594_v1, %v586_v0  ;;  %v600_v8 = vld [vmem:[#allocation2 + $0x4a0] sm:$0xff]  ;;  %v674_v0 = vld [vmem:[#allocation2 + $0x6f0] sm:$0xff]  ;;  %v681_v1 = vld [vmem:[#allocation2 + $0x728] sm:$0xff] }
 0x137   : > { %2158 = vmatprep.subr.bf16.mxu1 %v2157_v11  ;;  %2222 = vmatprep.subr.bf16.mxu0 %v2221_v12  ;;  %v2241_v11 = vpack.c.bf16 %v611_v5, %v603_v4  ;;  %v602_v12 = vld [vmem:[#allocation2 + $0x4b0] sm:$0xff]  ;;  %v2179_v18 = vpack.c.bf16 %v608_v9, %v600_v8  ;;  %v691_v4 = vld [vmem:[#allocation2 + $0x778] sm:$0xff]  ;;  %v688_v8 = vld [vmem:[#allocation2 + $0x760] sm:$0xff]  ;;  %v2197_v9 = vpack.c.bf16 %v689_v2, %v681_v1 }
 0x138   : > { %v765_v1 = vld [vmem:[#allocation4 + $0x1c8] sm:$0xff]  ;;  %v759_v2 = vld [vmem:[#allocation4 + $0x198] sm:$0xff] }
 0x13a   : > { %2160 = vmatpush1.bf16.msra.mxu1 %v2159_v19  ;;  %2224 = vmatpush1.bf16.msra.mxu0 %v2223_v20  ;;  %v2243_v19 = vpack.c.bf16 %v610_v13, %v602_v12  ;;  %v616_v20 = vld [vmem:[#allocation2 + $0x520] sm:$0xff]  ;;  %v690_v12 = vld [vmem:[#allocation2 + $0x770] sm:$0xff]  ;;  %v697_v13 = vld [vmem:[#allocation2 + $0x7a8] sm:$0xff] }
 0x13b   : > { %2162 = vmatprep.subr.bf16.mxu1 %v2161_v23  ;;  %2226 = vmatprep.subr.bf16.mxu0 %v2225_v24  ;;  %v2245_v23 = vpack.c.bf16 %v627_v17, %v619_v16  ;;  %v618_v24 = vld [vmem:[#allocation2 + $0x530] sm:$0xff]  ;;  %v2183_v30 = vpack.c.bf16 %v624_v21, %v616_v20  ;;  %v707_v16 = vld [vmem:[#allocation2 + $0x7f8] sm:$0xff]  ;;  %v704_v20 = vld [vmem:[#allocation2 + $0x7e0] sm:$0xff]  ;;  %v2201_v21 = vpack.c.bf16 %v705_v14, %v697_v13 }
 0x13c   : > { %v781_v13 = vld [vmem:[#allocation4 + $0x248] sm:$0xff]  ;;  %v775_v14 = vld [vmem:[#allocation4 + $0x218] sm:$0xff] }
 0x13e   : > { %2164 = vmatpush1.bf16.msra.mxu1 %v2163_v31  ;;  %2228 = vmatpush1.bf16.msra.mxu0 %v2227_v32  ;;  %v2247_v31 = vpack.c.bf16 %v626_v25, %v618_v24  ;;  %v632_v32 = vld [vmem:[#allocation2 + $0x5a0] sm:$0xff]  ;;  %v706_v24 = vld [vmem:[#allocation2 + $0x7f0] sm:$0xff]  ;;  %v709_v25 = vld [vmem:[#allocation4 + $0x8] sm:$0xff] }
 0x13f   : > { %2166 = vmatprep.subr.bf16.mxu1 %v2165_v35  ;;  %2230 = vmatprep.subr.bf16.mxu0 %v2229_v37  ;;  %v2249_v35 = vpack.c.bf16 %v643_v29, %v635_v28  ;;  %v634_v37 = vld [vmem:[#allocation2 + $0x5b0] sm:$0xff]  ;;  %v2187_v44 = vpack.c.bf16 %v640_v33, %v632_v32  ;;  %v719_v28 = vld [vmem:[#allocation4 + $0x58] sm:$0xff]  ;;  %v708_v33 = vld [vmem:[#allocation4] sm:$0xff] }
 0x140   : > { %v3058_v32 = vpack.c.bf16 %v719_v28, %v711_v27  ;;  %v799_v27 = vld [vmem:[#allocation4 + $0x2d8] sm:$0xff] }
 0x142   : > { %2168 = vmatpush1.bf16.msra.mxu1 %v2167_v45  ;;  %2232 = vmatpush1.bf16.msra.mxu0 %v2231_v47  ;;  %v2251_v45 = vpack.c.bf16 %v642_v38, %v634_v37  ;;  %v648_v47 = vld [vmem:[#allocation2 + $0x620] sm:$0xff]  ;;  %v718_v37 = vld [vmem:[#allocation4 + $0x50] sm:$0xff]  ;;  %v725_v38 = vld [vmem:[#allocation4 + $0x88] sm:$0xff] }
 0x143   : > { %2170 = vmatprep.subr.bf16.mxu1 %v2169_v50  ;;  %2234 = vmatprep.subr.bf16.mxu0 %v2233_v51  ;;  %v2253_v50 = vpack.c.bf16 %v659_v43, %v651_v42  ;;  %v650_v51 = vld [vmem:[#allocation2 + $0x630] sm:$0xff]  ;;  %v2191_v57 = vpack.c.bf16 %v656_v48, %v648_v47  ;;  %v735_v42 = vld [vmem:[#allocation4 + $0xd8] sm:$0xff]  ;;  %v724_v47 = vld [vmem:[#allocation4 + $0x80] sm:$0xff] }
 0x144   : > { %v732_v48 = vld [vmem:[#allocation4 + $0xc0] sm:$0xff] }
 0x146   : > { %2172 = vmatpush1.bf16.msra.mxu1 %v2171_v58  ;;  %2236 = vmatpush1.bf16.msra.mxu0 %v2235_v59  ;;  %v2255_v58 = vpack.c.bf16 %v658_v52, %v650_v51  ;;  %v664_v59 = vld [vmem:[#allocation2 + $0x6a0] sm:$0xff]  ;;  %v3072_v51 = vpack.c.bf16 %v733_v39, %v725_v38  ;;  %v3074_v52 = vpack.c.bf16 %v735_v42, %v727_v41  ;;  %v798_v39 = vld [vmem:[#allocation4 + $0x2d0] sm:$0xff]  ;;  %v805_v41 = vld [vmem:[#allocation4 + $0x308] sm:$0xff] }
 0x147   : > { %2174 = vmatprep.subr.bf16.mxu1 %v2173_v62  ;;  %2238 = vmatprep.subr.bf16.mxu0 %v2237_v63  ;;  %v2257_v62 = vpack.c.bf16 %v675_v56, %v667_v55  ;;  %v666_v63 = vld [vmem:[#allocation2 + $0x6b0] sm:$0xff]  ;;  %v2195_v5 = vpack.c.bf16 %v672_v60, %v664_v59  ;;  %v749_v55 = vld [vmem:[#allocation4 + $0x148] sm:$0xff]  ;;  %v743_v56 = vld [vmem:[#allocation4 + $0x118] sm:$0xff] }
 0x148   : > { %v3086_v59 = vpack.c.bf16 %v749_v55, %v741_v54  ;;  %v740_v60 = vld [vmem:[#allocation4 + $0x100] sm:$0xff]  ;;  %v813_v42 = vld [vmem:[#allocation4 + $0x348] sm:$0xff] }
 0x149   : > { %v3139_v55 = vpack.c.bf16 %v813_v42, %v805_v41  ;;  %v861_v41 = vld [vmem:[#allocation4 + $0x4c8] sm:$0xff]  ;;  %v855_v42 = vld [vmem:[#allocation4 + $0x498] sm:$0xff] }
 0x14a   : > { %2176 = vmatpush1.bf16.msra.mxu1 %v2175_v6  ;;  %2240 = vmatpush1.bf16.msra.mxu0 %v2239_v7  ;;  %v2259_v6 = vpack.c.bf16 %v674_v0, %v666_v63  ;;  %v680_v7 = vld [vmem:[#allocation2 + $0x720] sm:$0xff]  ;;  %v750_v63 = vld [vmem:[#allocation4 + $0x150] sm:$0xff]  ;;  %v757_v0 = vld [vmem:[#allocation4 + $0x188] sm:$0xff] }
 0x14b   : > { %2178 = vmatprep.subr.bf16.mxu1 %v2177_v10  ;;  %2242 = vmatprep.subr.bf16.mxu0 %v2241_v11  ;;  %v2261_v10 = vpack.c.bf16 %v691_v4, %v683_v3  ;;  %v682_v11 = vld [vmem:[#allocation2 + $0x730] sm:$0xff]  ;;  %v2199_v17 = vpack.c.bf16 %v688_v8, %v680_v7  ;;  %v767_v3 = vld [vmem:[#allocation4 + $0x1d8] sm:$0xff]  ;;  %v756_v7 = vld [vmem:[#allocation4 + $0x180] sm:$0xff] }
 0x14c   : > { %v764_v8 = vld [vmem:[#allocation4 + $0x1c0] sm:$0xff] }
 0x14e   : > { %2180 = vmatpush1.bf16.msra.mxu1 %v2179_v18  ;;  %2244 = vmatpush1.bf16.msra.mxu0 %v2243_v19  ;;  %v2263_v18 = vpack.c.bf16 %v690_v12, %v682_v11  ;;  %v696_v19 = vld [vmem:[#allocation2 + $0x7a0] sm:$0xff]  ;;  %v766_v11 = vld [vmem:[#allocation4 + $0x1d0] sm:$0xff]  ;;  %v773_v12 = vld [vmem:[#allocation4 + $0x208] sm:$0xff] }
 0x14f   : > { %2182 = vmatprep.subr.bf16.mxu1 %v2181_v22  ;;  %2246 = vmatprep.subr.bf16.mxu0 %v2245_v23  ;;  %v2265_v22 = vpack.c.bf16 %v707_v16, %v699_v15  ;;  %v698_v23 = vld [vmem:[#allocation2 + $0x7b0] sm:$0xff]  ;;  %v2203_v29 = vpack.c.bf16 %v704_v20, %v696_v19  ;;  %v783_v15 = vld [vmem:[#allocation4 + $0x258] sm:$0xff]  ;;  %v3105_v16 = vpack.c.bf16 %v764_v8, %v756_v7  ;;  %v772_v19 = vld [vmem:[#allocation4 + $0x200] sm:$0xff] }
 0x150   : > { %v780_v20 = vld [vmem:[#allocation4 + $0x240] sm:$0xff] }
 0x151   : > { %v3117_v28 = vpack.c.bf16 %v780_v20, %v772_v19  ;;  %v845_v19 = vld [vmem:[#allocation4 + $0x448] sm:$0xff]  ;;  %v839_v20 = vld [vmem:[#allocation4 + $0x418] sm:$0xff] }
 0x152   : > { %2184 = vmatpush1.bf16.msra.mxu1 %v2183_v30  ;;  %2248 = vmatpush1.bf16.msra.mxu0 %v2247_v31  ;;  %v2267_v30 = vpack.c.bf16 %v706_v24, %v698_v23  ;;  %v3056_v31 = vpack.c.bf16 %v717_v26, %v709_v25  ;;  %v782_v23 = vld [vmem:[#allocation4 + $0x250] sm:$0xff]  ;;  %v789_v24 = vld [vmem:[#allocation4 + $0x288] sm:$0xff]  ;;  %v791_v26 = vld [vmem:[#allocation4 + $0x298] sm:$0xff] }
 0x153   : > { %2186 = vmatprep.subr.bf16.mxu1 %v2185_v34  ;;  %2250 = vmatprep.subr.bf16.mxu0 %v2249_v35  ;;  %v716_v34 = vld [vmem:[#allocation4 + $0x40] sm:$0xff]  ;;  %v710_v35 = vld [vmem:[#allocation4 + $0x10] sm:$0xff]  ;;  %v797_v25 = vld [vmem:[#allocation4 + $0x2c8] sm:$0xff]  ;;  %v3128_v38 = vpack.c.bf16 %v799_v27, %v791_v26 }
 0x154   : > { %v3060_v43 = vpack.c.bf16 %v716_v34, %v708_v33  ;;  %v788_v33 = vld [vmem:[#allocation4 + $0x280] sm:$0xff] }
 0x155   : > { %v796_v34 = vld [vmem:[#allocation4 + $0x2c0] sm:$0xff] }
 0x156   : > { %2188 = vmatpush1.bf16.msra.mxu1 %v2187_v44  ;;  %2252 = vmatpush1.bf16.msra.mxu0 %v2251_v45  ;;  %v3062_v44 = vpop.permute.xlu0 %351  ;;  %v3066_v45 = vpack.c.bf16 %v718_v37, %v710_v35  ;;  %v790_v35 = vld [vmem:[#allocation4 + $0x290] sm:$0xff]  ;;  %v3125_v37 = vpop.f32.mrb[4].mxu0  ;;  %v836_v26 = vld [vmem:[#allocation4 + $0x400] sm:$0xff] }
 0x157   : > { %2190 = vmatprep.subr.bf16.mxu1 %v2189_v49  ;;  %2254 = vmatprep.subr.bf16.mxu0 %v2253_v50  ;;  %v726_v49 = vld [vmem:[#allocation4 + $0x90] sm:$0xff]  ;;  %v3070_v50 = vadd.f32 %v3052_v46, %v3062_v44  ;;  %3731 = vst [vmem:[#allocation8_spill] sm:$0xff] %v3125_v37  ;;  %v3137_v54 = vpack.c.bf16 %v798_v39, %v790_v35  ;;  %v844_v27 = vld [vmem:[#allocation4 + $0x440] sm:$0xff]  ;;  %v853_v39 = vld [vmem:[#allocation4 + $0x488] sm:$0xff] }
 0x158   : > { %v3084_v46 = vpack.c.bf16 %v734_v53, %v726_v49  ;;  %v815_v49 = vld [vmem:[#allocation4 + $0x358] sm:$0xff]  ;;  %v3133_v53 = vpack.c.bf16 %v796_v34, %v788_v33  ;;  %v838_v33 = vld [vmem:[#allocation4 + $0x410] sm:$0xff]  ;;  %v909_v37 = vld [vmem:[#allocation4 + $0x648] sm:$0xff] }
 0x159   : > { %v846_v35 = vld [vmem:[#allocation4 + $0x450] sm:$0xff] }
 0x15a   : > { %2192 = vmatpush1.bf16.msra.mxu1 %v2191_v57  ;;  %2256 = vmatpush1.bf16.msra.mxu0 %v2255_v58  ;;  %v751_v57 = vld [vmem:[#allocation4 + $0x158] sm:$0xff]  ;;  %v3080_v58 = vpack.c.bf16 %v732_v48, %v724_v47  ;;  %v3130_v47 = vpop.f32.mrb[5].mxu0 }
 0x15b   : > { %2194 = vmatprep.subr.bf16.mxu1 %v2193_v61  ;;  %2258 = vmatprep.subr.bf16.mxu0 %v2257_v62  ;;  %v748_v61 = vld [vmem:[#allocation4 + $0x140] sm:$0xff]  ;;  %v742_v62 = vld [vmem:[#allocation4 + $0x110] sm:$0xff]  ;;  %v807_v48 = vld [vmem:[#allocation4 + $0x318] sm:$0xff] }
 0x15c   : > { %v3093_v4 = vpack.c.bf16 %v748_v61, %v740_v60  ;;  %v806_v60 = vld [vmem:[#allocation4 + $0x310] sm:$0xff]  ;;  %v3142_v61 = vpack.c.bf16 %v815_v49, %v807_v48  ;;  %v863_v48 = vld [vmem:[#allocation4 + $0x4d8] sm:$0xff]  ;;  %v3169_v49 = vpack.c.bf16 %v844_v27, %v836_v26 }
 0x15d   : > { %v870_v26 = vld [vmem:[#allocation4 + $0x510] sm:$0xff] }
 0x15e   : > { %2196 = vmatpush1.bf16.msra.mxu1 %v2195_v5  ;;  %2260 = vmatpush1.bf16.msra.mxu0 %v2259_v6  ;;  %v3097_v5 = vpack.c.bf16 %v750_v63, %v742_v62  ;;  %v3099_v6 = vpack.c.bf16 %v765_v1, %v757_v0  ;;  %v814_v62 = vld [vmem:[#allocation4 + $0x350] sm:$0xff]  ;;  %v821_v63 = vld [vmem:[#allocation4 + $0x388] sm:$0xff]  ;;  %v823_v1 = vld [vmem:[#allocation4 + $0x398] sm:$0xff] }
 0x15f   : > { %2198 = vmatprep.subr.bf16.mxu1 %v2197_v9  ;;  %2262 = vmatprep.subr.bf16.mxu0 %v2261_v10  ;;  %v758_v9 = vld [vmem:[#allocation4 + $0x190] sm:$0xff]  ;;  %v3102_v10 = vpack.c.bf16 %v767_v3, %v759_v2  ;;  %v829_v0 = vld [vmem:[#allocation4 + $0x3c8] sm:$0xff]  ;;  %v831_v2 = vld [vmem:[#allocation4 + $0x3d8] sm:$0xff]  ;;  %v3149_v7 = vpack.c.bf16 %v814_v62, %v806_v60 }
 0x160   : > { %v3151_v8 = vpack.c.bf16 %v829_v0, %v821_v63  ;;  %v852_v60 = vld [vmem:[#allocation4 + $0x480] sm:$0xff]  ;;  %v854_v63 = vld [vmem:[#allocation4 + $0x490] sm:$0xff]  ;;  %v3178_v0 = vpack.c.bf16 %v863_v48, %v855_v42  ;;  %v895_v42 = vld [vmem:[#allocation4 + $0x5d8] sm:$0xff] }
 0x161   : > { %v860_v62 = vld [vmem:[#allocation4 + $0x4c0] sm:$0xff] }
 0x162   : > { %2200 = vmatpush1.bf16.msra.mxu1 %v2199_v17  ;;  %2264 = vmatpush1.bf16.msra.mxu0 %v2263_v18  ;;  %v3109_v17 = vpack.c.bf16 %v766_v11, %v758_v9  ;;  %v3111_v18 = vpack.c.bf16 %v781_v13, %v773_v12  ;;  %v820_v9 = vld [vmem:[#allocation4 + $0x380] sm:$0xff]  ;;  %v822_v12 = vld [vmem:[#allocation4 + $0x390] sm:$0xff]  ;;  %v3154_v13 = vpack.c.bf16 %v831_v2, %v823_v1  ;;  %v869_v2 = vld [vmem:[#allocation4 + $0x508] sm:$0xff] }
 0x163   : > { %2202 = vmatprep.subr.bf16.mxu1 %v2201_v21  ;;  %2266 = vmatprep.subr.bf16.mxu0 %v2265_v22  ;;  %v774_v21 = vld [vmem:[#allocation4 + $0x210] sm:$0xff]  ;;  %v3114_v22 = vpack.c.bf16 %v783_v15, %v775_v14  ;;  %v828_v11 = vld [vmem:[#allocation4 + $0x3c0] sm:$0xff]  ;;  %v837_v15 = vld [vmem:[#allocation4 + $0x408] sm:$0xff] }
 0x164   : > { %v830_v14 = vld [vmem:[#allocation4 + $0x3d0] sm:$0xff] }
 0x165   : > { %v862_v1 = vld [vmem:[#allocation4 + $0x4d0] sm:$0xff] }
 0x166   : > { %2204 = vmatpush1.bf16.msra.mxu1 %v2203_v29  ;;  %2268 = vmatpush1.bf16.msra.mxu0 %v2267_v30  ;;  %v3121_v29 = vpack.c.bf16 %v782_v23, %v774_v21  ;;  %v3123_v30 = vpack.c.bf16 %v797_v25, %v789_v24  ;;  %v847_v21 = vld [vmem:[#allocation4 + $0x458] sm:$0xff]  ;;  %v3157_v23 = vpack.c.bf16 %v828_v11, %v820_v9  ;;  %v877_v9 = vld [vmem:[#allocation4 + $0x548] sm:$0xff] }
 0x167   : > { %2270 = vmatprep.subr.bf16.mxu1 %v3056_v31  ;;  %2334 = vmatprep.subr.bf16.mxu0 %v3058_v32  ;;  %v3161_v24 = vpack.c.bf16 %v830_v14, %v822_v12  ;;  %v3163_v25 = vpack.c.bf16 %v845_v19, %v837_v15  ;;  %v3166_v34 = vpack.c.bf16 %v847_v21, %v839_v20  ;;  %v871_v11 = vld [vmem:[#allocation4 + $0x518] sm:$0xff]  ;;  %v868_v20 = vld [vmem:[#allocation4 + $0x500] sm:$0xff] }
 0x168   : > { %v879_v12 = vld [vmem:[#allocation4 + $0x558] sm:$0xff]  ;;  %v3181_v14 = vpack.c.bf16 %v860_v62, %v852_v60  ;;  %v3185_v15 = vpack.c.bf16 %v862_v1, %v854_v63  ;;  %v3187_v19 = vpack.c.bf16 %v877_v9, %v869_v2  ;;  %v876_v21 = vld [vmem:[#allocation4 + $0x540] sm:$0xff]  ;;  %v886_v2 = vld [vmem:[#allocation4 + $0x590] sm:$0xff] }
 0x169   : > { %1171 = vmatmul.mubr.f32.vlgmr.msra.gmra.mrb[2].mxu1 %v3048_v36  ;;  %1242 = vmatmul.mubr.f32.vlgmr.msra.gmra.mrb[8].mxu0 %v3048_v36  ;;  %v3090_v36 = vpack.c.bf16 %v751_v57, %v743_v56  ;;  %v804_v56 = vld [vmem:[#allocation4 + $0x300] sm:$0xff]  ;;  %v3190_v27 = vpack.c.bf16 %v879_v12, %v871_v11  ;;  %v3193_v48 = vpack.c.bf16 %v876_v21, %v868_v20  ;;  %v894_v11 = vld [vmem:[#allocation4 + $0x5d0] sm:$0xff]  ;;  %v901_v12 = vld [vmem:[#allocation4 + $0x608] sm:$0xff] }
 0x16a   : > { %2272 = vmatpush1.bf16.msra.mxu1 %v3060_v43  ;;  %1320 = vmatprep.mubr.f32.mxu1 %v3070_v50  ;;  %v812_v57 = vld [vmem:[#allocation4 + $0x340] sm:$0xff]  ;;  %3732 = vst [vmem:[#allocation9_spill] sm:$0xff] %v3185_v15  ;;  %3733 = vst [vmem:[#allocation10_spill] sm:$0xff] %v3187_v19  ;;  %v903_v20 = vld [vmem:[#allocation4 + $0x618] sm:$0xff] }
 0x16b   : > { %2336 = vmatpush1.bf16.msra.mxu0 %v3066_v45  ;;  %1391 = vmatprep.mubr.f32.mxu0 %v3070_v50  ;;  %v3145_v3 = vpack.c.bf16 %v812_v57, %v804_v56  ;;  %v3173_v56 = vpack.c.bf16 %v846_v35, %v838_v33  ;;  %v3175_v57 = vpack.c.bf16 %v861_v41, %v853_v39  ;;  %v878_v33 = vld [vmem:[#allocation4 + $0x550] sm:$0xff]  ;;  %v885_v35 = vld [vmem:[#allocation4 + $0x588] sm:$0xff]  ;;  %v887_v41 = vld [vmem:[#allocation4 + $0x598] sm:$0xff] }
 0x16c   : > { %2274 = vmatprep.subr.bf16.mxu1 %v3072_v51  ;;  %2338 = vmatprep.subr.bf16.mxu0 %v3074_v52  ;;  %3734 = vst [vmem:[#allocation11_spill] sm:$0xff] %v3190_v27  ;;  %v893_v39 = vld [vmem:[#allocation4 + $0x5c8] sm:$0xff]  ;;  %3735 = vst [vmem:[#allocation12_spill] sm:$0xff] %v3193_v48  ;;  %v3197_v60 = vpack.c.bf16 %v878_v33, %v870_v26  ;;  %v884_v63 = vld [vmem:[#allocation4 + $0x580] sm:$0xff]  ;;  %v3202_v9 = vpack.c.bf16 %v895_v42, %v887_v41 }
 0x16d   : > { %v3199_v62 = vpack.c.bf16 %v893_v39, %v885_v35  ;;  %v892_v1 = vld [vmem:[#allocation4 + $0x5c0] sm:$0xff]  ;;  %v911_v21 = vld [vmem:[#allocation4 + $0x658] sm:$0xff]  ;;  %v3209_v26 = vpack.c.bf16 %v894_v11, %v886_v2  ;;  %v3211_v33 = vpack.c.bf16 %v909_v37, %v901_v12  ;;  %v902_v41 = vld [vmem:[#allocation4 + $0x610] sm:$0xff] }
 0x16e   : > { %2276 = vmatpush1.bf16.msra.mxu1 %v3080_v58  ;;  %3736 = vst [vmem:[#allocation13_spill] sm:$0xff] %v3197_v60  ;;  %3738 = vst [vmem:[#allocation15_spill] sm:$0xff] %v3202_v9  ;;  %v900_v35 = vld [vmem:[#allocation4 + $0x600] sm:$0xff]  ;;  %v3214_v42 = vpack.c.bf16 %v911_v21, %v903_v20  ;;  %v918_v20 = vld [vmem:[#allocation4 + $0x690] sm:$0xff] }
 0x16f   : > { %2340 = vmatpush1.bf16.msra.mxu0 %v3084_v46  ;;  %2278 = vmatprep.subr.bf16.mxu1 %v3086_v59  ;;  %3737 = vst [vmem:[#allocation14_spill] sm:$0xff] %v3199_v62  ;;  %3740 = vst [vmem:[#allocation17_spill] sm:$0xff] %v3209_v26  ;;  %v908_v39 = vld [vmem:[#allocation4 + $0x640] sm:$0xff] }
 0x170   : > { %2342 = vmatprep.subr.bf16.mxu0 %v3090_v36  ;;  %3741 = vst [vmem:[#allocation18_spill] sm:$0xff] %v3211_v33  ;;  %3742 = vst [vmem:[#allocation19_spill] sm:$0xff] %v3214_v42  ;;  %v916_v11 = vld [vmem:[#allocation4 + $0x680] sm:$0xff] }
 0x171   : > { %v924_v12 = vld [vmem:[#allocation4 + $0x6c0] sm:$0xff] }
 0x172   : > { %2280 = vmatpush1.bf16.msra.mxu1 %v3093_v4 }
 0x173   : > { %2344 = vmatpush1.bf16.msra.mxu0 %v3097_v5  ;;  %2282 = vmatprep.subr.bf16.mxu1 %v3099_v6 }
 0x174   : > { %2346 = vmatprep.subr.bf16.mxu0 %v3102_v10 }
 0x176   : > { %2284 = vmatpush1.bf16.msra.mxu1 %v3105_v16 }
 0x177   : > { %2348 = vmatpush1.bf16.msra.mxu0 %v3109_v17  ;;  %2286 = vmatprep.subr.bf16.mxu1 %v3111_v18 }
 0x178   : > { %2350 = vmatprep.subr.bf16.mxu0 %v3114_v22 }
 0x17a   : > { %2288 = vmatpush1.bf16.msra.mxu1 %v3117_v28 }
 0x17b   : > { %2352 = vmatpush1.bf16.msra.mxu0 %v3121_v29  ;;  %2290 = vmatprep.subr.bf16.mxu1 %v3123_v30 }
 0x17c   : > { %2354 = vmatprep.subr.bf16.mxu0 %v3128_v38 }
 0x17e   : > { %2292 = vmatpush1.bf16.msra.mxu1 %v3133_v53 }
 0x17f   : > { %2356 = vmatpush1.bf16.msra.mxu0 %v3137_v54  ;;  %2294 = vmatprep.subr.bf16.mxu1 %v3139_v55 }
 0x180   : > { %2358 = vmatprep.subr.bf16.mxu0 %v3142_v61 }
 0x182   : > { %2296 = vmatpush1.bf16.msra.mxu1 %v3145_v3 }
 0x183   : > { %2360 = vmatpush1.bf16.msra.mxu0 %v3149_v7  ;;  %2298 = vmatprep.subr.bf16.mxu1 %v3151_v8 }
 0x184   : > { %2362 = vmatprep.subr.bf16.mxu0 %v3154_v13 }
 0x186   : > { %2300 = vmatpush1.bf16.msra.mxu1 %v3157_v23 }
 0x187   : > { %2364 = vmatpush1.bf16.msra.mxu0 %v3161_v24  ;;  %2302 = vmatprep.subr.bf16.mxu1 %v3163_v25 }
 0x188   : > { %2366 = vmatprep.subr.bf16.mxu0 %v3166_v34 }
 0x18a   : > { %2304 = vmatpush1.bf16.msra.mxu1 %v3169_v49 }
 0x18b   : > { %2368 = vmatpush1.bf16.msra.mxu0 %v3173_v56  ;;  %2306 = vmatprep.subr.bf16.mxu1 %v3175_v57 }
 0x18c   : > { %2370 = vmatprep.subr.bf16.mxu0 %v3178_v0 }
 0x18e   : > { %2308 = vmatpush1.bf16.msra.mxu1 %v3181_v14 }
 0x18f   : > { %2372 = vmatpush1.bf16.msra.mxu0 %v3185_v15  ;;  %2310 = vmatprep.subr.bf16.mxu1 %v3187_v19  ;;  %v3205_v15 = vpack.c.bf16 %v892_v1, %v884_v63  ;;  %v917_v19 = vld [vmem:[#allocation4 + $0x688] sm:$0xff]  ;;  %v919_v63 = vld [vmem:[#allocation4 + $0x698] sm:$0xff] }
 0x190   : > { %2374 = vmatprep.subr.bf16.mxu0 %v3190_v27  ;;  %v910_v27 = vld [vmem:[#allocation4 + $0x650] sm:$0xff]  ;;  %v927_v1 = vld [vmem:[#allocation4 + $0x6d8] sm:$0xff] }
 0x191   : > { %3739 = vst [vmem:[#allocation16_spill] sm:$0xff] %v3205_v15  ;;  %v3221_v37 = vpack.c.bf16 %v910_v27, %v902_v41  ;;  %v3226_v21 = vpack.c.bf16 %v927_v1, %v919_v63  ;;  %v940_v41 = vld [vmem:[#allocation4 + $0x740] sm:$0xff]  ;;  %v934_v63 = vld [vmem:[#allocation4 + $0x710] sm:$0xff] }
 0x192   : > { %2312 = vmatpush1.bf16.msra.mxu1 %v3193_v48  ;;  %v925_v48 = vld [vmem:[#allocation4 + $0x6c8] sm:$0xff] }
 0x193   : > { %2376 = vmatpush1.bf16.msra.mxu0 %v3197_v60  ;;  %2314 = vmatprep.subr.bf16.mxu1 %v3199_v62  ;;  %v3217_v60 = vpack.c.bf16 %v908_v39, %v900_v35  ;;  %3744 = vst [vmem:[#allocation21_spill] sm:$0xff] %v3221_v37  ;;  %v3223_v2 = vpack.c.bf16 %v925_v48, %v917_v19  ;;  %3746 = vst [vmem:[#allocation23_spill] sm:$0xff] %v3226_v21  ;;  %v933_v62 = vld [vmem:[#allocation4 + $0x708] sm:$0xff]  ;;  %v935_v35 = vld [vmem:[#allocation4 + $0x718] sm:$0xff] }
 0x194   : > { %2378 = vmatprep.subr.bf16.mxu0 %v3202_v9  ;;  %v926_v9 = vld [vmem:[#allocation4 + $0x6d0] sm:$0xff]  ;;  %v943_v39 = vld [vmem:[#allocation4 + $0x758] sm:$0xff]  ;;  %v932_v48 = vld [vmem:[#allocation4 + $0x700] sm:$0xff] }
 0x195   : > { %3743 = vst [vmem:[#allocation20_spill] sm:$0xff] %v3217_v60  ;;  %3745 = vst [vmem:[#allocation22_spill] sm:$0xff] %v3223_v2  ;;  %v3233_v19 = vpack.c.bf16 %v926_v9, %v918_v20  ;;  %v3238_v1 = vpack.c.bf16 %v943_v39, %v935_v35  ;;  %v948_v9 = vld [vmem:[#allocation4 + $0x780] sm:$0xff]  ;;  %v950_v35 = vld [vmem:[#allocation4 + $0x790] sm:$0xff] }
 0x196   : > { %2316 = vmatpush1.bf16.msra.mxu1 %v3205_v15  ;;  %v941_v15 = vld [vmem:[#allocation4 + $0x748] sm:$0xff]  ;;  %v956_v20 = vld [vmem:[#allocation4 + $0x7c0] sm:$0xff] }
 0x197   : > { %2380 = vmatpush1.bf16.msra.mxu0 %v3209_v26  ;;  %2318 = vmatprep.subr.bf16.mxu1 %v3211_v33  ;;  %v3229_v26 = vpack.c.bf16 %v924_v12, %v916_v11  ;;  %3748 = vst [vmem:[#allocation25_spill] sm:$0xff] %v3233_v19  ;;  %v3235_v27 = vpack.c.bf16 %v941_v15, %v933_v62  ;;  %3750 = vst [vmem:[#allocation27_spill] sm:$0xff] %v3238_v1  ;;  %v949_v33 = vld [vmem:[#allocation4 + $0x788] sm:$0xff]  ;;  %v951_v11 = vld [vmem:[#allocation4 + $0x798] sm:$0xff] }
 0x198   : > { %2382 = vmatprep.subr.bf16.mxu0 %v3214_v42  ;;  %v942_v42 = vld [vmem:[#allocation4 + $0x750] sm:$0xff]  ;;  %v959_v12 = vld [vmem:[#allocation4 + $0x7d8] sm:$0xff] }
 0x199   : > { %3747 = vst [vmem:[#allocation24_spill] sm:$0xff] %v3229_v26  ;;  %3749 = vst [vmem:[#allocation26_spill] sm:$0xff] %v3235_v27  ;;  %v3245_v15 = vpack.c.bf16 %v942_v42, %v934_v63  ;;  %v3250_v39 = vpack.c.bf16 %v959_v12, %v951_v11  ;;  %v712_v42 = vld [vmem:[#allocation4 + $0x20] sm:$0xff]  ;;  %v714_v12 = vld [vmem:[#allocation4 + $0x30] sm:$0xff] }
 0x19a   : > { %2320 = vmatpush1.bf16.msra.mxu1 %v3217_v60  ;;  %v957_v60 = vld [vmem:[#allocation4 + $0x7c8] sm:$0xff]  ;;  %v720_v63 = vld [vmem:[#allocation4 + $0x60] sm:$0xff] }
 0x19b   : > { %2384 = vmatpush1.bf16.msra.mxu0 %v3221_v37  ;;  %2322 = vmatprep.subr.bf16.mxu1 %v3223_v2  ;;  %v3241_v37 = vpack.c.bf16 %v940_v41, %v932_v48  ;;  %v3247_v62 = vpack.c.bf16 %v957_v60, %v949_v33  ;;  %v713_v2 = vld [vmem:[#allocation4 + $0x28] sm:$0xff]  ;;  %v715_v48 = vld [vmem:[#allocation4 + $0x38] sm:$0xff] }
 0x19c   : > { %2386 = vmatprep.subr.bf16.mxu0 %v3226_v21  ;;  %v958_v21 = vld [vmem:[#allocation4 + $0x7d0] sm:$0xff]  ;;  %v723_v41 = vld [vmem:[#allocation4 + $0x78] sm:$0xff] }
 0x19d   : > { %3751 = vst [vmem:[#allocation28_spill] sm:$0xff] %v3241_v37  ;;  %3752 = vst [vmem:[#allocation29_spill] sm:$0xff] %v3247_v62  ;;  %v3257_v60 = vpack.c.bf16 %v958_v21, %v950_v35  ;;  %v3262_v11 = vpack.c.bf16 %v723_v41, %v715_v48  ;;  %v728_v21 = vld [vmem:[#allocation4 + $0xa0] sm:$0xff]  ;;  %v730_v48 = vld [vmem:[#allocation4 + $0xb0] sm:$0xff] }
 0x19e   : > { %2324 = vmatpush1.bf16.msra.mxu1 %v3229_v26  ;;  %v721_v26 = vld [vmem:[#allocation4 + $0x68] sm:$0xff]  ;;  %v736_v35 = vld [vmem:[#allocation4 + $0xe0] sm:$0xff] }
 0x19f   : > { %2388 = vmatpush1.bf16.msra.mxu0 %v3233_v19  ;;  %2326 = vmatprep.subr.bf16.mxu1 %v3235_v27  ;;  %v3253_v19 = vpack.c.bf16 %v956_v20, %v948_v9  ;;  %3754 = vst [vmem:[#allocation31_spill] sm:$0xff] %v3257_v60  ;;  %v3259_v33 = vpack.c.bf16 %v721_v26, %v713_v2  ;;  %3756 = vst [vmem:[#allocation33_spill] sm:$0xff] %v3262_v11  ;;  %v729_v27 = vld [vmem:[#allocation4 + $0xa8] sm:$0xff]  ;;  %v731_v20 = vld [vmem:[#allocation4 + $0xb8] sm:$0xff] }
 0x1a0   : > { %2390 = vmatprep.subr.bf16.mxu0 %v3238_v1  ;;  %v722_v1 = vld [vmem:[#allocation4 + $0x70] sm:$0xff]  ;;  %v3265_v9 = vpack.c.bf16 %v720_v63, %v712_v42  ;;  %v3269_v26 = vadd.f32 %v3050_v40, %v3062_v44  ;;  %v745_v63 = vld [vmem:[#allocation4 + $0x128] sm:$0xff]  ;;  %v747_v44 = vld [vmem:[#allocation4 + $0x138] sm:$0xff] }
 0x1a1   : > { %3753 = vst [vmem:[#allocation30_spill] sm:$0xff] %v3253_v19  ;;  %3755 = vst [vmem:[#allocation32_spill] sm:$0xff] %v3259_v33  ;;  %v3273_v2 = vpack.c.bf16 %v722_v1, %v714_v12  ;;  %v738_v42 = vld [vmem:[#allocation4 + $0xf0] sm:$0xff]  ;;  %v3283_v1 = vpack.c.bf16 %v736_v35, %v728_v21  ;;  %v744_v12 = vld [vmem:[#allocation4 + $0x120] sm:$0xff] }
 0x1a2   : > { %2328 = vmatpush1.bf16.msra.mxu1 %v3241_v37  ;;  %v737_v37 = vld [vmem:[#allocation4 + $0xe8] sm:$0xff]  ;;  %3757 = vst [vmem:[#allocation34_spill] sm:$0xff] %v3265_v9 }
 0x1a3   : > { %2392 = vmatpush1.bf16.msra.mxu0 %v3245_v15  ;;  %2330 = vmatprep.subr.bf16.mxu1 %v3247_v62  ;;  %v739_v62 = vld [vmem:[#allocation4 + $0xf8] sm:$0xff]  ;;  %3758 = vst [vmem:[#allocation35_spill] sm:$0xff] %v3273_v2  ;;  %v3276_v41 = vpack.c.bf16 %v737_v37, %v729_v27  ;;  %3761 = vst [vmem:[#allocation38_spill] sm:$0xff] %v3283_v1  ;;  %v3287_v37 = vpack.c.bf16 %v738_v42, %v730_v48  ;;  %v761_v21 = vld [vmem:[#allocation4 + $0x1a8] sm:$0xff] }
 0x1a4   : > { %2394 = vmatprep.subr.bf16.mxu0 %v3250_v39  ;;  %v3279_v40 = vpack.c.bf16 %v739_v62, %v731_v20  ;;  %v746_v62 = vld [vmem:[#allocation4 + $0x130] sm:$0xff]  ;;  %v769_v35 = vld [vmem:[#allocation4 + $0x1e8] sm:$0xff]  ;;  %v768_v42 = vld [vmem:[#allocation4 + $0x1e0] sm:$0xff] }
 0x1a5   : > { %3759 = vst [vmem:[#allocation36_spill] sm:$0xff] %v3276_v41  ;;  %3762 = vst [vmem:[#allocation39_spill] sm:$0xff] %v3287_v37  ;;  %v3303_v48 = vpack.c.bf16 %v769_v35, %v761_v21  ;;  %v776_v21 = vld [vmem:[#allocation4 + $0x220] sm:$0xff] }
 0x1a6   : > { %2332 = vmatpush1.bf16.msra.mxu1 %v3253_v19  ;;  %v753_v19 = vld [vmem:[#allocation4 + $0x168] sm:$0xff]  ;;  %3760 = vst [vmem:[#allocation37_spill] sm:$0xff] %v3279_v40 }
 0x1a7   : > { %2396 = vmatpush1.bf16.msra.mxu0 %v3257_v60  ;;  %2398 = vmatprep.subr.bf16.mxu1 %v3259_v33  ;;  %v755_v60 = vld [vmem:[#allocation4 + $0x178] sm:$0xff]  ;;  %v3289_v27 = vpack.c.bf16 %v753_v19, %v745_v63  ;;  %3767 = vst [vmem:[#allocation44_spill] sm:$0xff] %v3303_v48  ;;  %v762_v63 = vld [vmem:[#allocation4 + $0x1b0] sm:$0xff] }
 0x1a8   : > { %2462 = vmatprep.subr.bf16.mxu0 %v3262_v11  ;;  %v752_v11 = vld [vmem:[#allocation4 + $0x160] sm:$0xff]  ;;  %v3293_v20 = vpack.c.bf16 %v755_v60, %v747_v44  ;;  %v763_v33 = vld [vmem:[#allocation4 + $0x1b8] sm:$0xff] }
 0x1a9   : > { %1321 = vmatmul.mubr.f32.vlgmr.msra.gmra.mrb[4].mxu1 %v3269_v26  ;;  %3763 = vst [vmem:[#allocation40_spill] sm:$0xff] %v3289_v27  ;;  %v3297_v19 = vpack.c.bf16 %v752_v11, %v744_v12  ;;  %v760_v60 = vld [vmem:[#allocation4 + $0x1a0] sm:$0xff]  ;;  %v779_v11 = vld [vmem:[#allocation4 + $0x238] sm:$0xff] }
 0x1aa   : > { %1392 = vmatmul.mubr.f32.vlgmr.msra.gmra.mrb[10].mxu0 %v3269_v26  ;;  %2400 = vmatpush1.bf16.msra.mxu1 %v3265_v9  ;;  %3764 = vst [vmem:[#allocation41_spill] sm:$0xff] %v3293_v20  ;;  %v754_v9 = vld [vmem:[#allocation4 + $0x170] sm:$0xff]  ;;  %v787_v12 = vld [vmem:[#allocation4 + $0x278] sm:$0xff] }
 0x1ab   : > { %1462 = vmatprep.mubr.f32.mxu1 %v3070_v50  ;;  %2464 = vmatpush1.bf16.msra.mxu0 %v3273_v2  ;;  %v771_v2 = vld [vmem:[#allocation4 + $0x1f8] sm:$0xff]  ;;  %3765 = vst [vmem:[#allocation42_spill] sm:$0xff] %v3297_v19  ;;  %v3318_v35 = vpack.c.bf16 %v787_v12, %v779_v11  ;;  %v794_v11 = vld [vmem:[#allocation4 + $0x2b0] sm:$0xff] }
 0x1ac   : > { %1533 = vmatprep.mubr.f32.mxu0 %v3070_v50  ;;  %2402 = vmatprep.subr.bf16.mxu1 %v3276_v41  ;;  %v3301_v50 = vpack.c.bf16 %v754_v9, %v746_v62  ;;  %v3306_v44 = vpack.c.bf16 %v771_v2, %v763_v33  ;;  %v777_v41 = vld [vmem:[#allocation4 + $0x228] sm:$0xff]  ;;  %v784_v33 = vld [vmem:[#allocation4 + $0x260] sm:$0xff]  ;;  %v778_v2 = vld [vmem:[#allocation4 + $0x230] sm:$0xff] }
 0x1ad   : > { %2466 = vmatprep.subr.bf16.mxu0 %v3279_v40  ;;  %v770_v40 = vld [vmem:[#allocation4 + $0x1f0] sm:$0xff]  ;;  %3772 = vst [vmem:[#allocation49_spill] sm:$0xff] %v3318_v35 }
 0x1ae   : > { %2404 = vmatpush1.bf16.msra.mxu1 %v3283_v1  ;;  %3766 = vst [vmem:[#allocation43_spill] sm:$0xff] %v3301_v50  ;;  %3768 = vst [vmem:[#allocation45_spill] sm:$0xff] %v3306_v44  ;;  %v785_v1 = vld [vmem:[#allocation4 + $0x268] sm:$0xff]  ;;  %v3313_v9 = vpack.c.bf16 %v770_v40, %v762_v63  ;;  %v800_v63 = vld [vmem:[#allocation4 + $0x2e0] sm:$0xff] }
 0x1af   : > { %2468 = vmatpush1.bf16.msra.mxu0 %v3287_v37  ;;  %2406 = vmatprep.subr.bf16.mxu1 %v3289_v27  ;;  %v3309_v37 = vpack.c.bf16 %v768_v42, %v760_v60  ;;  %v3315_v62 = vpack.c.bf16 %v785_v1, %v777_v41  ;;  %v793_v27 = vld [vmem:[#allocation4 + $0x2a8] sm:$0xff]  ;;  %v795_v60 = vld [vmem:[#allocation4 + $0x2b8] sm:$0xff]  ;;  %v792_v1 = vld [vmem:[#allocation4 + $0x2a0] sm:$0xff] }
 0x1b0   : > { %2470 = vmatprep.subr.bf16.mxu0 %v3293_v20  ;;  %3770 = vst [vmem:[#allocation47_spill] sm:$0xff] %v3313_v9  ;;  %v786_v20 = vld [vmem:[#allocation4 + $0x270] sm:$0xff]  ;;  %v803_v42 = vld [vmem:[#allocation4 + $0x2f8] sm:$0xff] }
 0x1b1   : > { %3769 = vst [vmem:[#allocation46_spill] sm:$0xff] %v3309_v37  ;;  %3771 = vst [vmem:[#allocation48_spill] sm:$0xff] %v3315_v62  ;;  %v3325_v41 = vpack.c.bf16 %v786_v20, %v778_v2  ;;  %v3330_v12 = vpack.c.bf16 %v803_v42, %v795_v60  ;;  %v816_v2 = vld [vmem:[#allocation4 + $0x360] sm:$0xff]  ;;  %v810_v60 = vld [vmem:[#allocation4 + $0x330] sm:$0xff] }
 0x1b2   : > { %2408 = vmatpush1.bf16.msra.mxu1 %v3297_v19  ;;  %v801_v19 = vld [vmem:[#allocation4 + $0x2e8] sm:$0xff] }
 0x1b3   : > { %2472 = vmatpush1.bf16.msra.mxu0 %v3301_v50  ;;  %2410 = vmatprep.subr.bf16.mxu1 %v3303_v48  ;;  %v3321_v50 = vpack.c.bf16 %v784_v33, %v776_v21  ;;  %3774 = vst [vmem:[#allocation51_spill] sm:$0xff] %v3325_v41  ;;  %v3327_v40 = vpack.c.bf16 %v801_v19, %v793_v27  ;;  %3776 = vst [vmem:[#allocation53_spill] sm:$0xff] %v3330_v12  ;;  %v809_v48 = vld [vmem:[#allocation4 + $0x328] sm:$0xff]  ;;  %v811_v21 = vld [vmem:[#allocation4 + $0x338] sm:$0xff] }
 0x1b4   : > { %2474 = vmatprep.subr.bf16.mxu0 %v3306_v44  ;;  %v802_v44 = vld [vmem:[#allocation4 + $0x2f0] sm:$0xff]  ;;  %v819_v33 = vld [vmem:[#allocation4 + $0x378] sm:$0xff]  ;;  %v808_v19 = vld [vmem:[#allocation4 + $0x320] sm:$0xff] }
 0x1b5   : > { %3773 = vst [vmem:[#allocation50_spill] sm:$0xff] %v3321_v50  ;;  %3775 = vst [vmem:[#allocation52_spill] sm:$0xff] %v3327_v40  ;;  %v3337_v27 = vpack.c.bf16 %v802_v44, %v794_v11  ;;  %v3342_v42 = vpack.c.bf16 %v819_v33, %v811_v21  ;;  %v824_v44 = vld [vmem:[#allocation4 + $0x3a0] sm:$0xff]  ;;  %v826_v21 = vld [vmem:[#allocation4 + $0x3b0] sm:$0xff] }
 0x1b6   : > { %2412 = vmatpush1.bf16.msra.mxu1 %v3309_v37  ;;  %v817_v37 = vld [vmem:[#allocation4 + $0x368] sm:$0xff]  ;;  %v832_v11 = vld [vmem:[#allocation4 + $0x3e0] sm:$0xff] }
 0x1b7   : > { %2476 = vmatpush1.bf16.msra.mxu0 %v3313_v9  ;;  %2414 = vmatprep.subr.bf16.mxu1 %v3315_v62  ;;  %v3333_v9 = vpack.c.bf16 %v800_v63, %v792_v1  ;;  %3778 = vst [vmem:[#allocation55_spill] sm:$0xff] %v3337_v27  ;;  %v3339_v20 = vpack.c.bf16 %v817_v37, %v809_v48  ;;  %3780 = vst [vmem:[#allocation57_spill] sm:$0xff] %v3342_v42  ;;  %v825_v62 = vld [vmem:[#allocation4 + $0x3a8] sm:$0xff]  ;;  %v827_v1 = vld [vmem:[#allocation4 + $0x3b8] sm:$0xff] }
 0x1b8   : > { %2478 = vmatprep.subr.bf16.mxu0 %v3318_v35  ;;  %v818_v35 = vld [vmem:[#allocation4 + $0x370] sm:$0xff]  ;;  %v835_v63 = vld [vmem:[#allocation4 + $0x3f8] sm:$0xff] }
 0x1b9   : > { %3777 = vst [vmem:[#allocation54_spill] sm:$0xff] %v3333_v9  ;;  %3779 = vst [vmem:[#allocation56_spill] sm:$0xff] %v3339_v20  ;;  %v3349_v37 = vpack.c.bf16 %v818_v35, %v810_v60  ;;  %v3354_v33 = vpack.c.bf16 %v835_v63, %v827_v1  ;;  %v840_v35 = vld [vmem:[#allocation4 + $0x420] sm:$0xff]  ;;  %v842_v1 = vld [vmem:[#allocation4 + $0x430] sm:$0xff] }
 0x1ba   : > { %2416 = vmatpush1.bf16.msra.mxu1 %v3321_v50  ;;  %v833_v50 = vld [vmem:[#allocation4 + $0x3e8] sm:$0xff]  ;;  %v848_v60 = vld [vmem:[#allocation4 + $0x460] sm:$0xff] }
 0x1bb   : > { %2480 = vmatpush1.bf16.msra.mxu0 %v3325_v41  ;;  %2418 = vmatprep.subr.bf16.mxu1 %v3327_v40  ;;  %v3345_v41 = vpack.c.bf16 %v816_v2, %v808_v19  ;;  %3782 = vst [vmem:[#allocation59_spill] sm:$0xff] %v3349_v37  ;;  %v3351_v48 = vpack.c.bf16 %v833_v50, %v825_v62  ;;  %3784 = vst [vmem:[#allocation61_spill] sm:$0xff] %v3354_v33  ;;  %v841_v40 = vld [vmem:[#allocation4 + $0x428] sm:$0xff]  ;;  %v843_v19 = vld [vmem:[#allocation4 + $0x438] sm:$0xff] }
 0x1bc   : > { %2482 = vmatprep.subr.bf16.mxu0 %v3330_v12  ;;  %v834_v12 = vld [vmem:[#allocation4 + $0x3f0] sm:$0xff]  ;;  %v851_v2 = vld [vmem:[#allocation4 + $0x478] sm:$0xff] }
 0x1bd   : > { %3781 = vst [vmem:[#allocation58_spill] sm:$0xff] %v3345_v41  ;;  %3783 = vst [vmem:[#allocation60_spill] sm:$0xff] %v3351_v48  ;;  %v3361_v50 = vpack.c.bf16 %v834_v12, %v826_v21  ;;  %v3366_v63 = vpack.c.bf16 %v851_v2, %v843_v19  ;;  %v856_v12 = vld [vmem:[#allocation4 + $0x4a0] sm:$0xff]  ;;  %v858_v19 = vld [vmem:[#allocation4 + $0x4b0] sm:$0xff] }
 0x1be   : > { %2420 = vmatpush1.bf16.msra.mxu1 %v3333_v9  ;;  %v849_v9 = vld [vmem:[#allocation4 + $0x468] sm:$0xff]  ;;  %v864_v21 = vld [vmem:[#allocation4 + $0x4e0] sm:$0xff] }
 0x1bf   : > { %2484 = vmatpush1.bf16.msra.mxu0 %v3337_v27  ;;  %2422 = vmatprep.subr.bf16.mxu1 %v3339_v20  ;;  %v3357_v27 = vpack.c.bf16 %v832_v11, %v824_v44  ;;  %3786 = vst [vmem:[#allocation63_spill] sm:$0xff] %v3361_v50  ;;  %v3363_v62 = vpack.c.bf16 %v849_v9, %v841_v40  ;;  %3788 = vst [vmem:[#allocation65_spill] sm:$0xff] %v3366_v63  ;;  %v857_v20 = vld [vmem:[#allocation4 + $0x4a8] sm:$0xff]  ;;  %v859_v44 = vld [vmem:[#allocation4 + $0x4b8] sm:$0xff] }
 0x1c0   : > { %2486 = vmatprep.subr.bf16.mxu0 %v3342_v42  ;;  %v850_v42 = vld [vmem:[#allocation4 + $0x470] sm:$0xff]  ;;  %v867_v11 = vld [vmem:[#allocation4 + $0x4f8] sm:$0xff] }
 0x1c1   : > { %3785 = vst [vmem:[#allocation62_spill] sm:$0xff] %v3357_v27  ;;  %3787 = vst [vmem:[#allocation64_spill] sm:$0xff] %v3363_v62  ;;  %v3373_v9 = vpack.c.bf16 %v850_v42, %v842_v1  ;;  %v3378_v2 = vpack.c.bf16 %v867_v11, %v859_v44  ;;  %v872_v42 = vld [vmem:[#allocation4 + $0x520] sm:$0xff]  ;;  %v874_v44 = vld [vmem:[#allocation4 + $0x530] sm:$0xff] }
 0x1c2   : > { %2424 = vmatpush1.bf16.msra.mxu1 %v3345_v41  ;;  %v865_v41 = vld [vmem:[#allocation4 + $0x4e8] sm:$0xff]  ;;  %v880_v1 = vld [vmem:[#allocation4 + $0x560] sm:$0xff] }
 0x1c3   : > { %2488 = vmatpush1.bf16.msra.mxu0 %v3349_v37  ;;  %2426 = vmatprep.subr.bf16.mxu1 %v3351_v48  ;;  %v3369_v37 = vpack.c.bf16 %v848_v60, %v840_v35  ;;  %3790 = vst [vmem:[#allocation67_spill] sm:$0xff] %v3373_v9  ;;  %v3375_v40 = vpack.c.bf16 %v865_v41, %v857_v20  ;;  %3792 = vst [vmem:[#allocation69_spill] sm:$0xff] %v3378_v2  ;;  %v873_v48 = vld [vmem:[#allocation4 + $0x528] sm:$0xff]  ;;  %v875_v35 = vld [vmem:[#allocation4 + $0x538] sm:$0xff] }
 0x1c4   : > { %2490 = vmatprep.subr.bf16.mxu0 %v3354_v33  ;;  %v866_v33 = vld [vmem:[#allocation4 + $0x4f0] sm:$0xff]  ;;  %v883_v60 = vld [vmem:[#allocation4 + $0x578] sm:$0xff] }
 0x1c5   : > { %3789 = vst [vmem:[#allocation66_spill] sm:$0xff] %v3369_v37  ;;  %3791 = vst [vmem:[#allocation68_spill] sm:$0xff] %v3375_v40  ;;  %v3385_v41 = vpack.c.bf16 %v866_v33, %v858_v19  ;;  %v3390_v11 = vpack.c.bf16 %v883_v60, %v875_v35  ;;  %v888_v33 = vld [vmem:[#allocation4 + $0x5a0] sm:$0xff]  ;;  %v890_v35 = vld [vmem:[#allocation4 + $0x5b0] sm:$0xff] }
 0x1c6   : > { %2428 = vmatpush1.bf16.msra.mxu1 %v3357_v27  ;;  %v881_v27 = vld [vmem:[#allocation4 + $0x568] sm:$0xff]  ;;  %v896_v19 = vld [vmem:[#allocation4 + $0x5e0] sm:$0xff] }
 0x1c7   : > { %2492 = vmatpush1.bf16.msra.mxu0 %v3361_v50  ;;  %2430 = vmatprep.subr.bf16.mxu1 %v3363_v62  ;;  %v3381_v50 = vpack.c.bf16 %v864_v21, %v856_v12  ;;  %3794 = vst [vmem:[#allocation71_spill] sm:$0xff] %v3385_v41  ;;  %v3387_v20 = vpack.c.bf16 %v881_v27, %v873_v48  ;;  %3796 = vst [vmem:[#allocation73_spill] sm:$0xff] %v3390_v11  ;;  %v889_v62 = vld [vmem:[#allocation4 + $0x5a8] sm:$0xff]  ;;  %v891_v12 = vld [vmem:[#allocation4 + $0x5b8] sm:$0xff] }
 0x1c8   : > { %2494 = vmatprep.subr.bf16.mxu0 %v3366_v63  ;;  %v882_v63 = vld [vmem:[#allocation4 + $0x570] sm:$0xff]  ;;  %v899_v21 = vld [vmem:[#allocation4 + $0x5f8] sm:$0xff] }
 0x1c9   : > { %3793 = vst [vmem:[#allocation70_spill] sm:$0xff] %v3381_v50  ;;  %3795 = vst [vmem:[#allocation72_spill] sm:$0xff] %v3387_v20  ;;  %v3397_v27 = vpack.c.bf16 %v882_v63, %v874_v44  ;;  %v3402_v60 = vpack.c.bf16 %v899_v21, %v891_v12  ;;  %v904_v63 = vld [vmem:[#allocation4 + $0x620] sm:$0xff]  ;;  %v906_v12 = vld [vmem:[#allocation4 + $0x630] sm:$0xff] }
 0x1ca   : > { %2432 = vmatpush1.bf16.msra.mxu1 %v3369_v37  ;;  %v897_v37 = vld [vmem:[#allocation4 + $0x5e8] sm:$0xff]  ;;  %v912_v44 = vld [vmem:[#allocation4 + $0x660] sm:$0xff] }
 0x1cb   : > { %2496 = vmatpush1.bf16.msra.mxu0 %v3373_v9  ;;  %2434 = vmatprep.subr.bf16.mxu1 %v3375_v40  ;;  %v3393_v9 = vpack.c.bf16 %v880_v1, %v872_v42  ;;  %3798 = vst [vmem:[#allocation75_spill] sm:$0xff] %v3397_v27  ;;  %v3399_v48 = vpack.c.bf16 %v897_v37, %v889_v62  ;;  %3800 = vst [vmem:[#allocation77_spill] sm:$0xff] %v3402_v60  ;;  %v905_v40 = vld [vmem:[#allocation4 + $0x628] sm:$0xff]  ;;  %v907_v42 = vld [vmem:[#allocation4 + $0x638] sm:$0xff] }
 0x1cc   : > { %2498 = vmatprep.subr.bf16.mxu0 %v3378_v2  ;;  %v898_v2 = vld [vmem:[#allocation4 + $0x5f0] sm:$0xff]  ;;  %v915_v1 = vld [vmem:[#allocation4 + $0x678] sm:$0xff] }
 0x1cd   : > { %3797 = vst [vmem:[#allocation74_spill] sm:$0xff] %v3393_v9  ;;  %3799 = vst [vmem:[#allocation76_spill] sm:$0xff] %v3399_v48  ;;  %v3409_v37 = vpack.c.bf16 %v898_v2, %v890_v35  ;;  %v3414_v21 = vpack.c.bf16 %v915_v1, %v907_v42  ;;  %v920_v2 = vld [vmem:[#allocation4 + $0x6a0] sm:$0xff]  ;;  %v922_v42 = vld [vmem:[#allocation4 + $0x6b0] sm:$0xff] }
 0x1ce   : > { %2436 = vmatpush1.bf16.msra.mxu1 %v3381_v50  ;;  %v913_v50 = vld [vmem:[#allocation4 + $0x668] sm:$0xff]  ;;  %v928_v35 = vld [vmem:[#allocation4 + $0x6e0] sm:$0xff] }
 0x1cf   : > { %2500 = vmatpush1.bf16.msra.mxu0 %v3385_v41  ;;  %2438 = vmatprep.subr.bf16.mxu1 %v3387_v20  ;;  %v3405_v41 = vpack.c.bf16 %v896_v19, %v888_v33  ;;  %3802 = vst [vmem:[#allocation79_spill] sm:$0xff] %v3409_v37  ;;  %v3411_v62 = vpack.c.bf16 %v913_v50, %v905_v40  ;;  %3804 = vst [vmem:[#allocation81_spill] sm:$0xff] %v3414_v21  ;;  %v921_v20 = vld [vmem:[#allocation4 + $0x6a8] sm:$0xff]  ;;  %v923_v33 = vld [vmem:[#allocation4 + $0x6b8] sm:$0xff] }
 0x1d0   : > { %2502 = vmatprep.subr.bf16.mxu0 %v3390_v11  ;;  %v914_v11 = vld [vmem:[#allocation4 + $0x670] sm:$0xff]  ;;  %v931_v19 = vld [vmem:[#allocation4 + $0x6f8] sm:$0xff] }
 0x1d1   : > { %3801 = vst [vmem:[#allocation78_spill] sm:$0xff] %v3405_v41  ;;  %3803 = vst [vmem:[#allocation80_spill] sm:$0xff] %v3411_v62  ;;  %v3421_v50 = vpack.c.bf16 %v914_v11, %v906_v12  ;;  %v3426_v1 = vpack.c.bf16 %v931_v19, %v923_v33  ;;  %v936_v11 = vld [vmem:[#allocation4 + $0x720] sm:$0xff]  ;;  %v938_v33 = vld [vmem:[#allocation4 + $0x730] sm:$0xff] }
 0x1d2   : > { %2440 = vmatpush1.bf16.msra.mxu1 %v3393_v9  ;;  %v929_v9 = vld [vmem:[#allocation4 + $0x6e8] sm:$0xff]  ;;  %v944_v12 = vld [vmem:[#allocation4 + $0x760] sm:$0xff] }
 0x1d3   : > { %2504 = vmatpush1.bf16.msra.mxu0 %v3397_v27  ;;  %2442 = vmatprep.subr.bf16.mxu1 %v3399_v48  ;;  %v3417_v27 = vpack.c.bf16 %v912_v44, %v904_v63  ;;  %3806 = vst [vmem:[#allocation83_spill] sm:$0xff] %v3421_v50  ;;  %v3423_v40 = vpack.c.bf16 %v929_v9, %v921_v20  ;;  %3807 = vst [vmem:[#allocation84_spill] sm:$0xff] %v3426_v1  ;;  %v937_v48 = vld [vmem:[#allocation4 + $0x728] sm:$0xff]  ;;  %v939_v63 = vld [vmem:[#allocation4 + $0x738] sm:$0xff] }
 0x1d4   : > { %2506 = vmatprep.subr.bf16.mxu0 %v3402_v60  ;;  %v930_v60 = vld [vmem:[#allocation4 + $0x6f0] sm:$0xff]  ;;  %v947_v44 = vld [vmem:[#allocation4 + $0x778] sm:$0xff] }
 0x1d5   : > { %3805 = vst [vmem:[#allocation82_spill] sm:$0xff] %v3417_v27  ;;  %v3433_v9 = vpack.c.bf16 %v930_v60, %v922_v42  ;;  %v3438_v19 = vpack.c.bf16 %v947_v44, %v939_v63  ;;  %v952_v60 = vld [vmem:[#allocation4 + $0x7a0] sm:$0xff]  ;;  %v954_v44 = vld [vmem:[#allocation4 + $0x7b0] sm:$0xff] }
 0x1d6   : > { %2444 = vmatpush1.bf16.msra.mxu1 %v3405_v41  ;;  %v945_v41 = vld [vmem:[#allocation4 + $0x768] sm:$0xff]  ;;  %v960_v42 = vld [vmem:[#allocation4 + $0x7e0] sm:$0xff] }
 0x1d7   : > { %2508 = vmatpush1.bf16.msra.mxu0 %v3409_v37  ;;  %2446 = vmatprep.subr.bf16.mxu1 %v3411_v62  ;;  %v3429_v37 = vpack.c.bf16 %v928_v35, %v920_v2  ;;  %v3435_v20 = vpack.c.bf16 %v945_v41, %v937_v48  ;;  %v953_v62 = vld [vmem:[#allocation4 + $0x7a8] sm:$0xff]  ;;  %v955_v2 = vld [vmem:[#allocation4 + $0x7b8] sm:$0xff] }
 0x1d8   : > { %2510 = vmatprep.subr.bf16.mxu0 %v3414_v21  ;;  %v946_v21 = vld [vmem:[#allocation4 + $0x770] sm:$0xff]  ;;  %v963_v35 = vld [vmem:[#allocation4 + $0x7f8] sm:$0xff] }
 0x1d9   : > { %v3445_v41 = vpack.c.bf16 %v946_v21, %v938_v33  ;;  %v3450_v63 = vpack.c.bf16 %v963_v35, %v955_v2  ;;  %v3848_v33 = vld [vmem:[#allocation48_spill] sm:$0xff]  ;;  %v3849_v2 = vld [vmem:[#allocation49_spill] sm:$0xff]  ;;  %v3850_v35 = vld [vmem:[#allocation50_spill] sm:$0xff] }
 0x1da   : > { %2448 = vmatpush1.bf16.msra.mxu1 %v3417_v27  ;;  %v961_v27 = vld [vmem:[#allocation4 + $0x7e8] sm:$0xff] }
 0x1db   : > { %2512 = vmatpush1.bf16.msra.mxu0 %v3421_v50  ;;  %2450 = vmatprep.subr.bf16.mxu1 %v3423_v40  ;;  %v3441_v50 = vpack.c.bf16 %v944_v12, %v936_v11  ;;  %v3447_v48 = vpack.c.bf16 %v961_v27, %v953_v62  ;;  %v3453_v11 = vpack.c.bf16 %v960_v42, %v952_v60  ;;  %v3460_v27 = vpop.permute.xlu1 %356  ;;  %v3847_v12 = vld [vmem:[#allocation47_spill] sm:$0xff]  ;;  %v3852_v42 = vld [vmem:[#allocation52_spill] sm:$0xff] }
 0x1dc   : > { %2514 = vmatprep.subr.bf16.mxu0 %v3426_v1  ;;  %v962_v1 = vld [vmem:[#allocation4 + $0x7f0] sm:$0xff]  ;;  %v3468_v62 = vadd.f32 %v3130_v47, %v3460_v27  ;;  %v3826_v47 = vld [vmem:[#allocation27_spill] sm:$0xff] }
 0x1dd   : > { %v3457_v21 = vpack.c.bf16 %v962_v1, %v954_v44  ;;  %v3846_v1 = vld [vmem:[#allocation46_spill] sm:$0xff]  ;;  %v3851_v60 = vld [vmem:[#allocation51_spill] sm:$0xff] }
 0x1de   : > { %2452 = vmatpush1.bf16.msra.mxu1 %v3429_v37 }
 0x1df   : > { %2516 = vmatpush1.bf16.msra.mxu0 %v3433_v9  ;;  %2454 = vmatprep.subr.bf16.mxu1 %v3435_v20 }
 0x1e0   : > { %2518 = vmatprep.subr.bf16.mxu0 %v3438_v19 }
 0x1e2   : > { %2456 = vmatpush1.bf16.msra.mxu1 %v3441_v50 }
 0x1e3   : > { %2520 = vmatpush1.bf16.msra.mxu0 %v3445_v41  ;;  %2458 = vmatprep.subr.bf16.mxu1 %v3447_v48 }
 0x1e4   : > { %2522 = vmatprep.subr.bf16.mxu0 %v3450_v63 }
 0x1e6   : > { %2460 = vmatpush1.bf16.msra.mxu1 %v3453_v11 }
 0x1e7   : > { %2524 = vmatpush1.bf16.msra.mxu0 %v3457_v21  ;;  %2526 = vmatprep.subr.bf16.mxu1 %v3056_v31 }
 0x1e8   : > { %2590 = vmatprep.subr.bf16.mxu0 %v3058_v32 }
 0x1e9   : > { %1463 = vmatmul.mubr.f32.vlgmr.msra.gmra.mrb[6].mxu1 %v3269_v26 }
 0x1ea   : > { %1534 = vmatmul.mubr.f32.vlgmr.msra.gmra.mrb[12].mxu0 %v3269_v26  ;;  %2528 = vmatpush1.bf16.msra.mxu1 %v3060_v43  ;;  %v3845_v26 = vld [vmem:[#allocation45_spill] sm:$0xff] }
 0x1eb   : > { %2592 = vmatpush1.bf16.msra.mxu0 %v3066_v45  ;;  %2530 = vmatprep.subr.bf16.mxu1 %v3072_v51  ;;  %v3808_v51 = vld [vmem:[#allocation9_spill] sm:$0xff] }
 0x1ec   : > { %2594 = vmatprep.subr.bf16.mxu0 %v3074_v52  ;;  %1612 = vmatprep.mubr.f32.mxu1 %v3468_v62  ;;  %v3809_v52 = vld [vmem:[#allocation10_spill] sm:$0xff] }
 0x1ed   : > { %1683 = vmatprep.mubr.f32.mxu0 %v3468_v62 }
 0x1ee   : > { %2532 = vmatpush1.bf16.msra.mxu1 %v3080_v58  ;;  %v3810_v58 = vld [vmem:[#allocation11_spill] sm:$0xff] }
 0x1ef   : > { %2596 = vmatpush1.bf16.msra.mxu0 %v3084_v46  ;;  %2534 = vmatprep.subr.bf16.mxu1 %v3086_v59  ;;  %v3811_v46 = vld [vmem:[#allocation12_spill] sm:$0xff]  ;;  %v3812_v59 = vld [vmem:[#allocation13_spill] sm:$0xff] }
 0x1f0   : > { %2598 = vmatprep.subr.bf16.mxu0 %v3090_v36  ;;  %v3813_v36 = vld [vmem:[#allocation14_spill] sm:$0xff] }
 0x1f2   : > { %2536 = vmatpush1.bf16.msra.mxu1 %v3093_v4  ;;  %v3814_v4 = vld [vmem:[#allocation15_spill] sm:$0xff] }
 0x1f3   : > { %2600 = vmatpush1.bf16.msra.mxu0 %v3097_v5  ;;  %2538 = vmatprep.subr.bf16.mxu1 %v3099_v6  ;;  %v3815_v5 = vld [vmem:[#allocation16_spill] sm:$0xff]  ;;  %v3816_v6 = vld [vmem:[#allocation17_spill] sm:$0xff] }
 0x1f4   : > { %2602 = vmatprep.subr.bf16.mxu0 %v3102_v10  ;;  %v3817_v10 = vld [vmem:[#allocation18_spill] sm:$0xff] }
 0x1f6   : > { %2540 = vmatpush1.bf16.msra.mxu1 %v3105_v16  ;;  %v3818_v16 = vld [vmem:[#allocation19_spill] sm:$0xff] }
 0x1f7   : > { %2604 = vmatpush1.bf16.msra.mxu0 %v3109_v17  ;;  %2542 = vmatprep.subr.bf16.mxu1 %v3111_v18  ;;  %v3819_v17 = vld [vmem:[#allocation20_spill] sm:$0xff]  ;;  %v3820_v18 = vld [vmem:[#allocation21_spill] sm:$0xff] }
 0x1f8   : > { %2606 = vmatprep.subr.bf16.mxu0 %v3114_v22  ;;  %v3821_v22 = vld [vmem:[#allocation22_spill] sm:$0xff] }
 0x1fa   : > { %2544 = vmatpush1.bf16.msra.mxu1 %v3117_v28  ;;  %v3822_v28 = vld [vmem:[#allocation23_spill] sm:$0xff] }
 0x1fb   : > { %2608 = vmatpush1.bf16.msra.mxu0 %v3121_v29  ;;  %2546 = vmatprep.subr.bf16.mxu1 %v3123_v30  ;;  %v3823_v29 = vld [vmem:[#allocation24_spill] sm:$0xff]  ;;  %v3824_v30 = vld [vmem:[#allocation25_spill] sm:$0xff] }
 0x1fc   : > { %v1030_v31 = vpop.f32.mrb[0].mxu1  ;;  %v1101_v32 = vpop.f32.mrb[6].mxu0  ;;  %2610 = vmatprep.subr.bf16.mxu0 %v3128_v38  ;;  %v3825_v38 = vld [vmem:[#allocation26_spill] sm:$0xff] }
 0x1fd   : > { %1248 = vst [vmem:[%s3497_s11] sm:$0xff] %v1030_v31  ;;  %1250 = vst [vmem:[%s3497_s11 + $0x10] sm:$0xff] %v1101_v32  ;;  %v1032_v43 = vpop.f32.mrb[1].mxu1  ;;  %v1103_v45 = vpop.f32.mrb[7].mxu0 }
 0x1fe   : > { %1249 = vst [vmem:[%s3497_s11 + $0x8] sm:$0xff] %v1032_v43  ;;  %1251 = vst [vmem:[%s3497_s11 + $0x18] sm:$0xff] %v1103_v45  ;;  %2548 = vmatpush1.bf16.msra.mxu1 %v3133_v53  ;;  %v3827_v53 = vld [vmem:[#allocation28_spill] sm:$0xff]  ;;  %v3854_v43 = vld [vmem:[#allocation54_spill] sm:$0xff] }
 0x1ff   : > { %2612 = vmatpush1.bf16.msra.mxu0 %v3137_v54  ;;  %2550 = vmatprep.subr.bf16.mxu1 %v3139_v55  ;;  %v3828_v54 = vld [vmem:[#allocation29_spill] sm:$0xff]  ;;  %v3829_v55 = vld [vmem:[#allocation30_spill] sm:$0xff]  ;;  %v3855_v45 = vld [vmem:[#allocation55_spill] sm:$0xff] }
 0x200   : > { %2614 = vmatprep.subr.bf16.mxu0 %v3142_v61  ;;  %v3830_v61 = vld [vmem:[#allocation8_spill] sm:$0xff] }
 0x202   : > { %2552 = vmatpush1.bf16.msra.mxu1 %v3145_v3  ;;  %v3550_v3 = vadd.f32 %v3830_v61, %v3460_v27  ;;  %v3878_v61 = vld [vmem:[#allocation78_spill] sm:$0xff] }
 0x203   : > { %2616 = vmatpush1.bf16.msra.mxu0 %v3149_v7  ;;  %2554 = vmatprep.subr.bf16.mxu1 %v3151_v8  ;;  %v3831_v7 = vld [vmem:[#allocation31_spill] sm:$0xff]  ;;  %v3832_v8 = vld [vmem:[#allocation32_spill] sm:$0xff] }
 0x204   : > { %2618 = vmatprep.subr.bf16.mxu0 %v3154_v13  ;;  %v3833_v13 = vld [vmem:[#allocation33_spill] sm:$0xff] }
 0x206   : > { %2556 = vmatpush1.bf16.msra.mxu1 %v3157_v23  ;;  %v3834_v23 = vld [vmem:[#allocation34_spill] sm:$0xff] }
 0x207   : > { %2620 = vmatpush1.bf16.msra.mxu0 %v3161_v24  ;;  %2558 = vmatprep.subr.bf16.mxu1 %v3163_v25  ;;  %v3835_v24 = vld [vmem:[#allocation35_spill] sm:$0xff]  ;;  %v3836_v25 = vld [vmem:[#allocation36_spill] sm:$0xff] }
 0x208   : > { %2622 = vmatprep.subr.bf16.mxu0 %v3166_v34  ;;  %v3837_v34 = vld [vmem:[#allocation37_spill] sm:$0xff] }
 0x20a   : > { %2560 = vmatpush1.bf16.msra.mxu1 %v3169_v49  ;;  %v3838_v49 = vld [vmem:[#allocation38_spill] sm:$0xff] }
 0x20b   : > { %2624 = vmatpush1.bf16.msra.mxu0 %v3173_v56  ;;  %2562 = vmatprep.subr.bf16.mxu1 %v3175_v57  ;;  %v3839_v56 = vld [vmem:[#allocation39_spill] sm:$0xff]  ;;  %v3840_v57 = vld [vmem:[#allocation40_spill] sm:$0xff] }
 0x20c   : > { %2626 = vmatprep.subr.bf16.mxu0 %v3178_v0  ;;  %v3841_v0 = vld [vmem:[#allocation41_spill] sm:$0xff] }
 0x20e   : > { %2564 = vmatpush1.bf16.msra.mxu1 %v3181_v14  ;;  %v3842_v14 = vld [vmem:[#allocation42_spill] sm:$0xff] }
 0x20f   : > { %2628 = vmatpush1.bf16.msra.mxu0 %v3808_v51  ;;  %2566 = vmatprep.subr.bf16.mxu1 %v3809_v52  ;;  %v3856_v51 = vld [vmem:[#allocation56_spill] sm:$0xff]  ;;  %v3857_v52 = vld [vmem:[#allocation57_spill] sm:$0xff] }
 0x210   : > { %2630 = vmatprep.subr.bf16.mxu0 %v3810_v58  ;;  %v3858_v58 = vld [vmem:[#allocation58_spill] sm:$0xff] }
 0x212   : > { %2568 = vmatpush1.bf16.msra.mxu1 %v3811_v46  ;;  %v3859_v46 = vld [vmem:[#allocation59_spill] sm:$0xff] }
 0x213   : > { %2632 = vmatpush1.bf16.msra.mxu0 %v3812_v59  ;;  %2570 = vmatprep.subr.bf16.mxu1 %v3813_v36  ;;  %v3860_v59 = vld [vmem:[#allocation60_spill] sm:$0xff]  ;;  %v3861_v36 = vld [vmem:[#allocation61_spill] sm:$0xff] }
 0x214   : > { %2634 = vmatprep.subr.bf16.mxu0 %v3814_v4  ;;  %v3862_v4 = vld [vmem:[#allocation62_spill] sm:$0xff] }
 0x216   : > { %2572 = vmatpush1.bf16.msra.mxu1 %v3815_v5  ;;  %v3863_v5 = vld [vmem:[#allocation63_spill] sm:$0xff] }
 0x217   : > { %2636 = vmatpush1.bf16.msra.mxu0 %v3816_v6  ;;  %2574 = vmatprep.subr.bf16.mxu1 %v3817_v10  ;;  %v3864_v6 = vld [vmem:[#allocation64_spill] sm:$0xff]  ;;  %v3865_v10 = vld [vmem:[#allocation65_spill] sm:$0xff] }
 0x218   : > { %2638 = vmatprep.subr.bf16.mxu0 %v3818_v16  ;;  %v3866_v16 = vld [vmem:[#allocation66_spill] sm:$0xff] }
 0x21a   : > { %2576 = vmatpush1.bf16.msra.mxu1 %v3819_v17  ;;  %v3867_v17 = vld [vmem:[#allocation67_spill] sm:$0xff] }
 0x21b   : > { %2640 = vmatpush1.bf16.msra.mxu0 %v3820_v18  ;;  %2578 = vmatprep.subr.bf16.mxu1 %v3821_v22  ;;  %v3868_v18 = vld [vmem:[#allocation68_spill] sm:$0xff]  ;;  %v3869_v22 = vld [vmem:[#allocation69_spill] sm:$0xff] }
 0x21c   : > { %2642 = vmatprep.subr.bf16.mxu0 %v3822_v28  ;;  %v3870_v28 = vld [vmem:[#allocation70_spill] sm:$0xff] }
 0x21e   : > { %2580 = vmatpush1.bf16.msra.mxu1 %v3823_v29  ;;  %v3871_v29 = vld [vmem:[#allocation71_spill] sm:$0xff] }
 0x21f   : > { %2644 = vmatpush1.bf16.msra.mxu0 %v3824_v30  ;;  %2582 = vmatprep.subr.bf16.mxu1 %v3825_v38  ;;  %v3872_v30 = vld [vmem:[#allocation72_spill] sm:$0xff]  ;;  %v3873_v38 = vld [vmem:[#allocation73_spill] sm:$0xff] }
 0x220   : > { %2646 = vmatprep.subr.bf16.mxu0 %v3826_v47  ;;  %v3874_v47 = vld [vmem:[#allocation74_spill] sm:$0xff] }
 0x222   : > { %2584 = vmatpush1.bf16.msra.mxu1 %v3827_v53  ;;  %v3875_v53 = vld [vmem:[#allocation75_spill] sm:$0xff] }
 0x223   : > { %2648 = vmatpush1.bf16.msra.mxu0 %v3245_v15  ;;  %2586 = vmatprep.subr.bf16.mxu1 %v3828_v54  ;;  %v3843_v15 = vld [vmem:[#allocation43_spill] sm:$0xff]  ;;  %v3876_v54 = vld [vmem:[#allocation76_spill] sm:$0xff] }
 0x224   : > { %2650 = vmatprep.subr.bf16.mxu0 %v3250_v39  ;;  %v3844_v39 = vld [vmem:[#allocation44_spill] sm:$0xff] }
 0x226   : > { %2588 = vmatpush1.bf16.msra.mxu1 %v3829_v55  ;;  %v3877_v55 = vld [vmem:[#allocation77_spill] sm:$0xff] }
 0x227   : > { %2652 = vmatpush1.bf16.msra.mxu0 %v3831_v7  ;;  %2654 = vmatprep.subr.bf16.mxu1 %v3832_v8  ;;  %v3879_v7 = vld [vmem:[#allocation79_spill] sm:$0xff]  ;;  %v3880_v8 = vld [vmem:[#allocation80_spill] sm:$0xff] }
 0x228   : > { %2718 = vmatprep.subr.bf16.mxu0 %v3833_v13  ;;  %v3881_v13 = vld [vmem:[#allocation81_spill] sm:$0xff] }
 0x229   : > { %1613 = vmatmul.mubr.f32.vlgmr.msra.gmra.mrb[8].mxu1 %v3550_v3 }
 0x22a   : > { %1684 = vmatmul.mubr.f32.vlgmr.msra.gmra.mrb[14].mxu0 %v3550_v3  ;;  %2656 = vmatpush1.bf16.msra.mxu1 %v3834_v23  ;;  %v3882_v23 = vld [vmem:[#allocation82_spill] sm:$0xff] }
 0x22b   : > { %1754 = vmatprep.mubr.f32.mxu1 %v3468_v62  ;;  %2720 = vmatpush1.bf16.msra.mxu0 %v3835_v24  ;;  %v3883_v24 = vld [vmem:[#allocation83_spill] sm:$0xff] }
 0x22c   : > { %1825 = vmatprep.mubr.f32.mxu0 %v3468_v62  ;;  %2658 = vmatprep.subr.bf16.mxu1 %v3836_v25  ;;  %v3853_v62 = vld [vmem:[#allocation53_spill] sm:$0xff]  ;;  %v3884_v25 = vld [vmem:[#allocation84_spill] sm:$0xff] }
 0x22d   : > { %2722 = vmatprep.subr.bf16.mxu0 %v3837_v34 }
 0x22e   : > { %2660 = vmatpush1.bf16.msra.mxu1 %v3838_v49 }
 0x22f   : > { %2724 = vmatpush1.bf16.msra.mxu0 %v3839_v56  ;;  %2662 = vmatprep.subr.bf16.mxu1 %v3840_v57 }
 0x230   : > { %2726 = vmatprep.subr.bf16.mxu0 %v3841_v0 }
 0x232   : > { %2664 = vmatpush1.bf16.msra.mxu1 %v3842_v14 }
 0x233   : > { %2728 = vmatpush1.bf16.msra.mxu0 %v3843_v15  ;;  %2666 = vmatprep.subr.bf16.mxu1 %v3844_v39 }
 0x234   : > { %2730 = vmatprep.subr.bf16.mxu0 %v3845_v26 }
 0x236   : > { %2668 = vmatpush1.bf16.msra.mxu1 %v3846_v1 }
 0x237   : > { %2732 = vmatpush1.bf16.msra.mxu0 %v3847_v12  ;;  %2670 = vmatprep.subr.bf16.mxu1 %v3848_v33 }
 0x238   : > { %2734 = vmatprep.subr.bf16.mxu0 %v3849_v2 }
 0x23a   : > { %2672 = vmatpush1.bf16.msra.mxu1 %v3850_v35 }
 0x23b   : > { %2736 = vmatpush1.bf16.msra.mxu0 %v3851_v60  ;;  %2674 = vmatprep.subr.bf16.mxu1 %v3852_v42 }
 0x23c   : > { %v1172_v44 = vpop.f32.mrb[2].mxu1  ;;  %v1243_v27 = vpop.f32.mrb[8].mxu0  ;;  %2738 = vmatprep.subr.bf16.mxu0 %v3853_v62 }
 0x23d   : > { %1252 = vst [vmem:[%s3497_s11 + $0x20] sm:$0xff] %v1172_v44  ;;  %1254 = vst [vmem:[%s3497_s11 + $0x30] sm:$0xff] %v1243_v27  ;;  %v1174_v31 = vpop.f32.mrb[3].mxu1  ;;  %v1245_v32 = vpop.f32.mrb[9].mxu0 }
 0x23e   : > { %1253 = vst [vmem:[%s3497_s11 + $0x28] sm:$0xff] %v1174_v31  ;;  %1255 = vst [vmem:[%s3497_s11 + $0x38] sm:$0xff] %v1245_v32  ;;  %2676 = vmatpush1.bf16.msra.mxu1 %v3854_v43 }
 0x23f   : > { %2740 = vmatpush1.bf16.msra.mxu0 %v3855_v45  ;;  %2678 = vmatprep.subr.bf16.mxu1 %v3856_v51 }
 0x240   : > { %2742 = vmatprep.subr.bf16.mxu0 %v3857_v52 }
 0x242   : > { %2680 = vmatpush1.bf16.msra.mxu1 %v3858_v58 }
 0x243   : > { %2744 = vmatpush1.bf16.msra.mxu0 %v3859_v46  ;;  %2682 = vmatprep.subr.bf16.mxu1 %v3860_v59 }
 0x244   : > { %2746 = vmatprep.subr.bf16.mxu0 %v3861_v36 }
 0x246   : > { %2684 = vmatpush1.bf16.msra.mxu1 %v3862_v4 }
 0x247   : > { %2748 = vmatpush1.bf16.msra.mxu0 %v3863_v5  ;;  %2686 = vmatprep.subr.bf16.mxu1 %v3864_v6 }
 0x248   : > { %2750 = vmatprep.subr.bf16.mxu0 %v3865_v10 }
 0x24a   : > { %2688 = vmatpush1.bf16.msra.mxu1 %v3866_v16 }
 0x24b   : > { %2752 = vmatpush1.bf16.msra.mxu0 %v3867_v17  ;;  %2690 = vmatprep.subr.bf16.mxu1 %v3868_v18 }
 0x24c   : > { %2754 = vmatprep.subr.bf16.mxu0 %v3869_v22 }
 0x24e   : > { %2692 = vmatpush1.bf16.msra.mxu1 %v3870_v28 }
 0x24f   : > { %2756 = vmatpush1.bf16.msra.mxu0 %v3871_v29  ;;  %2694 = vmatprep.subr.bf16.mxu1 %v3872_v30 }
 0x250   : > { %2758 = vmatprep.subr.bf16.mxu0 %v3873_v38 }
 0x252   : > { %2696 = vmatpush1.bf16.msra.mxu1 %v3874_v47 }
 0x253   : > { %2760 = vmatpush1.bf16.msra.mxu0 %v3875_v53  ;;  %2698 = vmatprep.subr.bf16.mxu1 %v3876_v54 }
 0x254   : > { %2762 = vmatprep.subr.bf16.mxu0 %v3877_v55 }
 0x256   : > { %2700 = vmatpush1.bf16.msra.mxu1 %v3878_v61 }
 0x257   : > { %2764 = vmatpush1.bf16.msra.mxu0 %v3879_v7  ;;  %2702 = vmatprep.subr.bf16.mxu1 %v3880_v8 }
 0x258   : > { %2766 = vmatprep.subr.bf16.mxu0 %v3881_v13 }
 0x25a   : > { %2704 = vmatpush1.bf16.msra.mxu1 %v3882_v23 }
 0x25b   : > { %2768 = vmatpush1.bf16.msra.mxu0 %v3883_v24  ;;  %2706 = vmatprep.subr.bf16.mxu1 %v3423_v40 }
 0x25c   : > { %2770 = vmatprep.subr.bf16.mxu0 %v3884_v25 }
 0x25e   : > { %2708 = vmatpush1.bf16.msra.mxu1 %v3429_v37 }
 0x25f   : > { %2772 = vmatpush1.bf16.msra.mxu0 %v3433_v9  ;;  %2710 = vmatprep.subr.bf16.mxu1 %v3435_v20 }
 0x260   : > { %2774 = vmatprep.subr.bf16.mxu0 %v3438_v19 }
 0x262   : > { %2712 = vmatpush1.bf16.msra.mxu1 %v3441_v50 }
 0x263   : > { %2776 = vmatpush1.bf16.msra.mxu0 %v3445_v41  ;;  %2714 = vmatprep.subr.bf16.mxu1 %v3447_v48 }
 0x264   : > { %2778 = vmatprep.subr.bf16.mxu0 %v3450_v63 }
 0x266   : > { %2716 = vmatpush1.bf16.msra.mxu1 %v3453_v11 }
 0x267   : > { %2780 = vmatpush1.bf16.msra.mxu0 %v3457_v21 }
 0x269   : > { %1755 = vmatmul.mubr.f32.vlgmr.msra.gmra.mrb[10].mxu1 %v3550_v3 }
 0x26a   : > { %1826 = vmatmul.mubr.f32.vlgmr.msra.gmra.mrb[16].mxu0 %v3550_v3 }
 0x27c   : > { %v1322_v37 = vpop.f32.mrb[4].mxu1 }
 0x27d   : > { %1540 = vst [vmem:[%s328_s28] sm:$0xff] %v1322_v37  ;;  %v1393_v50 = vpop.f32.mrb[10].mxu0  ;;  %v1324_v40 = vpop.f32.mrb[5].mxu1 }
 0x27e   : > { %1542 = vst [vmem:[%s328_s28 + $0x10] sm:$0xff] %v1393_v50  ;;  %1541 = vst [vmem:[%s328_s28 + $0x8] sm:$0xff] %v1324_v40  ;;  %v1395_v9 = vpop.f32.mrb[11].mxu0 }
 0x27f   : > { %1543 = vst [vmem:[%s328_s28 + $0x18] sm:$0xff] %v1395_v9 }
 0x2bc   : > { %v1464_v20 = vpop.f32.mrb[6].mxu1 }
 0x2bd   : > { %1544 = vst [vmem:[%s328_s28 + $0x20] sm:$0xff] %v1464_v20  ;;  %v1535_v19 = vpop.f32.mrb[12].mxu0  ;;  %v1466_v41 = vpop.f32.mrb[7].mxu1 }
 0x2be   : > { %1546 = vst [vmem:[%s328_s28 + $0x30] sm:$0xff] %v1535_v19  ;;  %1545 = vst [vmem:[%s328_s28 + $0x28] sm:$0xff] %v1466_v41  ;;  %v1537_v48 = vpop.f32.mrb[13].mxu0 }
 0x2bf   : > { %1547 = vst [vmem:[%s328_s28 + $0x38] sm:$0xff] %v1537_v48 }
 0x2fc   : > { %v1614_v63 = vpop.f32.mrb[8].mxu1 }
 0x2fd   : > { %1832 = vst [vmem:[%s333_s13] sm:$0xff] %v1614_v63  ;;  %v1685_v11 = vpop.f32.mrb[14].mxu0  ;;  %v1616_v21 = vpop.f32.mrb[9].mxu1 }
 0x2fe   : > { %1834 = vst [vmem:[%s333_s13 + $0x10] sm:$0xff] %v1685_v11  ;;  %1833 = vst [vmem:[%s333_s13 + $0x8] sm:$0xff] %v1616_v21  ;;  %v1687_v3 = vpop.f32.mrb[15].mxu0 }
 0x2ff   : > { %1835 = vst [vmem:[%s333_s13 + $0x18] sm:$0xff] %v1687_v3 }
 0x33c   : > { %v1756_v34 = vpop.f32.mrb[10].mxu1 }
 0x33d   : > { %1836 = vst [vmem:[%s333_s13 + $0x20] sm:$0xff] %v1756_v34  ;;  %v1827_v49 = vpop.f32.mrb[16].mxu0  ;;  %v1758_v56 = vpop.f32.mrb[11].mxu1 }
 0x33e   : > { %1838 = vst [vmem:[%s333_s13 + $0x30] sm:$0xff] %v1827_v49  ;;  %1837 = vst [vmem:[%s333_s13 + $0x28] sm:$0xff] %v1758_v56  ;;  %v1829_v57 = vpop.f32.mrb[17].mxu0 }
 0x33f   : > { %1839 = vst [vmem:[%s333_s13 + $0x38] sm:$0xff] %v1829_v57 }
 0x340 PF: > { %s20_s24 = sadd.s32 1, %s2886_s24  }
 0x341   : > { %p17_p5 = scmp.ge.s32.totalorder %s20_s24, 4  }
 0x343   :  { %19 = sbr.rel (!%p17_p5) target bundleno = 2 (0x2), region = 103 }
 0x34a   :  { %1893 = vsyncpa [#allocation3], 1 }
 0x34b   :  { %1895 = vsyncpa [#allocation3 + $0x1], 1 }
 0x34c   :  { %1896 = vsyncpa [#allocation5], 1 }

// kernel: salsa_forward.5
= control target key start
LH: loop header
LB: loop body
LE: loop exit
PB: predicated region body
PF: predicated region fallthrough
CT: control target
= control target key end

     0   :  { %s1307_s18 = smov 0   ;;  %s2131_s0 = inlined_call_operand.vmem [shape: f32[2,8,1024], index: 0, kind: input, shape index: {}]   ;;  %s2132_s1 = inlined_call_operand.vmem [shape: f32[2,16,256], index: 1, kind: input, shape index: {}]   ;;  %s2133_s2 = inlined_call_operand.vmem [shape: f32[1024,256], index: 2, kind: input, shape index: {}]   ;;  %s2134_s3 = inlined_call_operand.vmem [shape: f32[16,8], index: 3, kind: input, shape index: {}]   ;;  %s2135_s4 = inlined_call_operand.vmem [shape: f32[16,1], index: 4, kind: input, shape index: {}]   ;;  %s2136_s5 = inlined_call_operand.vmem [shape: f32[2,16,256], index: 5, kind: output, shape index: {}]  }
   0x1 LB: > { %s974_s19 = sadd.s32 4294967295, %s1273_s18   ;;  %p978_p0 = scmp.ge.s32.totalorder %s1273_s18, 1  ;;  %s1273_s18 = sphi %s1307_s18, %s15_s18  }
   0x2   : > { %p197_p1 = scmp.lt.s32.totalorder %s1273_s18, 3 }
   0x4   : > { %p198_p2 = pnand %p978_p0, %p197_p1 }
   0x5   : > { %v254_v0 = vld [vmem:[%s2133_s2 + $0x8] sm:$0xff] (!%p198_p2)  ;;  %v256_v1 = vld [vmem:[%s2133_s2 + $0x18] sm:$0xff] (!%p198_p2)  ;;  %v253_v5 = vld [vmem:[%s2133_s2] sm:$0xff] (!%p198_p2)  ;;  %p1521_p3 = scmp.lt.s32.totalorder (!%p198_p2), %s974_s19, 1  ;;  %vm799_vm0 = vcmask (!%p198_p2), 64512  }
   0x6   : > { %201 = sbr.rel (%p198_p2) target bundleno = 572 (0x23c), region = 40  ;;  %v382_v2 = vld [vmem:[%s2133_s2 + $0x408] sm:$0xff] (!%p198_p2)  ;;  %v992_v3 = vpack.c.bf16 (!%p198_p2), %v256_v1, %v254_v0  ;;  %v384_v4 = vld [vmem:[%s2133_s2 + $0x418] sm:$0xff] (!%p198_p2)  ;;  %v255_v6 = vld [vmem:[%s2133_s2 + $0x10] sm:$0xff] (!%p198_p2) }
   0x7   : > { %v1120_v7 = vpack.c.bf16 (!%p198_p2), %v384_v4, %v382_v2  ;;  %v994_v8 = vpack.c.bf16 (!%p198_p2), %v255_v6, %v253_v5  ;;  %v381_v9 = vld [vmem:[%s2133_s2 + $0x400] sm:$0xff] (!%p198_p2)  ;;  %v383_v10 = vld [vmem:[%s2133_s2 + $0x410] sm:$0xff] (!%p198_p2)  ;;  %v258_v11 = vld [vmem:[%s2133_s2 + $0x28] sm:$0xff] (!%p198_p2) }
   0x8   : > { %993 = vmatprep.subr.bf16.mxu1 (!%p198_p2), %v992_v3  ;;  %v1122_v12 = vpack.c.bf16 (!%p198_p2), %v383_v10, %v381_v9  ;;  %v260_v13 = vld [vmem:[%s2133_s2 + $0x38] sm:$0xff] (!%p198_p2)  ;;  %v386_v14 = vld [vmem:[%s2133_s2 + $0x428] sm:$0xff] (!%p198_p2)  ;;  %v257_v18 = vld [vmem:[%s2133_s2 + $0x20] sm:$0xff] (!%p198_p2) }
   0x9   : > { %v388_v15 = vld [vmem:[%s2133_s2 + $0x438] sm:$0xff] (!%p198_p2)  ;;  %1121 = vmatprep.subr.bf16.mxu0 (!%p198_p2), %v1120_v7  ;;  %995 = vmatpush1.bf16.msra.mxu1 (!%p198_p2), %v994_v8  ;;  %v996_v16 = vpack.c.bf16 (!%p198_p2), %v260_v13, %v258_v11  ;;  %v259_v19 = vld [vmem:[%s2133_s2 + $0x30] sm:$0xff] (!%p198_p2)  ;;  %v385_v20 = vld [vmem:[%s2133_s2 + $0x420] sm:$0xff] (!%p198_p2) }
   0xa   : > { %v1124_v17 = vpack.c.bf16 (!%p198_p2), %v388_v15, %v386_v14  ;;  %1123 = vmatpush1.bf16.msra.mxu0 (!%p198_p2), %v1122_v12  ;;  %v998_v21 = vpack.c.bf16 (!%p198_p2), %v259_v19, %v257_v18  ;;  %v387_v22 = vld [vmem:[%s2133_s2 + $0x430] sm:$0xff] (!%p198_p2)  ;;  %v262_v23 = vld [vmem:[%s2133_s2 + $0x48] sm:$0xff] (!%p198_p2)  ;;  %v264_v24 = vld [vmem:[%s2133_s2 + $0x58] sm:$0xff] (!%p198_p2) }
   0xb   : > { %997 = vmatprep.subr.bf16.mxu1 (!%p198_p2), %v996_v16  ;;  %v1126_v25 = vpack.c.bf16 (!%p198_p2), %v387_v22, %v385_v20  ;;  %v1000_v26 = vpack.c.bf16 (!%p198_p2), %v264_v24, %v262_v23  ;;  %v390_v27 = vld [vmem:[%s2133_s2 + $0x448] sm:$0xff] (!%p198_p2)  ;;  %v392_v28 = vld [vmem:[%s2133_s2 + $0x458] sm:$0xff] (!%p198_p2)  ;;  %v261_v29 = vld [vmem:[%s2133_s2 + $0x40] sm:$0xff] (!%p198_p2) }
   0xc   : > { %1125 = vmatprep.subr.bf16.mxu0 (!%p198_p2), %v1124_v17  ;;  %v1128_v30 = vpack.c.bf16 (!%p198_p2), %v392_v28, %v390_v27  ;;  %v263_v31 = vld [vmem:[%s2133_s2 + $0x50] sm:$0xff] (!%p198_p2)  ;;  %v389_v32 = vld [vmem:[%s2133_s2 + $0x440] sm:$0xff] (!%p198_p2)  ;;  %v266_v35 = vld [vmem:[%s2133_s2 + $0x68] sm:$0xff] (!%p198_p2) }
   0xd   : > { %v391_v33 = vld [vmem:[%s2133_s2 + $0x450] sm:$0xff]  ;;  %999 = vmatpush1.bf16.msra.mxu1 %v998_v21  ;;  %v1002_v34 = vpack.c.bf16 %v263_v31, %v261_v29  ;;  %v268_v36 = vld [vmem:[%s2133_s2 + $0x78] sm:$0xff]  ;;  %v394_v37 = vld [vmem:[%s2133_s2 + $0x468] sm:$0xff]  ;;  %s2139_s19 = smov (!%p1521_p3, %s974_s19), 1 }
   0xe   : > { %1127 = vmatpush1.bf16.msra.mxu0 %v1126_v25  ;;  %1001 = vmatprep.subr.bf16.mxu1 %v1000_v26  ;;  %v1130_v38 = vpack.c.bf16 %v391_v33, %v389_v32  ;;  %v1004_v39 = vpack.c.bf16 %v268_v36, %v266_v35  ;;  %v396_v40 = vld [vmem:[%s2133_s2 + $0x478] sm:$0xff]  ;;  %v265_v41 = vld [vmem:[%s2133_s2 + $0x60] sm:$0xff]  ;;  %v267_v42 = vld [vmem:[%s2133_s2 + $0x70] sm:$0xff]  ;;  %s989_s28 = sshll.u32 %s2139_s19, 6  ;;  %s990_s6 = sshll.u32 %s2139_s19, 5 }
   0xf   : > { %1129 = vmatprep.subr.bf16.mxu0 %v1128_v30  ;;  %v1132_v43 = vpack.c.bf16 %v396_v40, %v394_v37  ;;  %v393_v44 = vld [vmem:[%s2133_s2 + $0x460] sm:$0xff]  ;;  %v395_v45 = vld [vmem:[%s2133_s2 + $0x470] sm:$0xff]  ;;  %v270_v46 = vld [vmem:[%s2133_s2 + $0x88] sm:$0xff]  ;;  %v1006_v50 = vpack.c.bf16 %v267_v42, %v265_v41  ;;  %s1607_s24 = scalar_lea.vmem %s2131_s0, %s989_s28  ;;  %s239_s8 = scalar_lea.vmem %s2132_s1, %s990_s6 }
  0x10   : > { %v272_v47 = vld [vmem:[%s2133_s2 + $0x98] sm:$0xff]  ;;  %v398_v48 = vld [vmem:[%s2133_s2 + $0x488] sm:$0xff]  ;;  %v1134_v51 = vpack.c.bf16 %v395_v45, %v393_v44  ;;  %v269_v53 = vld [vmem:[%s2133_s2 + $0x80] sm:$0xff]  ;;  %s244_s11 = scalar_lea.vmem %s2136_s5, %s990_s6 }
  0x11   : > { %v400_v49 = vld [vmem:[%s2133_s2 + $0x498] sm:$0xff]  ;;  %1003 = vmatpush1.bf16.msra.mxu1 %v1002_v34  ;;  %v1008_v52 = vpack.c.bf16 %v272_v47, %v270_v46  ;;  %v271_v54 = vld [vmem:[%s2133_s2 + $0x90] sm:$0xff]  ;;  %v397_v55 = vld [vmem:[%s2133_s2 + $0x480] sm:$0xff] }
  0x12   : > { %1131 = vmatpush1.bf16.msra.mxu0 %v1130_v38  ;;  %1005 = vmatprep.subr.bf16.mxu1 %v1004_v39  ;;  %v1136_v56 = vpack.c.bf16 %v400_v49, %v398_v48  ;;  %v399_v57 = vld [vmem:[%s2133_s2 + $0x490] sm:$0xff]  ;;  %v274_v58 = vld [vmem:[%s2133_s2 + $0xa8] sm:$0xff]  ;;  %v276_v59 = vld [vmem:[%s2133_s2 + $0xb8] sm:$0xff]  ;;  %v1010_v62 = vpack.c.bf16 %v271_v54, %v269_v53 }
  0x13   : > { %1133 = vmatprep.subr.bf16.mxu0 %v1132_v43  ;;  %v402_v60 = vld [vmem:[%s2133_s2 + $0x4a8] sm:$0xff]  ;;  %v404_v61 = vld [vmem:[%s2133_s2 + $0x4b8] sm:$0xff]  ;;  %v1138_v63 = vpack.c.bf16 %v399_v57, %v397_v55  ;;  %v1012_v0 = vpack.c.bf16 %v276_v59, %v274_v58  ;;  %v273_v1 = vld [vmem:[%s2133_s2 + $0xa0] sm:$0xff] }
  0x14   : > { %v275_v2 = vld [vmem:[%s2133_s2 + $0xb0] sm:$0xff]  ;;  %v401_v3 = vld [vmem:[%s2133_s2 + $0x4a0] sm:$0xff]  ;;  %v1140_v4 = vpack.c.bf16 %v404_v61, %v402_v60  ;;  %v278_v6 = vld [vmem:[%s2133_s2 + $0xc8] sm:$0xff] }
  0x15   : > { %1007 = vmatpush1.bf16.msra.mxu1 %v1006_v50  ;;  %v403_v5 = vld [vmem:[%s2133_s2 + $0x4b0] sm:$0xff]  ;;  %v280_v7 = vld [vmem:[%s2133_s2 + $0xd8] sm:$0xff]  ;;  %v406_v8 = vld [vmem:[%s2133_s2 + $0x4c8] sm:$0xff]  ;;  %v1014_v10 = vpack.c.bf16 %v275_v2, %v273_v1 }
  0x16   : > { %1135 = vmatpush1.bf16.msra.mxu0 %v1134_v51  ;;  %1009 = vmatprep.subr.bf16.mxu1 %v1008_v52  ;;  %v408_v9 = vld [vmem:[%s2133_s2 + $0x4d8] sm:$0xff]  ;;  %v1142_v11 = vpack.c.bf16 %v403_v5, %v401_v3  ;;  %v1016_v12 = vpack.c.bf16 %v280_v7, %v278_v6  ;;  %v277_v13 = vld [vmem:[%s2133_s2 + $0xc0] sm:$0xff]  ;;  %v279_v14 = vld [vmem:[%s2133_s2 + $0xd0] sm:$0xff] }
  0x17   : > { %1137 = vmatprep.subr.bf16.mxu0 %v1136_v56  ;;  %v405_v15 = vld [vmem:[%s2133_s2 + $0x4c0] sm:$0xff]  ;;  %v1144_v16 = vpack.c.bf16 %v408_v9, %v406_v8  ;;  %v407_v17 = vld [vmem:[%s2133_s2 + $0x4d0] sm:$0xff]  ;;  %v282_v18 = vld [vmem:[%s2133_s2 + $0xe8] sm:$0xff]  ;;  %v1018_v22 = vpack.c.bf16 %v279_v14, %v277_v13 }
  0x18   : > { %v284_v19 = vld [vmem:[%s2133_s2 + $0xf8] sm:$0xff]  ;;  %v410_v20 = vld [vmem:[%s2133_s2 + $0x4e8] sm:$0xff]  ;;  %v1146_v23 = vpack.c.bf16 %v407_v17, %v405_v15  ;;  %v281_v25 = vld [vmem:[%s2133_s2 + $0xe0] sm:$0xff] }
  0x19   : > { %1011 = vmatpush1.bf16.msra.mxu1 %v1010_v62  ;;  %v412_v21 = vld [vmem:[%s2133_s2 + $0x4f8] sm:$0xff]  ;;  %v1020_v24 = vpack.c.bf16 %v284_v19, %v282_v18  ;;  %v283_v26 = vld [vmem:[%s2133_s2 + $0xf0] sm:$0xff]  ;;  %v409_v27 = vld [vmem:[%s2133_s2 + $0x4e0] sm:$0xff] }
  0x1a   : > { %1139 = vmatpush1.bf16.msra.mxu0 %v1138_v63  ;;  %1013 = vmatprep.subr.bf16.mxu1 %v1012_v0  ;;  %v1148_v28 = vpack.c.bf16 %v412_v21, %v410_v20  ;;  %v411_v29 = vld [vmem:[%s2133_s2 + $0x4f0] sm:$0xff]  ;;  %v286_v30 = vld [vmem:[%s2133_s2 + $0x108] sm:$0xff]  ;;  %v288_v31 = vld [vmem:[%s2133_s2 + $0x118] sm:$0xff]  ;;  %v1022_v34 = vpack.c.bf16 %v283_v26, %v281_v25 }
  0x1b   : > { %1141 = vmatprep.subr.bf16.mxu0 %v1140_v4  ;;  %v414_v32 = vld [vmem:[%s2133_s2 + $0x508] sm:$0xff]  ;;  %v416_v33 = vld [vmem:[%s2133_s2 + $0x518] sm:$0xff]  ;;  %v1150_v35 = vpack.c.bf16 %v411_v29, %v409_v27  ;;  %v1024_v36 = vpack.c.bf16 %v288_v31, %v286_v30  ;;  %v285_v37 = vld [vmem:[%s2133_s2 + $0x100] sm:$0xff] }
  0x1c   : > { %v287_v38 = vld [vmem:[%s2133_s2 + $0x110] sm:$0xff]  ;;  %v413_v39 = vld [vmem:[%s2133_s2 + $0x500] sm:$0xff]  ;;  %v1152_v40 = vpack.c.bf16 %v416_v33, %v414_v32  ;;  %v290_v42 = vld [vmem:[%s2133_s2 + $0x128] sm:$0xff] }
  0x1d   : > { %1015 = vmatpush1.bf16.msra.mxu1 %v1014_v10  ;;  %v415_v41 = vld [vmem:[%s2133_s2 + $0x510] sm:$0xff]  ;;  %v292_v43 = vld [vmem:[%s2133_s2 + $0x138] sm:$0xff]  ;;  %v418_v44 = vld [vmem:[%s2133_s2 + $0x528] sm:$0xff]  ;;  %v1026_v46 = vpack.c.bf16 %v287_v38, %v285_v37 }
  0x1e   : > { %1143 = vmatpush1.bf16.msra.mxu0 %v1142_v11  ;;  %1017 = vmatprep.subr.bf16.mxu1 %v1016_v12  ;;  %v420_v45 = vld [vmem:[%s2133_s2 + $0x538] sm:$0xff]  ;;  %v1154_v47 = vpack.c.bf16 %v415_v41, %v413_v39  ;;  %v1028_v48 = vpack.c.bf16 %v292_v43, %v290_v42  ;;  %v289_v49 = vld [vmem:[%s2133_s2 + $0x120] sm:$0xff]  ;;  %v291_v50 = vld [vmem:[%s2133_s2 + $0x130] sm:$0xff] }
  0x1f   : > { %1145 = vmatprep.subr.bf16.mxu0 %v1144_v16  ;;  %v417_v51 = vld [vmem:[%s2133_s2 + $0x520] sm:$0xff]  ;;  %v1156_v52 = vpack.c.bf16 %v420_v45, %v418_v44  ;;  %v419_v53 = vld [vmem:[%s2133_s2 + $0x530] sm:$0xff]  ;;  %v294_v54 = vld [vmem:[%s2133_s2 + $0x148] sm:$0xff]  ;;  %v1030_v58 = vpack.c.bf16 %v291_v50, %v289_v49 }
  0x20   : > { %v296_v55 = vld [vmem:[%s2133_s2 + $0x158] sm:$0xff]  ;;  %v422_v56 = vld [vmem:[%s2133_s2 + $0x548] sm:$0xff]  ;;  %v1158_v59 = vpack.c.bf16 %v419_v53, %v417_v51  ;;  %v293_v61 = vld [vmem:[%s2133_s2 + $0x140] sm:$0xff] }
  0x21   : > { %1019 = vmatpush1.bf16.msra.mxu1 %v1018_v22  ;;  %v424_v57 = vld [vmem:[%s2133_s2 + $0x558] sm:$0xff]  ;;  %v1032_v60 = vpack.c.bf16 %v296_v55, %v294_v54  ;;  %v295_v62 = vld [vmem:[%s2133_s2 + $0x150] sm:$0xff]  ;;  %v421_v63 = vld [vmem:[%s2133_s2 + $0x540] sm:$0xff] }
  0x22   : > { %1147 = vmatpush1.bf16.msra.mxu0 %v1146_v23  ;;  %1021 = vmatprep.subr.bf16.mxu1 %v1020_v24  ;;  %v1160_v0 = vpack.c.bf16 %v424_v57, %v422_v56  ;;  %v423_v1 = vld [vmem:[%s2133_s2 + $0x550] sm:$0xff]  ;;  %v298_v2 = vld [vmem:[%s2133_s2 + $0x168] sm:$0xff]  ;;  %v300_v3 = vld [vmem:[%s2133_s2 + $0x178] sm:$0xff]  ;;  %v1034_v6 = vpack.c.bf16 %v295_v62, %v293_v61 }
  0x23   : > { %1149 = vmatprep.subr.bf16.mxu0 %v1148_v28  ;;  %v426_v4 = vld [vmem:[%s2133_s2 + $0x568] sm:$0xff]  ;;  %v428_v5 = vld [vmem:[%s2133_s2 + $0x578] sm:$0xff]  ;;  %v297_v7 = vld [vmem:[%s2133_s2 + $0x160] sm:$0xff]  ;;  %v1162_v8 = vpack.c.bf16 %v423_v1, %v421_v63  ;;  %v1036_v9 = vpack.c.bf16 %v300_v3, %v298_v2 }
  0x24   : > { %v299_v10 = vld [vmem:[%s2133_s2 + $0x170] sm:$0xff]  ;;  %v425_v11 = vld [vmem:[%s2133_s2 + $0x560] sm:$0xff]  ;;  %v1164_v13 = vpack.c.bf16 %v428_v5, %v426_v4  ;;  %v302_v14 = vld [vmem:[%s2133_s2 + $0x188] sm:$0xff] }
  0x25   : > { %1023 = vmatpush1.bf16.msra.mxu1 %v1022_v34  ;;  %v427_v12 = vld [vmem:[%s2133_s2 + $0x570] sm:$0xff]  ;;  %v304_v15 = vld [vmem:[%s2133_s2 + $0x198] sm:$0xff]  ;;  %v246_v16 = vld [vmem:[%s1607_s24 + $0x8] sm:$0xff]  ;;  %v1038_v20 = vpack.c.bf16 %v299_v10, %v297_v7 }
  0x26   : > { %1151 = vmatpush1.bf16.msra.mxu0 %v1150_v35  ;;  %1025 = vmatprep.subr.bf16.mxu1 %v1024_v36  ;;  %v430_v17 = vld [vmem:[%s2133_s2 + $0x588] sm:$0xff]  ;;  %v432_v18 = vld [vmem:[%s2133_s2 + $0x598] sm:$0xff]  ;;  %v1166_v21 = vpack.c.bf16 %v427_v12, %v425_v11  ;;  %v1040_v22 = vpack.c.bf16 %v304_v15, %v302_v14  ;;  %v301_v23 = vld [vmem:[%s2133_s2 + $0x180] sm:$0xff] }
  0x27   : > { %1153 = vmatprep.subr.bf16.mxu0 %v1152_v40  ;;  %573 = vmatprep.mubr.f32.mxu1 %v246_v16  ;;  %v250_v19 = vld [vmem:[%s1607_s24 + $0x28] sm:$0xff]  ;;  %v303_v24 = vld [vmem:[%s2133_s2 + $0x190] sm:$0xff]  ;;  %v429_v25 = vld [vmem:[%s2133_s2 + $0x580] sm:$0xff]  ;;  %v1168_v26 = vpack.c.bf16 %v432_v18, %v430_v17 }
  0x28   : > { %715 = vmatprep.mubr.f32.mxu0 %v250_v19  ;;  %v431_v27 = vld [vmem:[%s2133_s2 + $0x590] sm:$0xff]  ;;  %v306_v28 = vld [vmem:[%s2133_s2 + $0x1a8] sm:$0xff]  ;;  %v308_v29 = vld [vmem:[%s2133_s2 + $0x1b8] sm:$0xff]  ;;  %v1042_v32 = vpack.c.bf16 %v303_v24, %v301_v23 }
  0x29   : > { %1027 = vmatpush1.bf16.msra.mxu1 %v1026_v46  ;;  %v434_v30 = vld [vmem:[%s2133_s2 + $0x5a8] sm:$0xff]  ;;  %v436_v31 = vld [vmem:[%s2133_s2 + $0x5b8] sm:$0xff]  ;;  %v1170_v33 = vpack.c.bf16 %v431_v27, %v429_v25  ;;  %v1044_v34 = vpack.c.bf16 %v308_v29, %v306_v28  ;;  %v305_v35 = vld [vmem:[%s2133_s2 + $0x1a0] sm:$0xff] }
  0x2a   : > { %1155 = vmatpush1.bf16.msra.mxu0 %v1154_v47  ;;  %1029 = vmatprep.subr.bf16.mxu1 %v1028_v48  ;;  %v307_v36 = vld [vmem:[%s2133_s2 + $0x1b0] sm:$0xff]  ;;  %v433_v37 = vld [vmem:[%s2133_s2 + $0x5a0] sm:$0xff]  ;;  %v1172_v38 = vpack.c.bf16 %v436_v31, %v434_v30  ;;  %v310_v40 = vld [vmem:[%s2133_s2 + $0x1c8] sm:$0xff] }
  0x2b   : > { %1157 = vmatprep.subr.bf16.mxu0 %v1156_v52  ;;  %v435_v39 = vld [vmem:[%s2133_s2 + $0x5b0] sm:$0xff]  ;;  %v312_v41 = vld [vmem:[%s2133_s2 + $0x1d8] sm:$0xff]  ;;  %v438_v42 = vld [vmem:[%s2133_s2 + $0x5c8] sm:$0xff]  ;;  %v1046_v44 = vpack.c.bf16 %v307_v36, %v305_v35 }
  0x2c   : > { %v440_v43 = vld [vmem:[%s2133_s2 + $0x5d8] sm:$0xff]  ;;  %v1174_v45 = vpack.c.bf16 %v435_v39, %v433_v37  ;;  %v1048_v46 = vpack.c.bf16 %v312_v41, %v310_v40  ;;  %v309_v47 = vld [vmem:[%s2133_s2 + $0x1c0] sm:$0xff]  ;;  %v311_v48 = vld [vmem:[%s2133_s2 + $0x1d0] sm:$0xff] }
  0x2d   : > { %1031 = vmatpush1.bf16.msra.mxu1 %v1030_v58  ;;  %v437_v49 = vld [vmem:[%s2133_s2 + $0x5c0] sm:$0xff]  ;;  %v1176_v50 = vpack.c.bf16 %v440_v43, %v438_v42  ;;  %v439_v51 = vld [vmem:[%s2133_s2 + $0x5d0] sm:$0xff]  ;;  %v314_v52 = vld [vmem:[%s2133_s2 + $0x1e8] sm:$0xff]  ;;  %v1050_v56 = vpack.c.bf16 %v311_v48, %v309_v47 }
  0x2e   : > { %1159 = vmatpush1.bf16.msra.mxu0 %v1158_v59  ;;  %1033 = vmatprep.subr.bf16.mxu1 %v1032_v60  ;;  %v316_v53 = vld [vmem:[%s2133_s2 + $0x1f8] sm:$0xff]  ;;  %v442_v54 = vld [vmem:[%s2133_s2 + $0x5e8] sm:$0xff]  ;;  %v1178_v57 = vpack.c.bf16 %v439_v51, %v437_v49  ;;  %v313_v59 = vld [vmem:[%s2133_s2 + $0x1e0] sm:$0xff] }
  0x2f   : > { %1161 = vmatprep.subr.bf16.mxu0 %v1160_v0  ;;  %v444_v55 = vld [vmem:[%s2133_s2 + $0x5f8] sm:$0xff]  ;;  %v1052_v58 = vpack.c.bf16 %v316_v53, %v314_v52  ;;  %v315_v60 = vld [vmem:[%s2133_s2 + $0x1f0] sm:$0xff]  ;;  %v441_v61 = vld [vmem:[%s2133_s2 + $0x5e0] sm:$0xff] }
  0x30   : > { %v1180_v62 = vpack.c.bf16 %v444_v55, %v442_v54  ;;  %v443_v63 = vld [vmem:[%s2133_s2 + $0x5f0] sm:$0xff]  ;;  %v318_v0 = vld [vmem:[%s2133_s2 + $0x208] sm:$0xff]  ;;  %v320_v1 = vld [vmem:[%s2133_s2 + $0x218] sm:$0xff]  ;;  %v1054_v4 = vpack.c.bf16 %v315_v60, %v313_v59 }
  0x31   : > { %1035 = vmatpush1.bf16.msra.mxu1 %v1034_v6  ;;  %v446_v2 = vld [vmem:[%s2133_s2 + $0x608] sm:$0xff]  ;;  %v448_v3 = vld [vmem:[%s2133_s2 + $0x618] sm:$0xff]  ;;  %v1182_v5 = vpack.c.bf16 %v443_v63, %v441_v61  ;;  %v1056_v6 = vpack.c.bf16 %v320_v1, %v318_v0  ;;  %v317_v7 = vld [vmem:[%s2133_s2 + $0x200] sm:$0xff] }
  0x32   : > { %1163 = vmatpush1.bf16.msra.mxu0 %v1162_v8  ;;  %1037 = vmatprep.subr.bf16.mxu1 %v1036_v9  ;;  %v319_v8 = vld [vmem:[%s2133_s2 + $0x210] sm:$0xff]  ;;  %v445_v9 = vld [vmem:[%s2133_s2 + $0x600] sm:$0xff]  ;;  %v1184_v10 = vpack.c.bf16 %v448_v3, %v446_v2  ;;  %v322_v12 = vld [vmem:[%s2133_s2 + $0x228] sm:$0xff] }
  0x33   : > { %1165 = vmatprep.subr.bf16.mxu0 %v1164_v13  ;;  %v447_v11 = vld [vmem:[%s2133_s2 + $0x610] sm:$0xff]  ;;  %v324_v13 = vld [vmem:[%s2133_s2 + $0x238] sm:$0xff]  ;;  %v450_v14 = vld [vmem:[%s2133_s2 + $0x628] sm:$0xff]  ;;  %v1058_v17 = vpack.c.bf16 %v319_v8, %v317_v7 }
  0x34   : > { %v452_v15 = vld [vmem:[%s2133_s2 + $0x638] sm:$0xff]  ;;  %v245_v16 = vld [vmem:[%s1607_s24] sm:$0xff]  ;;  %v1186_v19 = vpack.c.bf16 %v447_v11, %v445_v9  ;;  %v451_v25 = vld [vmem:[%s2133_s2 + $0x630] sm:$0xff] }
  0x35   : > { %1039 = vmatpush1.bf16.msra.mxu1 %v1038_v20  ;;  %v249_v18 = vld [vmem:[%s1607_s24 + $0x20] sm:$0xff]  ;;  %v1060_v20 = vpack.c.bf16 %v324_v13, %v322_v12  ;;  %v1188_v24 = vpack.c.bf16 %v452_v15, %v450_v14  ;;  %v328_v27 = vld [vmem:[%s2133_s2 + $0x258] sm:$0xff]  ;;  %v454_v28 = vld [vmem:[%s2133_s2 + $0x648] sm:$0xff] }
  0x36   : > { %1167 = vmatpush1.bf16.msra.mxu0 %v1166_v21  ;;  %1041 = vmatprep.subr.bf16.mxu1 %v1040_v22  ;;  %v321_v21 = vld [vmem:[%s2133_s2 + $0x220] sm:$0xff]  ;;  %v323_v22 = vld [vmem:[%s2133_s2 + $0x230] sm:$0xff]  ;;  %v456_v29 = vld [vmem:[%s2133_s2 + $0x658] sm:$0xff] }
  0x37   : > { %1169 = vmatprep.subr.bf16.mxu0 %v1168_v26  ;;  %v449_v23 = vld [vmem:[%s2133_s2 + $0x620] sm:$0xff]  ;;  %v326_v26 = vld [vmem:[%s2133_s2 + $0x248] sm:$0xff]  ;;  %v1062_v30 = vpack.c.bf16 %v323_v22, %v321_v21  ;;  %v1192_v36 = vpack.c.bf16 %v456_v29, %v454_v28  ;;  %v455_v37 = vld [vmem:[%s2133_s2 + $0x650] sm:$0xff] }
  0x38   : > { %v1190_v31 = vpack.c.bf16 %v451_v25, %v449_v23  ;;  %v453_v35 = vld [vmem:[%s2133_s2 + $0x640] sm:$0xff]  ;;  %v332_v39 = vld [vmem:[%s2133_s2 + $0x278] sm:$0xff]  ;;  %v458_v40 = vld [vmem:[%s2133_s2 + $0x668] sm:$0xff] }
  0x39   : > { %1043 = vmatpush1.bf16.msra.mxu1 %v1042_v32  ;;  %v1064_v32 = vpack.c.bf16 %v328_v27, %v326_v26  ;;  %v460_v41 = vld [vmem:[%s2133_s2 + $0x678] sm:$0xff]  ;;  %v1194_v43 = vpack.c.bf16 %v455_v37, %v453_v35  ;;  %v457_v47 = vld [vmem:[%s2133_s2 + $0x660] sm:$0xff]  ;;  %v459_v49 = vld [vmem:[%s2133_s2 + $0x670] sm:$0xff] }
  0x3a   : > { %1171 = vmatpush1.bf16.msra.mxu0 %v1170_v33  ;;  %1045 = vmatprep.subr.bf16.mxu1 %v1044_v34  ;;  %v325_v33 = vld [vmem:[%s2133_s2 + $0x240] sm:$0xff]  ;;  %v327_v34 = vld [vmem:[%s2133_s2 + $0x250] sm:$0xff]  ;;  %v1196_v48 = vpack.c.bf16 %v460_v41, %v458_v40  ;;  %v336_v51 = vld [vmem:[%s2133_s2 + $0x298] sm:$0xff]  ;;  %v1198_v55 = vpack.c.bf16 %v459_v49, %v457_v47 }
  0x3b   : > { %1173 = vmatprep.subr.bf16.mxu0 %v1172_v38  ;;  %v330_v38 = vld [vmem:[%s2133_s2 + $0x268] sm:$0xff]  ;;  %v1066_v42 = vpack.c.bf16 %v327_v34, %v325_v33  ;;  %v464_v53 = vld [vmem:[%s2133_s2 + $0x698] sm:$0xff]  ;;  %v461_v59 = vld [vmem:[%s2133_s2 + $0x680] sm:$0xff] }
  0x3c   : > { %v462_v52 = vld [vmem:[%s2133_s2 + $0x688] sm:$0xff]  ;;  %v463_v61 = vld [vmem:[%s2133_s2 + $0x690] sm:$0xff]  ;;  %v340_v63 = vld [vmem:[%s2133_s2 + $0x2b8] sm:$0xff] }
  0x3d   : > { %1047 = vmatpush1.bf16.msra.mxu1 %v1046_v44  ;;  %v1068_v44 = vpack.c.bf16 %v332_v39, %v330_v38  ;;  %v1200_v60 = vpack.c.bf16 %v464_v53, %v462_v52  ;;  %v466_v0 = vld [vmem:[%s2133_s2 + $0x6a8] sm:$0xff]  ;;  %v468_v1 = vld [vmem:[%s2133_s2 + $0x6b8] sm:$0xff]  ;;  %v1202_v3 = vpack.c.bf16 %v463_v61, %v461_v59  ;;  %v465_v7 = vld [vmem:[%s2133_s2 + $0x6a0] sm:$0xff] }
  0x3e   : > { %1175 = vmatpush1.bf16.msra.mxu0 %v1174_v45  ;;  %1049 = vmatprep.subr.bf16.mxu1 %v1048_v46  ;;  %v329_v45 = vld [vmem:[%s2133_s2 + $0x260] sm:$0xff]  ;;  %v331_v46 = vld [vmem:[%s2133_s2 + $0x270] sm:$0xff]  ;;  %v1204_v8 = vpack.c.bf16 %v468_v1, %v466_v0  ;;  %v344_v11 = vld [vmem:[%s2133_s2 + $0x2d8] sm:$0xff] }
  0x3f   : > { %1177 = vmatprep.subr.bf16.mxu0 %v1176_v50  ;;  %v334_v50 = vld [vmem:[%s2133_s2 + $0x288] sm:$0xff]  ;;  %v1070_v54 = vpack.c.bf16 %v331_v46, %v329_v45  ;;  %v467_v9 = vld [vmem:[%s2133_s2 + $0x6b0] sm:$0xff]  ;;  %v472_v13 = vld [vmem:[%s2133_s2 + $0x6d8] sm:$0xff] }
  0x40   : > { %v470_v12 = vld [vmem:[%s2133_s2 + $0x6c8] sm:$0xff]  ;;  %v341_v15 = vld [vmem:[%s2133_s2 + $0x2c0] sm:$0xff]  ;;  %v348_v23 = vld [vmem:[%s2133_s2 + $0x2f8] sm:$0xff] }
  0x41   : > { %1051 = vmatpush1.bf16.msra.mxu1 %v1050_v56  ;;  %v1072_v56 = vpack.c.bf16 %v336_v51, %v334_v50  ;;  %v1208_v21 = vpack.c.bf16 %v472_v13, %v470_v12  ;;  %v346_v22 = vld [vmem:[%s2133_s2 + $0x2e8] sm:$0xff]  ;;  %v476_v26 = vld [vmem:[%s2133_s2 + $0x6f8] sm:$0xff]  ;;  %v473_v33 = vld [vmem:[%s2133_s2 + $0x6e0] sm:$0xff] }
  0x42   : > { %1179 = vmatpush1.bf16.msra.mxu0 %v1178_v57  ;;  %1053 = vmatprep.subr.bf16.mxu1 %v1052_v58  ;;  %v333_v57 = vld [vmem:[%s2133_s2 + $0x280] sm:$0xff]  ;;  %v335_v58 = vld [vmem:[%s2133_s2 + $0x290] sm:$0xff]  ;;  %v474_v25 = vld [vmem:[%s2133_s2 + $0x6e8] sm:$0xff] }
  0x43   : > { %1181 = vmatprep.subr.bf16.mxu0 %v1180_v62  ;;  %v338_v62 = vld [vmem:[%s2133_s2 + $0x2a8] sm:$0xff]  ;;  %v1074_v2 = vpack.c.bf16 %v335_v58, %v333_v57  ;;  %v252_v27 = vld [vmem:[%s1607_s24 + $0x38] sm:$0xff]  ;;  %v1212_v34 = vpack.c.bf16 %v476_v26, %v474_v25  ;;  %v475_v35 = vld [vmem:[%s2133_s2 + $0x6f0] sm:$0xff] }
  0x44   : > { %v352_v37 = vld [vmem:[%s2133_s2 + $0x318] sm:$0xff]  ;;  %v478_v38 = vld [vmem:[%s2133_s2 + $0x708] sm:$0xff]  ;;  %v1214_v41 = vpack.c.bf16 %v475_v35, %v473_v33  ;;  %v477_v45 = vld [vmem:[%s2133_s2 + $0x700] sm:$0xff] }
  0x45   : > { %1055 = vmatpush1.bf16.msra.mxu1 %v1054_v4  ;;  %v1076_v4 = vpack.c.bf16 %v340_v63, %v338_v62  ;;  %v480_v39 = vld [vmem:[%s2133_s2 + $0x718] sm:$0xff]  ;;  %v479_v47 = vld [vmem:[%s2133_s2 + $0x710] sm:$0xff]  ;;  %v482_v50 = vld [vmem:[%s2133_s2 + $0x728] sm:$0xff] }
  0x46   : > { %1183 = vmatpush1.bf16.msra.mxu0 %v1182_v5  ;;  %1057 = vmatprep.subr.bf16.mxu1 %v1056_v6  ;;  %v337_v5 = vld [vmem:[%s2133_s2 + $0x2a0] sm:$0xff]  ;;  %v339_v6 = vld [vmem:[%s2133_s2 + $0x2b0] sm:$0xff]  ;;  %v1216_v46 = vpack.c.bf16 %v480_v39, %v478_v38  ;;  %v356_v49 = vld [vmem:[%s2133_s2 + $0x338] sm:$0xff]  ;;  %v1218_v53 = vpack.c.bf16 %v479_v47, %v477_v45 }
  0x47   : > { %1185 = vmatprep.subr.bf16.mxu0 %v1184_v10  ;;  %v342_v10 = vld [vmem:[%s2133_s2 + $0x2c8] sm:$0xff]  ;;  %v1078_v14 = vpack.c.bf16 %v339_v6, %v337_v5  ;;  %v484_v51 = vld [vmem:[%s2133_s2 + $0x738] sm:$0xff]  ;;  %v481_v57 = vld [vmem:[%s2133_s2 + $0x720] sm:$0xff] }
  0x48   : > { %574 = vmatmul.mubr.f32.vlgmr.msra.gmra.mrb[0].mxu1 %v245_v16  ;;  %v1206_v16 = vpack.c.bf16 %v467_v9, %v465_v7  ;;  %v1220_v58 = vpack.c.bf16 %v484_v51, %v482_v50  ;;  %v483_v59 = vld [vmem:[%s2133_s2 + $0x730] sm:$0xff]  ;;  %v360_v61 = vld [vmem:[%s2133_s2 + $0x358] sm:$0xff]  ;;  %v486_v62 = vld [vmem:[%s2133_s2 + $0x748] sm:$0xff] }
  0x49   : > { %1059 = vmatpush1.bf16.msra.mxu1 %v1058_v17  ;;  %716 = vmatmul.mubr.f32.vlgmr.msra.gmra.mrb[0].mxu0 %v249_v18  ;;  %v1080_v17 = vpack.c.bf16 %v344_v11, %v342_v10  ;;  %v343_v18 = vld [vmem:[%s2133_s2 + $0x2d0] sm:$0xff]  ;;  %v488_v63 = vld [vmem:[%s2133_s2 + $0x758] sm:$0xff]  ;;  %v1222_v1 = vpack.c.bf16 %v483_v59, %v481_v57  ;;  %v485_v5 = vld [vmem:[%s2133_s2 + $0x740] sm:$0xff] }
  0x4a   : > { %1187 = vmatpush1.bf16.msra.mxu0 %v1186_v19  ;;  %1061 = vmatprep.subr.bf16.mxu1 %v1060_v20  ;;  %v469_v19 = vld [vmem:[%s2133_s2 + $0x6c0] sm:$0xff]  ;;  %v471_v20 = vld [vmem:[%s2133_s2 + $0x6d0] sm:$0xff]  ;;  %v1082_v28 = vpack.c.bf16 %v343_v18, %v341_v15  ;;  %v1224_v6 = vpack.c.bf16 %v488_v63, %v486_v62  ;;  %v364_v9 = vld [vmem:[%s2133_s2 + $0x378] sm:$0xff] }
  0x4b   : > { %1189 = vmatprep.subr.bf16.mxu0 %v1188_v24  ;;  %v248_v24 = vld [vmem:[%s1607_s24 + $0x18] sm:$0xff]  ;;  %786 = vmatprep.mubr.f32.mxu0 %v252_v27  ;;  %v1210_v29 = vpack.c.bf16 %v471_v20, %v469_v19  ;;  %v487_v7 = vld [vmem:[%s2133_s2 + $0x750] sm:$0xff]  ;;  %v490_v10 = vld [vmem:[%s2133_s2 + $0x768] sm:$0xff] }
  0x4c   : > { %644 = vmatprep.mubr.f32.mxu1 %v248_v24  ;;  %v492_v11 = vld [vmem:[%s2133_s2 + $0x778] sm:$0xff]  ;;  %v1226_v13 = vpack.c.bf16 %v487_v7, %v485_v5  ;;  %v361_v15 = vld [vmem:[%s2133_s2 + $0x360] sm:$0xff]  ;;  %v491_v19 = vld [vmem:[%s2133_s2 + $0x770] sm:$0xff] }
  0x4d   : > { %1063 = vmatpush1.bf16.msra.mxu1 %v1062_v30  ;;  %v1084_v30 = vpack.c.bf16 %v348_v23, %v346_v22  ;;  %v1228_v18 = vpack.c.bf16 %v492_v11, %v490_v10  ;;  %v366_v20 = vld [vmem:[%s2133_s2 + $0x388] sm:$0xff]  ;;  %v496_v23 = vld [vmem:[%s2133_s2 + $0x798] sm:$0xff]  ;;  %v365_v27 = vld [vmem:[%s2133_s2 + $0x380] sm:$0xff]  ;;  %v1276_v10 = vmov 0  }
  0x4e   : > { %1191 = vmatpush1.bf16.msra.mxu0 %v1190_v31  ;;  %1065 = vmatprep.subr.bf16.mxu1 %v1064_v32  ;;  %v345_v31 = vld [vmem:[%s2133_s2 + $0x2e0] sm:$0xff]  ;;  %v347_v32 = vld [vmem:[%s2133_s2 + $0x2f0] sm:$0xff]  ;;  %v494_v22 = vld [vmem:[%s2133_s2 + $0x788] sm:$0xff] }
  0x4f   : > { %1193 = vmatprep.subr.bf16.mxu0 %v1192_v36  ;;  %v350_v36 = vld [vmem:[%s2133_s2 + $0x308] sm:$0xff]  ;;  %v1086_v40 = vpack.c.bf16 %v347_v32, %v345_v31  ;;  %v495_v31 = vld [vmem:[%s2133_s2 + $0x790] sm:$0xff]  ;;  %v372_v33 = vld [vmem:[%s2133_s2 + $0x3b8] sm:$0xff]  ;;  %1266 = vset.pattern.permute.xlu0 %v1276_v10 }
  0x50   : > { %v370_v32 = vld [vmem:[%s2133_s2 + $0x3a8] sm:$0xff]  ;;  %v500_v35 = vld [vmem:[%s2133_s2 + $0x7b8] sm:$0xff]  ;;  %v369_v39 = vld [vmem:[%s2133_s2 + $0x3a0] sm:$0xff] }
  0x51   : > { %1067 = vmatpush1.bf16.msra.mxu1 %v1066_v42  ;;  %v1088_v42 = vpack.c.bf16 %v352_v37, %v350_v36  ;;  %v1108_v38 = vpack.c.bf16 %v372_v33, %v370_v32  ;;  %v376_v45 = vld [vmem:[%s2133_s2 + $0x3d8] sm:$0xff]  ;;  %v373_v51 = vld [vmem:[%s2133_s2 + $0x3c0] sm:$0xff]  ;;  %v251_v7 = vld [vmem:[%s1607_s24 + $0x30] sm:$0xff] }
  0x52   : > { %1195 = vmatpush1.bf16.msra.mxu0 %v1194_v43  ;;  %1069 = vmatprep.subr.bf16.mxu1 %v1068_v44  ;;  %v349_v43 = vld [vmem:[%s2133_s2 + $0x300] sm:$0xff]  ;;  %v351_v44 = vld [vmem:[%s2133_s2 + $0x310] sm:$0xff]  ;;  %v504_v47 = vld [vmem:[%s2133_s2 + $0x7d8] sm:$0xff] }
  0x53   : > { %1197 = vmatprep.subr.bf16.mxu0 %v1196_v48  ;;  %v354_v48 = vld [vmem:[%s2133_s2 + $0x328] sm:$0xff]  ;;  %v1090_v52 = vpack.c.bf16 %v351_v44, %v349_v43  ;;  %v499_v43 = vld [vmem:[%s2133_s2 + $0x7b0] sm:$0xff]  ;;  %v380_v57 = vld [vmem:[%s2133_s2 + $0x3f8] sm:$0xff] }
  0x54   : > { %v374_v44 = vld [vmem:[%s2133_s2 + $0x3c8] sm:$0xff]  ;;  %v508_v59 = vld [vmem:[%s2133_s2 + $0x7f8] sm:$0xff]  ;;  %v377_v63 = vld [vmem:[%s2133_s2 + $0x3e0] sm:$0xff] }
  0x55   : > { %1071 = vmatpush1.bf16.msra.mxu1 %v1070_v54  ;;  %v1092_v54 = vpack.c.bf16 %v356_v49, %v354_v48  ;;  %v1112_v50 = vpack.c.bf16 %v376_v45, %v374_v44  ;;  %v888_v11 = vld [vmem:[%s2135_s4 + $0x8] sm:$0xff] }
  0x56   : > { %1199 = vmatpush1.bf16.msra.mxu0 %v1198_v55  ;;  %1073 = vmatprep.subr.bf16.mxu1 %v1072_v56  ;;  %v353_v55 = vld [vmem:[%s2133_s2 + $0x320] sm:$0xff]  ;;  %v355_v56 = vld [vmem:[%s2133_s2 + $0x330] sm:$0xff] }
  0x57   : > { %1201 = vmatprep.subr.bf16.mxu0 %v1200_v60  ;;  %v358_v60 = vld [vmem:[%s2133_s2 + $0x348] sm:$0xff]  ;;  %v1094_v0 = vpack.c.bf16 %v355_v56, %v353_v55  ;;  %v503_v55 = vld [vmem:[%s2133_s2 + $0x7d0] sm:$0xff] }
  0x58   : > { %v378_v56 = vld [vmem:[%s2133_s2 + $0x3e8] sm:$0xff] }
  0x59   : > { %1075 = vmatpush1.bf16.msra.mxu1 %v1074_v2  ;;  %v1096_v2 = vpack.c.bf16 %v360_v61, %v358_v60  ;;  %v1116_v62 = vpack.c.bf16 %v380_v57, %v378_v56 }
  0x5a   : > { %1203 = vmatpush1.bf16.msra.mxu0 %v1202_v3  ;;  %1077 = vmatprep.subr.bf16.mxu1 %v1076_v4  ;;  %v357_v3 = vld [vmem:[%s2133_s2 + $0x340] sm:$0xff]  ;;  %v359_v4 = vld [vmem:[%s2133_s2 + $0x350] sm:$0xff] }
  0x5b   : > { %1205 = vmatprep.subr.bf16.mxu0 %v1204_v8  ;;  %v362_v8 = vld [vmem:[%s2133_s2 + $0x368] sm:$0xff]  ;;  %v1098_v12 = vpack.c.bf16 %v359_v4, %v357_v3  ;;  %v507_v3 = vld [vmem:[%s2133_s2 + $0x7f0] sm:$0xff] }
  0x5d   : > { %1079 = vmatpush1.bf16.msra.mxu1 %v1078_v14  ;;  %v1100_v14 = vpack.c.bf16 %v364_v9, %v362_v8  ;;  %v1275_v8 = vmov 0.0   ;;  %v887_v9 = vld [vmem:[%s2135_s4] sm:$0xff] }
  0x5e   : > { %1207 = vmatpush1.bf16.msra.mxu0 %v1206_v16  ;;  %1081 = vmatprep.subr.bf16.mxu1 %v1080_v17  ;;  %v363_v16 = vld [vmem:[%s2133_s2 + $0x370] sm:$0xff]  ;;  %v489_v17 = vld [vmem:[%s2133_s2 + $0x760] sm:$0xff] }
  0x5f   : > { %1209 = vmatprep.subr.bf16.mxu0 %v1208_v21  ;;  %v368_v21 = vld [vmem:[%s2133_s2 + $0x398] sm:$0xff]  ;;  %v1102_v24 = vpack.c.bf16 %v363_v16, %v361_v15  ;;  %v1230_v25 = vpack.c.bf16 %v491_v19, %v489_v17  ;;  %891 = vperm.xlu0 %1266, %v887_v9   ;;  %v798_v19 = vld [vmem:[%s2134_s3 + $0x8] sm:$0xff] }
  0x60   : > { %v1104_v26 = vpack.c.bf16 %v368_v21, %v366_v20  ;;  %v793_v21 = vld [vmem:[%s239_s8] sm:$0xff] }
  0x61   : > { %1083 = vmatpush1.bf16.msra.mxu1 %v1082_v28  ;;  %v367_v28 = vld [vmem:[%s2133_s2 + $0x390] sm:$0xff] }
  0x62   : > { %1211 = vmatpush1.bf16.msra.mxu0 %v1210_v29  ;;  %1085 = vmatprep.subr.bf16.mxu1 %v1084_v30  ;;  %v493_v29 = vld [vmem:[%s2133_s2 + $0x780] sm:$0xff]  ;;  %v1232_v30 = vpack.c.bf16 %v496_v23, %v494_v22  ;;  %v1106_v36 = vpack.c.bf16 %v367_v28, %v365_v27  ;;  %v795_v22 = vld [vmem:[%s239_s8 + $0x10] sm:$0xff]  ;;  %v794_v23 = vld [vmem:[%s239_s8 + $0x8] sm:$0xff] }
  0x63   : > { %1213 = vmatprep.subr.bf16.mxu0 %v1212_v34  ;;  %v498_v34 = vld [vmem:[%s2133_s2 + $0x7a8] sm:$0xff]  ;;  %v1234_v37 = vpack.c.bf16 %v495_v31, %v493_v29  ;;  %896 = vperm.xlu0 %1266, %v888_v11  }
  0x65   : > { %1087 = vmatpush1.bf16.msra.mxu1 %v1086_v40  ;;  %v371_v40 = vld [vmem:[%s2133_s2 + $0x3b0] sm:$0xff] }
  0x66   : > { %1215 = vmatpush1.bf16.msra.mxu0 %v1214_v41  ;;  %1089 = vmatprep.subr.bf16.mxu1 %v1088_v42  ;;  %v497_v41 = vld [vmem:[%s2133_s2 + $0x7a0] sm:$0xff]  ;;  %v1236_v42 = vpack.c.bf16 %v500_v35, %v498_v34  ;;  %v1110_v48 = vpack.c.bf16 %v371_v40, %v369_v39 }
  0x67   : > { %1217 = vmatprep.subr.bf16.mxu0 %v1216_v46  ;;  %v502_v46 = vld [vmem:[%s2133_s2 + $0x7c8] sm:$0xff]  ;;  %v1238_v49 = vpack.c.bf16 %v499_v43, %v497_v41 }
  0x69   : > { %1091 = vmatpush1.bf16.msra.mxu1 %v1090_v52  ;;  %v375_v52 = vld [vmem:[%s2133_s2 + $0x3d0] sm:$0xff] }
  0x6a   : > { %1219 = vmatpush1.bf16.msra.mxu0 %v1218_v53  ;;  %1093 = vmatprep.subr.bf16.mxu1 %v1092_v54  ;;  %v501_v53 = vld [vmem:[%s2133_s2 + $0x7c0] sm:$0xff]  ;;  %v1240_v54 = vpack.c.bf16 %v504_v47, %v502_v46  ;;  %v1114_v60 = vpack.c.bf16 %v375_v52, %v373_v51 }
  0x6b   : > { %1221 = vmatprep.subr.bf16.mxu0 %v1220_v58  ;;  %v506_v58 = vld [vmem:[%s2133_s2 + $0x7e8] sm:$0xff]  ;;  %v1242_v61 = vpack.c.bf16 %v503_v55, %v501_v53 }
  0x6d   : > { %1095 = vmatpush1.bf16.msra.mxu1 %v1094_v0  ;;  %v379_v0 = vld [vmem:[%s2133_s2 + $0x3f0] sm:$0xff] }
  0x6e   : > { %1223 = vmatpush1.bf16.msra.mxu0 %v1222_v1  ;;  %1097 = vmatprep.subr.bf16.mxu1 %v1096_v2  ;;  %v1244_v1 = vpack.c.bf16 %v508_v59, %v506_v58  ;;  %v505_v2 = vld [vmem:[%s2133_s2 + $0x7e0] sm:$0xff]  ;;  %v1118_v4 = vpack.c.bf16 %v379_v0, %v377_v63 }
  0x6f   : > { %1225 = vmatprep.subr.bf16.mxu0 %v1224_v6  ;;  %v1246_v5 = vpack.c.bf16 %v507_v3, %v505_v2  ;;  %v247_v6 = vld [vmem:[%s1607_s24 + $0x10] sm:$0xff] }
  0x71   : > { %1099 = vmatpush1.bf16.msra.mxu1 %v1098_v12 }
  0x72   : > { %1227 = vmatpush1.bf16.msra.mxu0 %v1226_v13  ;;  %1101 = vmatprep.subr.bf16.mxu1 %v1100_v14 }
  0x73   : > { %1229 = vmatprep.subr.bf16.mxu0 %v1228_v18  ;;  %v797_v18 = vld [vmem:[%s2134_s3] sm:$0xff] }
  0x75   : > { %1103 = vmatpush1.bf16.msra.mxu1 %v1102_v24  ;;  %v796_v24 = vld [vmem:[%s239_s8 + $0x18] sm:$0xff] }
  0x76   : > { %1231 = vmatpush1.bf16.msra.mxu0 %v1230_v25  ;;  %1105 = vmatprep.subr.bf16.mxu1 %v1104_v26 }
  0x77   : > { %1233 = vmatprep.subr.bf16.mxu0 %v1232_v30 }
  0x79   : > { %1107 = vmatpush1.bf16.msra.mxu1 %v1106_v36 }
  0x7a   : > { %1235 = vmatpush1.bf16.msra.mxu0 %v1234_v37  ;;  %1109 = vmatprep.subr.bf16.mxu1 %v1108_v38 }
  0x7b   : > { %1237 = vmatprep.subr.bf16.mxu0 %v1236_v42 }
  0x7d   : > { %1111 = vmatpush1.bf16.msra.mxu1 %v1110_v48 }
  0x7e   : > { %1239 = vmatpush1.bf16.msra.mxu0 %v1238_v49  ;;  %1113 = vmatprep.subr.bf16.mxu1 %v1112_v50 }
  0x7f   : > { %1241 = vmatprep.subr.bf16.mxu0 %v1240_v54 }
  0x81   : > { %1115 = vmatpush1.bf16.msra.mxu1 %v1114_v60 }
  0x82   : > { %1243 = vmatpush1.bf16.msra.mxu0 %v1242_v61  ;;  %1117 = vmatprep.subr.bf16.mxu1 %v1116_v62 }
  0x83   : > { %1245 = vmatprep.subr.bf16.mxu0 %v1244_v1 }
  0x85   : > { %1119 = vmatpush1.bf16.msra.mxu1 %v1118_v4 }
  0x86   : > { %1247 = vmatpush1.bf16.msra.mxu0 %v1246_v5 }
  0x88   : > { %645 = vmatmul.mubr.f32.vlgmr.msra.gmra.mrb[0].mxu1 %v247_v6 }
  0x89   : > { %787 = vmatmul.mubr.f32.vlgmr.msra.gmra.mrb[0].mxu0 %v251_v7  ;;  %876 = vmatprep.mubr.f32.mxu1 %v1275_v8 }
  0x8a   : > { %870 = vmatprep.mubr.f32.mxu0 %v1275_v8 }
  0xde   : > { %v892_v20 = vpop.permute.xlu0 %891 }
  0xe2   : > { %v897_v33 = vpop.permute.xlu0 %896 }
 0x15b   : > { %v646_v12 = vpop.f32.mrb[0].mxu1 }
 0x15c   : > { %v788_v13 = vpop.f32.mrb[0].mxu0  ;;  %v648_v14 = vpop.f32.mrb[1].mxu1 }
 0x15d   : > { %v1250_v15 = vadd.f32 %v788_v13, %v646_v12  ;;  %v790_v16 = vpop.f32.mrb[1].mxu0 }
 0x15e   : > { %v1251_v17 = vadd.f32 %v790_v16, %v648_v14 }
 0x160   : > { %806 = vmatprep.subr.mxu0 %v1251_v17  ;;  %1248 = vmatprep.subr.mxu1 %v1251_v17 }
 0x161   : > { %807 = vmatpush1.msra.mxu0 %v1250_v15  ;;  %1249 = vmatpush1.msra.mxu1 %v1250_v15 }
 0x162   : > { %985 = vmatmul.mubr.msk.f32.vlgmr.msra.gmra.mrb[2].mxu0 %vm799_vm0, %v797_v18  ;;  %986 = vmatmul.mubr.msk.f32.vlgmr.msra.gmra.mrb[2].mxu1 %vm799_vm0, %v798_v19 }
 0x235   : > { %v872_v25 = vpop.f32.mrb[2].mxu0  ;;  %v878_v26 = vpop.f32.mrb[2].mxu1 }
 0x236   : > { %v883_v27 = vadd.f32 %v872_v25, %v793_v21  ;;  %v885_v28 = vadd.f32 %v878_v26, %v795_v22  ;;  %v874_v29 = vpop.f32.mrb[3].mxu0  ;;  %v880_v30 = vpop.f32.mrb[3].mxu1 }
 0x237   : > { %v884_v31 = vadd.f32 %v874_v29, %v794_v23  ;;  %v886_v32 = vadd.f32 %v880_v30, %v796_v24 }
 0x238   : > { %v899_v34 = vadd.f32 %v892_v20, %v883_v27  ;;  %v901_v35 = vadd.f32 %v897_v33, %v885_v28 }
 0x239   : > { %v900_v36 = vadd.f32 %v892_v20, %v884_v31  ;;  %v902_v37 = vadd.f32 %v897_v33, %v886_v32 }
 0x23a   : > { %903 = vst [vmem:[%s244_s11] sm:$0xff] %v899_v34  ;;  %905 = vst [vmem:[%s244_s11 + $0x10] sm:$0xff] %v901_v35 }
 0x23b   : > { %904 = vst [vmem:[%s244_s11 + $0x8] sm:$0xff] %v900_v36  ;;  %906 = vst [vmem:[%s244_s11 + $0x18] sm:$0xff] %v902_v37 }
 0x23c PF: > { %s15_s18 = sadd.s32 1, %s1273_s18  }
 0x23d   : > { %p12_p4 = scmp.ge.s32.totalorder %s15_s18, 4  }
 0x23f   :  { %14 = sbr.rel (!%p12_p4) target bundleno = 1 (0x1), region = 73 }

</bundles_post_ra>
